<compile_context>
chip_gen: v5e
topology: v5e:2x2
jax: 0.10.0
libtpu: 0.0.40
codegen_flags: <defaults>
</compile_context>

<pallas_src>
import jax
import jax.numpy as jnp
from jax.experimental import pallas as pl
from jax.experimental.pallas import tpu as pltpu

BN_EPS = 1e-5
MAX_TM_MM = 512      # M tile for the fused matmul(+stats) kernels
MAX_TM_ELEM = 1024   # M tile for the element-wise BN/ReLU kernel


def _round_up(x, m):
    return (x + m - 1) // m * m


def _pick_tm(M, cap, want_multi=False):
    """Largest tile that divides M exactly (multiple of 8 unless M itself is
    returned).  want_multi caps the tile so the axis has >= 2 blocks (v7x)."""
    if want_multi and M >= 16:
        cap = min(cap, max(8, (M // 2) // 8 * 8))
    if M <= cap:
        return M
    if M % 8 != 0:
        return M                       # ragged: one full-extent block
    cand = cap // 8 * 8
    while cand >= 8:
        if M % cand == 0:
            return cand
        cand -= 8
    return M


# ----------------------------- Pallas kernels ------------------------------

def _mm_stats_kernel(x_ref, w_ref, y_ref, stats_ref):
    """(TM,K)bf16 @ (K,Cpad)bf16 -> bf16 y, with per-channel sum / sum-of-sq
    fused into the epilogue (accumulated across the M-tile grid axis)."""
    @pl.when(pl.program_id(1) == 0)
    def _():
        stats_ref[...] = jnp.zeros_like(stats_ref)

    y = jnp.dot(x_ref[...], w_ref[...], preferred_element_type=jnp.float32)
    y_ref[...] = y.astype(y_ref.dtype)

    s1 = jnp.sum(y, axis=0, keepdims=True)           # (1, Cpad)
    s2 = jnp.sum(y * y, axis=0, keepdims=True)       # (1, Cpad)
    upd = jnp.concatenate(
        [s1, s2, jnp.zeros((6, y.shape[-1]), jnp.float32)], axis=0)
    stats_ref[...] += upd                             # unmasked full-block RMW


def _mm_sigmoid_kernel(x_ref, w_ref, o_ref):
    """Matmul with Sigmoid fused into the epilogue (EUP exp + approx recip)."""
    y = jnp.dot(x_ref[...], w_ref[...], preferred_element_type=jnp.float32)
    o_ref[...] = pl.reciprocal(1.0 + jnp.exp(-y), approx=True)


def _bn_relu_kernel(y_ref, scale_ref, shift_ref, o_ref):
    y = y_ref[...].astype(jnp.float32) * scale_ref[...] + shift_ref[...]
    o_ref[...] = jnp.maximum(y, 0.0).astype(o_ref.dtype)


# --------------------------- pallas_call wrappers ---------------------------

def _conv_matmul_stats(patches, w_stack, shared_patches):
    """patches (Pp,M,K) bf16 @ w_stack (P,K,Cpad) bf16, phase-stacked grid.
    Returns y (P,M,Cpad) bf16 and stats (P,8,Cpad) f32 (row0 sum, row1 sumsq)."""
    P, K, Cpad = w_stack.shape
    M = patches.shape[1]
    TM = _pick_tm(M, MAX_TM_MM)
    x_map = (lambda p, i: (0, i, 0)) if shared_patches else (lambda p, i: (p, i, 0))
    return pl.pallas_call(
        _mm_stats_kernel,
        out_shape=(jax.ShapeDtypeStruct((P, M, Cpad), jnp.bfloat16),
                   jax.ShapeDtypeStruct((P, 8, Cpad), jnp.float32)),
        grid=(P, M // TM),
        in_specs=[pl.BlockSpec((None, TM, K), x_map),
                  pl.BlockSpec((None, K, Cpad), lambda p, i: (p, 0, 0))],
        out_specs=(pl.BlockSpec((None, TM, Cpad), lambda p, i: (p, i, 0)),
                   pl.BlockSpec((None, 8, Cpad), lambda p, i: (p, 0, 0))),
        compiler_params=pltpu.CompilerParams(
            dimension_semantics=("parallel", "arbitrary")),
    )(patches, w_stack)


def _conv_matmul_sigmoid(patches, w_stack):
    P, K, Cpad = w_stack.shape
    M = patches.shape[1]
    TM = _pick_tm(M, MAX_TM_MM, want_multi=(P == 1))
    return pl.pallas_call(
        _mm_sigmoid_kernel,
        out_shape=jax.ShapeDtypeStruct((P, M, Cpad), jnp.float32),
        grid=(P, M // TM),
        in_specs=[pl.BlockSpec((None, TM, K), lambda p, i: (p, i, 0)),
                  pl.BlockSpec((None, K, Cpad), lambda p, i: (p, 0, 0))],
        out_specs=pl.BlockSpec((None, TM, Cpad), lambda p, i: (p, i, 0)),
        compiler_params=pltpu.CompilerParams(
            dimension_semantics=("parallel", "parallel")),
    )(patches, w_stack)


def _bn_relu(y2d, scale, shift):
    Mt, Cpad = y2d.shape
    TM = _pick_tm(Mt, MAX_TM_ELEM, want_multi=True)
    return pl.pallas_call(
        _bn_relu_kernel,
        out_shape=jax.ShapeDtypeStruct((Mt, Cpad), jnp.bfloat16),
        grid=(Mt // TM,),
        in_specs=[pl.BlockSpec((TM, Cpad), lambda i: (i, 0)),
                  pl.BlockSpec((1, Cpad), lambda i: (0, 0)),
                  pl.BlockSpec((1, Cpad), lambda i: (0, 0))],
        out_specs=pl.BlockSpec((TM, Cpad), lambda i: (i, 0)),
        compiler_params=pltpu.CompilerParams(
            dimension_semantics=("parallel",)),
    )(y2d, scale, shift)


# --------------------- sub-pixel deconv geometry / glue ---------------------

def _phase_geometry(s, p, k, size_in, size_out, r):
    """One spatial axis of sub-pixel phase r of ConvTranspose(k, s, p)."""
    o0 = (r - p) % s                       # first output index of this phase
    q = (o0 + p - r) // s                  # base input-index offset
    kk = (k - r + s - 1) // s              # kernel taps in this phase
    n = (size_out - o0 + s - 1) // s       # outputs produced by this phase
    pad_lo = max(0, kk - 1 - q)
    pad_hi = max(0, n - 1 + q - (size_in - 1))
    return o0, q, kk, n, pad_lo, pad_hi


def _build_patches(x, layer):
    """Phase-stacked stride-1 im2col patches (no structural zeros, no M/K pad)."""
    if layer["mode"] == "point":           # 1x1 spatial input (layer 0)
        N = x.shape[0]
        return x.reshape(1, N, -1)         # latent shared across all phases
    (pt, pb), (pwl, pwr) = layer["pad"]
    xp = jnp.pad(x, ((0, 0), (pt, pb), (pwl, pwr), (0, 0)))
    n_ty, n_tx, K = layer["n_ty"], layer["n_tx"], layer["K"]
    phs = []
    for ph in layer["phases"]:
        cols = [xp[:, sy:sy + n_ty, sx:sx + n_tx, :]
                for sy in ph["ystarts"] for sx in ph["xstarts"]]
        pcat = cols[0] if len(cols) == 1 else jnp.concatenate(cols, axis=-1)
        phs.append(pcat.reshape(-1, K))
    # TODO(synk): gather the kxk taps inside the kernel (pl.ANY + per-tap DMA)
    # so this ~kk^2 duplication never touches HBM.
    return jnp.stack(phs, axis=0)          # (P, M, K)


def _depth_to_space(a, layer, N, dtype):
    """Reassemble phase outputs (sorted by (oy0, ox0)) with one transpose."""
    n_ty, n_tx, sy, sx = layer["n_ty"], layer["n_tx"], layer["sy"], layer["sx"]
    C = a.shape[-1]
    a = a.reshape(sy, sx, N, n_ty, n_tx, C)
    a = jnp.transpose(a, (2, 3, 0, 4, 1, 5))
    return a.reshape(N, n_ty * sy, n_tx * sx, C).astype(dtype)


# ------------------------------ layer forward -------------------------------

def _trunk_layer(x, layer):
    N = x.shape[0]
    patches = _build_patches(x, layer)
    y, stats = _conv_matmul_stats(patches, layer["w"],
                                  shared_patches=(layer["mode"] == "point"))
    P, M, Cpad = y.shape

    # PyTorch training-mode BatchNorm: batch stats, biased variance.
    s = jnp.sum(stats, axis=0)                         # (8, Cpad) f32
    m_total = float(P * M)                             # == N * Hout * Wout
    mean = s[0] / m_total
    var = jnp.maximum(s[1] / m_total - mean * mean, 0.0)
    inv_std = jax.lax.rsqrt(var + BN_EPS)
    scale = layer["gamma"] * inv_std
    shift = layer["beta"] - mean * scale

    act = _bn_relu(y.reshape(P * M, Cpad),
                   scale.reshape(1, Cpad), shift.reshape(1, Cpad))
    act = act.reshape(P, M, Cpad)[:, :, :layer["cout"]]
    return _depth_to_space(act, layer, N, jnp.bfloat16)


def _last_layer(x, layer):
    N = x.shape[0]
    patches = _build_patches(x, layer)
    out = _conv_matmul_sigmoid(patches, layer["w"])
    out = out[:, :, :layer["cout"]]
    return _depth_to_space(out, layer, N, jnp.float32)


def netG_forward(x_nchw, params):
    """_netG forward.  NCHW (N, nz, 1, 1) latent -> NCHW image."""
    x = jnp.transpose(x_nchw, (0, 2, 3, 1)).astype(jnp.bfloat16)   # -> NHWC
    for layer in params["main"]:
        x = _trunk_layer(x, layer)
    out = _last_layer(x, params["last"])
    return jnp.transpose(out, (0, 3, 1, 2))                        # -> NCHW


# --------------------------- parameter handling ------------------------------

def _prepare_layer(w, s, p, Hin, Win, gamma=None, beta=None):
    """Precompute phase-stacked (P, K, Cpad) bf16 weights, phase geometry and
    padded BN parameters once (not per forward call)."""
    cin, cout, k, _ = w.shape
    cpad = _round_up(cout, 128)
    Hout = (Hin - 1) * s - 2 * p + k
    Wout = (Win - 1) * s - 2 * p + k
    layer = {"cout": cout, "cpad": cpad, "Hout": Hout, "Wout": Wout}

    if Hin == 1 and Win == 1:
        # 1x1 spatial input: output position (oy, ox) is just z @ w[:, :, oy+p, ox+p]
        layer.update(mode="point", K=cin, n_ty=1, n_tx=1, sy=Hout, sx=Wout,
                     phases=[])
        ws = []
        for oy in range(Hout):
            for ox in range(Wout):
                wm = w[:, :, oy + p, ox + p]                        # (cin, cout)
                ws.append(jnp.pad(wm, ((0, 0), (0, cpad - cout))))
        layer["w"] = jnp.stack(ws, 0).astype(jnp.bfloat16)          # (P, cin, cpad)
    else:
        assert Hout % s == 0 and Wout % s == 0
        geos_y = [_phase_geometry(s, p, k, Hin, Hout, r) for r in range(s)]
        geos_x = [_phase_geometry(s, p, k, Win, Wout, r) for r in range(s)]
        pad_t = max(g[4] for g in geos_y); pad_b = max(g[5] for g in geos_y)
        pad_l = max(g[4] for g in geos_x); pad_r = max(g[5] for g in geos_x)
        kk_y, n_ty = geos_y[0][2], geos_y[0][3]
        kk_x, n_tx = geos_x[0][2], geos_x[0][3]
        assert all(g[2] == kk_y and g[3] == n_ty for g in geos_y)
        assert all(g[2] == kk_x and g[3] == n_tx for g in geos_x)
        K = kk_y * kk_x * cin
        layer.update(mode="conv", K=K, n_ty=n_ty, n_tx=n_tx, sy=s, sx=s,
                     pad=((pad_t, pad_b), (pad_l, pad_r)))
        order_y = sorted(range(s), key=lambda r: geos_y[r][0])
        order_x = sorted(range(s), key=lambda r: geos_x[r][0])
        phases, ws = [], []
        for ry in order_y:
            qy = geos_y[ry][1]
            ystarts = [qy - m + pad_t for m in range(kk_y)]
            for rx in order_x:
                qx = geos_x[rx][1]
                xstarts = [qx - m + pad_l for m in range(kk_x)]
                phases.append({"ystarts": ystarts, "xstarts": xstarts})
                w_sub = w[:, :, ry::s, rx::s]                       # (cin,cout,kk_y,kk_x)
                wm = jnp.transpose(w_sub, (2, 3, 0, 1)).reshape(K, cout)
                ws.append(jnp.pad(wm, ((0, 0), (0, cpad - cout))))
        layer["phases"] = phases
        layer["w"] = jnp.stack(ws, 0).astype(jnp.bfloat16)          # (P, K, cpad)

    if gamma is not None:
        layer["gamma"] = jnp.pad(gamma.astype(jnp.float32), (0, cpad - cout))
        layer["beta"] = jnp.pad(beta.astype(jnp.float32), (0, cpad - cout))
    return layer


def prepare_params(raw):
    main = []
    Hin = Win = 1
    for (w, gamma, beta, s, p) in raw["main"]:
        layer = _prepare_layer(w, s, p, Hin, Win, gamma, beta)
        main.append(layer)
        Hin, Win = layer["Hout"], layer["Wout"]
    w_last, s, p = raw["last"]
    return {"main": main, "last": _prepare_layer(w_last, s, p, Hin, Win)}


def init_raw_params(key, nz, ngf, nc, imgsize):
    layer_defs = [
        (nz,      ngf * 8, 4, 1, 0),
        (ngf * 8, ngf * 4, 4, 2, 1),
        (ngf * 4, ngf * 2, 4, 2, 1),
        (ngf * 2, ngf,     4, 2, 1),
    ]
    keys = jax.random.split(key, 2 * len(layer_defs) + 1)
    main = []
    for i, (cin, cout, k, s, p) in enumerate(layer_defs):
        w = 0.02 * jax.random.normal(keys[2 * i], (cin, cout, k, k), jnp.float32)
        gamma = 1.0 + 0.02 * jax.random.normal(keys[2 * i + 1], (cout,), jnp.float32)
        beta = jnp.zeros((cout,), jnp.float32)
        main.append((w, gamma, beta, s, p))
    Hout = 32
    stride_size = imgsize // Hout                       # floor(imgsize / 32)
    kernel_size = imgsize - (Hout - 1) * stride_size
    w_last = 0.02 * jax.random.normal(
        keys[-1], (ngf, nc, kernel_size, kernel_size), jnp.float32)
    return {"main": main, "last": (w_last, stride_size, 0)}


# ------------------------------ reference -----------------------------------

def _reference_forward(x_nchw, raw):
    """Pure-JAX f32 reference (zero-insert transposed conv) for a self-check."""
    def deconv(x, w, s, p):
        k = w.shape[2]
        rhs = jnp.transpose(w, (1, 0, 2, 3))[:, :, ::-1, ::-1]
        return jax.lax.conv_general_dilated(
            x, rhs, window_strides=(1, 1),
            padding=[(k - 1 - p, k - 1 - p)] * 2,
            lhs_dilation=(s, s),
            dimension_numbers=("NCHW", "OIHW", "NCHW"),
            precision=jax.lax.Precision.HIGHEST)

    x = x_nchw.astype(jnp.float32)
    for (w, gamma, beta, s, p) in raw["main"]:
        y = deconv(x, w, s, p)
        mean = jnp.mean(y, axis=(0, 2, 3), keepdims=True)
        var = jnp.mean(jnp.square(y - mean), axis=(0, 2, 3), keepdims=True)
        y = (y - mean) * jax.lax.rsqrt(var + BN_EPS)
        y = y * gamma.reshape(1, -1, 1, 1) + beta.reshape(1, -1, 1, 1)
        x = jnp.maximum(y, 0.0)
    w, s, p = raw["last"]
    return jax.nn.sigmoid(deconv(x, w, s, p))


# ------------------------------- driver -------------------------------------

if __name__ == "__main__":
    nz, ngf, nc, imgsize, batch = 8, 8, 3, 32, 2
    key = jax.random.PRNGKey(0)
    pkey, xkey = jax.random.split(key)

    raw = init_raw_params(pkey, nz, ngf, nc, imgsize)
    params = prepare_params(raw)
    x = jax.random.normal(xkey, (batch, nz, 1, 1), jnp.float32)   # NCHW latent

    fwd = jax.jit(lambda latents: netG_forward(latents, params))
    out = jax.block_until_ready(fwd(x))

    assert out.shape == (batch, nc, imgsize, imgsize), out.shape
    assert bool(jnp.all(jnp.isfinite(out)))

    # numerical self-check vs. a pure-JAX f32 reference (bf16 MXU tolerance)
    ref = _reference_forward(x, raw)
    max_err = float(jnp.max(jnp.abs(out - ref)))
    assert max_err < 5e-2, f"max abs err vs reference: {max_err}"
    print("KERNEL_OK")
</pallas_src>

<mosaic_0001>
module attributes {stable_mosaic.version = 11 : i64} {
  func.func @_mm_stats_kernel(%arg0: i32, %arg1: i32, %arg2: memref<1x2x8xbf16, #tpu.memory_space<vmem>>, %arg3: memref<1x8x128xbf16, #tpu.memory_space<vmem>>, %arg4: memref<1x2x128xbf16, #tpu.memory_space<vmem>>, %arg5: memref<1x8x128xf32, #tpu.memory_space<vmem>>) attributes {dimension_semantics = [#tpu.dimension_semantics<parallel>, #tpu.dimension_semantics<arbitrary>], iteration_bounds = array<i64: 16, 1>, scalar_prefetch = 0 : i64, scratch_operands = 0 : i64, tpu.core_type = #tpu.core_type<tc>, window_params = [{transform_indices = @transform_0, window_bounds = array<i64: 1, 2, 8>}, {transform_indices = @transform_1, window_bounds = array<i64: 1, 8, 128>}, {transform_indices = @transform_2, window_bounds = array<i64: 1, 2, 128>}, {transform_indices = @transform_3, window_bounds = array<i64: 1, 8, 128>}]} {
    %c0_i32 = arith.constant 0 : i32
    %0 = arith.cmpi eq, %arg1, %c0_i32 : i32
    %1 = arith.extui %0 : i1 to i32
    %c0_i32_0 = arith.constant 0 : i32
    %2 = arith.cmpi ne, %1, %c0_i32_0 : i32
    scf.if %2 {
      %cst_18 = arith.constant 0.000000e+00 : f32
      %25 = vector.broadcast %cst_18 : f32 to vector<8x128xf32>
      %c0_19 = arith.constant 0 : index
      %c0_20 = arith.constant 0 : index
      %c0_21 = arith.constant 0 : index
      %26 = vector.load %arg5[%c0_19, %c0_20, %c0_21] : memref<1x8x128xf32, #tpu.memory_space<vmem>>, vector<1x8x128xf32>
      %27 = vector.shape_cast %26 : vector<1x8x128xf32> to vector<8x128xf32>
      %28 = vector.shape_cast %25 : vector<8x128xf32> to vector<1x8x128xf32>
      tpu.vector_store %arg5[%c0_19, %c0_20, %c0_21], %28 {strides = array<i32>} : memref<1x8x128xf32, #tpu.memory_space<vmem>>, vector<1x8x128xf32>,
    } else {
    }
    %c0 = arith.constant 0 : index
    %c0_1 = arith.constant 0 : index
    %c0_2 = arith.constant 0 : index
    %3 = vector.load %arg2[%c0, %c0_1, %c0_2] : memref<1x2x8xbf16, #tpu.memory_space<vmem>>, vector<1x2x8xbf16>
    %4 = vector.shape_cast %3 : vector<1x2x8xbf16> to vector<2x8xbf16>
    %c0_3 = arith.constant 0 : index
    %c0_4 = arith.constant 0 : index
    %c0_5 = arith.constant 0 : index
    %5 = vector.load %arg3[%c0_3, %c0_4, %c0_5] : memref<1x8x128xbf16, #tpu.memory_space<vmem>>, vector<1x8x128xbf16>
    %6 = vector.shape_cast %5 : vector<1x8x128xbf16> to vector<8x128xbf16>
    %cst = arith.constant dense<0.000000e+00> : vector<2x128xf32>
    %7 = tpu.matmul %4, %6, %cst {dimension_numbers = #tpu.dot_dimension_numbers<[1], [0], [0], [1], [0, 0, 1, 1], [], []>} : vector<2x8xbf16>, vector<8x128xbf16>, vector<2x128xf32> -> vector<2x128xf32>
    %8 = arith.truncf %7 : vector<2x128xf32> to vector<2x128xbf16>
    %c0_6 = arith.constant 0 : index
    %c0_7 = arith.constant 0 : index
    %c0_8 = arith.constant 0 : index
    %9 = vector.load %arg4[%c0_6, %c0_7, %c0_8] : memref<1x2x128xbf16, #tpu.memory_space<vmem>>, vector<1x2x128xbf16>
    %10 = vector.shape_cast %9 : vector<1x2x128xbf16> to vector<2x128xbf16>
    %11 = vector.shape_cast %8 : vector<2x128xbf16> to vector<1x2x128xbf16>
    tpu.vector_store %arg4[%c0_6, %c0_7, %c0_8], %11 {strides = array<i32>} : memref<1x2x128xbf16, #tpu.memory_space<vmem>>, vector<1x2x128xbf16>,
    %cst_9 = arith.constant dense<0.000000e+00> : vector<128xf32>
    %12 = vector.multi_reduction <add>, %7, %cst_9 [0] : vector<2x128xf32> to vector<128xf32>
    %13 = vector.shape_cast %12 : vector<128xf32> to vector<1x128xf32>
    %14 = arith.mulf %7, %7 : vector<2x128xf32>
    %cst_10 = arith.constant dense<0.000000e+00> : vector<128xf32>
    %15 = vector.multi_reduction <add>, %14, %cst_10 [0] : vector<2x128xf32> to vector<128xf32>
    %16 = vector.shape_cast %15 : vector<128xf32> to vector<1x128xf32>
    %cst_11 = arith.constant 0.000000e+00 : f32
    %17 = vector.broadcast %cst_11 : f32 to vector<6x128xf32>
    %18 = tpu.concatenate %13, %16, %17 in 0 : vector<1x128xf32>, vector<1x128xf32>, vector<6x128xf32> -> vector<8x128xf32>
    %c0_12 = arith.constant 0 : index
    %c0_13 = arith.constant 0 : index
    %c0_14 = arith.constant 0 : index
    %19 = vector.load %arg5[%c0_12, %c0_13, %c0_14] : memref<1x8x128xf32, #tpu.memory_space<vmem>>, vector<1x8x128xf32>
    %20 = vector.shape_cast %19 : vector<1x8x128xf32> to vector<8x128xf32>
    %21 = arith.addf %20, %18 : vector<8x128xf32>
    %c0_15 = arith.constant 0 : index
    %c0_16 = arith.constant 0 : index
    %c0_17 = arith.constant 0 : index
    %22 = vector.load %arg5[%c0_15, %c0_16, %c0_17] : memref<1x8x128xf32, #tpu.memory_space<vmem>>, vector<1x8x128xf32>
    %23 = vector.shape_cast %22 : vector<1x8x128xf32> to vector<8x128xf32>
    %24 = vector.shape_cast %21 : vector<8x128xf32> to vector<1x8x128xf32>
    tpu.vector_store %arg5[%c0_15, %c0_16, %c0_17], %24 {strides = array<i32>} : memref<1x8x128xf32, #tpu.memory_space<vmem>>, vector<1x8x128xf32>,
    return
  }
  func.func @transform_0(%arg0: i32, %arg1: i32) -> (i32, i32, i32) {
    %c0_i32 = arith.constant 0 : i32
    %c0_i32_0 = arith.constant 0 : i32
    %c0_i32_1 = arith.constant 0 : i32
    return %c0_i32, %arg1, %c0_i32_0 : i32, i32, i32
  }
  func.func @transform_1(%arg0: i32, %arg1: i32) -> (i32, i32, i32) {
    %c0_i32 = arith.constant 0 : i32
    %c0_i32_0 = arith.constant 0 : i32
    %c0_i32_1 = arith.constant 0 : i32
    return %arg0, %c0_i32, %c0_i32_0 : i32, i32, i32
  }
  func.func @transform_2(%arg0: i32, %arg1: i32) -> (i32, i32, i32) {
    %c0_i32 = arith.constant 0 : i32
    %c0_i32_0 = arith.constant 0 : i32
    return %arg0, %arg1, %c0_i32 : i32, i32, i32
  }
  func.func @transform_3(%arg0: i32, %arg1: i32) -> (i32, i32, i32) {
    %c0_i32 = arith.constant 0 : i32
    %c0_i32_0 = arith.constant 0 : i32
    %c0_i32_1 = arith.constant 0 : i32
    return %arg0, %c0_i32, %c0_i32_0 : i32, i32, i32
  }
}

module attributes {stable_mosaic.version = 11 : i64} {
  func.func @_bn_relu_kernel(%arg0: i32, %arg1: memref<16x128xbf16, #tpu.memory_space<vmem>>, %arg2: memref<1x128xf32, #tpu.memory_space<vmem>>, %arg3: memref<1x128xf32, #tpu.memory_space<vmem>>, %arg4: memref<16x128xbf16, #tpu.memory_space<vmem>>) attributes {dimension_semantics = [#tpu.dimension_semantics<parallel>], iteration_bounds = array<i64: 2>, scalar_prefetch = 0 : i64, scratch_operands = 0 : i64, tpu.core_type = #tpu.core_type<tc>, window_params = [{transform_indices = @transform_0, window_bounds = array<i64: 16, 128>}, {pipeline_mode = #tpu.pipeline_mode<synchronous>, transform_indices = @transform_1, window_bounds = array<i64: 1, 128>}, {pipeline_mode = #tpu.pipeline_mode<synchronous>, transform_indices = @transform_2, window_bounds = array<i64: 1, 128>}, {transform_indices = @transform_3, window_bounds = array<i64: 16, 128>}]} {
    %c0 = arith.constant 0 : index
    %c0_0 = arith.constant 0 : index
    %0 = vector.load %arg1[%c0, %c0_0] : memref<16x128xbf16, #tpu.memory_space<vmem>>, vector<16x128xbf16>
    %1 = arith.extf %0 : vector<16x128xbf16> to vector<16x128xf32>
    %c0_1 = arith.constant 0 : index
    %c0_2 = arith.constant 0 : index
    %2 = vector.load %arg2[%c0_1, %c0_2] : memref<1x128xf32, #tpu.memory_space<vmem>>, vector<1x128xf32>
    %3 = vector.broadcast %2 : vector<1x128xf32> to vector<16x128xf32>
    %4 = arith.mulf %1, %3 : vector<16x128xf32>
    %c0_3 = arith.constant 0 : index
    %c0_4 = arith.constant 0 : index
    %5 = vector.load %arg3[%c0_3, %c0_4] : memref<1x128xf32, #tpu.memory_space<vmem>>, vector<1x128xf32>
    %6 = vector.broadcast %5 : vector<1x128xf32> to vector<16x128xf32>
    %7 = arith.addf %4, %6 : vector<16x128xf32>
    %cst = arith.constant 0.000000e+00 : f32
    %8 = vector.broadcast %cst : f32 to vector<16x128xf32>
    %9 = arith.maximumf %7, %8 : vector<16x128xf32>
    %10 = arith.truncf %9 : vector<16x128xf32> to vector<16x128xbf16>
    %c0_5 = arith.constant 0 : index
    %c0_6 = arith.constant 0 : index
    %11 = vector.load %arg4[%c0_5, %c0_6] : memref<16x128xbf16, #tpu.memory_space<vmem>>, vector<16x128xbf16>
    tpu.vector_store %arg4[%c0_5, %c0_6], %10 {strides = array<i32>} : memref<16x128xbf16, #tpu.memory_space<vmem>>, vector<16x128xbf16>,
    return
  }
  func.func @transform_0(%arg0: i32) -> (i32, i32) {
    %c0_i32 = arith.constant 0 : i32
    %c0_i32_0 = arith.constant 0 : i32
    return %arg0, %c0_i32 : i32, i32
  }
  func.func @transform_1(%arg0: i32) -> (i32, i32) {
    %c0_i32 = arith.constant 0 : i32
    %c0_i32_0 = arith.constant 0 : i32
    %c0_i32_1 = arith.constant 0 : i32
    return %c0_i32, %c0_i32_0 : i32, i32
  }
  func.func @transform_2(%arg0: i32) -> (i32, i32) {
    %c0_i32 = arith.constant 0 : i32
    %c0_i32_0 = arith.constant 0 : i32
    %c0_i32_1 = arith.constant 0 : i32
    return %c0_i32, %c0_i32_0 : i32, i32
  }
  func.func @transform_3(%arg0: i32) -> (i32, i32) {
    %c0_i32 = arith.constant 0 : i32
    %c0_i32_0 = arith.constant 0 : i32
    return %arg0, %c0_i32 : i32, i32
  }
}

module attributes {stable_mosaic.version = 11 : i64} {
  func.func @_mm_stats_kernel(%arg0: i32, %arg1: i32, %arg2: memref<1x32x256xbf16, #tpu.memory_space<vmem>>, %arg3: memref<1x256x128xbf16, #tpu.memory_space<vmem>>, %arg4: memref<1x32x128xbf16, #tpu.memory_space<vmem>>, %arg5: memref<1x8x128xf32, #tpu.memory_space<vmem>>) attributes {dimension_semantics = [#tpu.dimension_semantics<parallel>, #tpu.dimension_semantics<arbitrary>], iteration_bounds = array<i64: 4, 1>, scalar_prefetch = 0 : i64, scratch_operands = 0 : i64, tpu.core_type = #tpu.core_type<tc>, window_params = [{transform_indices = @transform_0, window_bounds = array<i64: 1, 32, 256>}, {transform_indices = @transform_1, window_bounds = array<i64: 1, 256, 128>}, {transform_indices = @transform_2, window_bounds = array<i64: 1, 32, 128>}, {transform_indices = @transform_3, window_bounds = array<i64: 1, 8, 128>}]} {
    %c0_i32 = arith.constant 0 : i32
    %0 = arith.cmpi eq, %arg1, %c0_i32 : i32
    %1 = arith.extui %0 : i1 to i32
    %c0_i32_0 = arith.constant 0 : i32
    %2 = arith.cmpi ne, %1, %c0_i32_0 : i32
    scf.if %2 {
      %cst_18 = arith.constant 0.000000e+00 : f32
      %25 = vector.broadcast %cst_18 : f32 to vector<8x128xf32>
      %c0_19 = arith.constant 0 : index
      %c0_20 = arith.constant 0 : index
      %c0_21 = arith.constant 0 : index
      %26 = vector.load %arg5[%c0_19, %c0_20, %c0_21] : memref<1x8x128xf32, #tpu.memory_space<vmem>>, vector<1x8x128xf32>
      %27 = vector.shape_cast %26 : vector<1x8x128xf32> to vector<8x128xf32>
      %28 = vector.shape_cast %25 : vector<8x128xf32> to vector<1x8x128xf32>
      tpu.vector_store %arg5[%c0_19, %c0_20, %c0_21], %28 {strides = array<i32>} : memref<1x8x128xf32, #tpu.memory_space<vmem>>, vector<1x8x128xf32>,
    } else {
    }
    %c0 = arith.constant 0 : index
    %c0_1 = arith.constant 0 : index
    %c0_2 = arith.constant 0 : index
    %3 = vector.load %arg2[%c0, %c0_1, %c0_2] : memref<1x32x256xbf16, #tpu.memory_space<vmem>>, vector<1x32x256xbf16>
    %4 = vector.shape_cast %3 : vector<1x32x256xbf16> to vector<32x256xbf16>
    %c0_3 = arith.constant 0 : index
    %c0_4 = arith.constant 0 : index
    %c0_5 = arith.constant 0 : index
    %5 = vector.load %arg3[%c0_3, %c0_4, %c0_5] : memref<1x256x128xbf16, #tpu.memory_space<vmem>>, vector<1x256x128xbf16>
    %6 = vector.shape_cast %5 : vector<1x256x128xbf16> to vector<256x128xbf16>
    %cst = arith.constant dense<0.000000e+00> : vector<32x128xf32>
    %7 = tpu.matmul %4, %6, %cst {dimension_numbers = #tpu.dot_dimension_numbers<[1], [0], [0], [1], [0, 0, 1, 1], [], []>} : vector<32x256xbf16>, vector<256x128xbf16>, vector<32x128xf32> -> vector<32x128xf32>
    %8 = arith.truncf %7 : vector<32x128xf32> to vector<32x128xbf16>
    %c0_6 = arith.constant 0 : index
    %c0_7 = arith.constant 0 : index
    %c0_8 = arith.constant 0 : index
    %9 = vector.load %arg4[%c0_6, %c0_7, %c0_8] : memref<1x32x128xbf16, #tpu.memory_space<vmem>>, vector<1x32x128xbf16>
    %10 = vector.shape_cast %9 : vector<1x32x128xbf16> to vector<32x128xbf16>
    %11 = vector.shape_cast %8 : vector<32x128xbf16> to vector<1x32x128xbf16>
    tpu.vector_store %arg4[%c0_6, %c0_7, %c0_8], %11 {strides = array<i32>} : memref<1x32x128xbf16, #tpu.memory_space<vmem>>, vector<1x32x128xbf16>,
    %cst_9 = arith.constant dense<0.000000e+00> : vector<128xf32>
    %12 = vector.multi_reduction <add>, %7, %cst_9 [0] : vector<32x128xf32> to vector<128xf32>
    %13 = vector.shape_cast %12 : vector<128xf32> to vector<1x128xf32>
    %14 = arith.mulf %7, %7 : vector<32x128xf32>
    %cst_10 = arith.constant dense<0.000000e+00> : vector<128xf32>
    %15 = vector.multi_reduction <add>, %14, %cst_10 [0] : vector<32x128xf32> to vector<128xf32>
    %16 = vector.shape_cast %15 : vector<128xf32> to vector<1x128xf32>
    %cst_11 = arith.constant 0.000000e+00 : f32
    %17 = vector.broadcast %cst_11 : f32 to vector<6x128xf32>
    %18 = tpu.concatenate %13, %16, %17 in 0 : vector<1x128xf32>, vector<1x128xf32>, vector<6x128xf32> -> vector<8x128xf32>
    %c0_12 = arith.constant 0 : index
    %c0_13 = arith.constant 0 : index
    %c0_14 = arith.constant 0 : index
    %19 = vector.load %arg5[%c0_12, %c0_13, %c0_14] : memref<1x8x128xf32, #tpu.memory_space<vmem>>, vector<1x8x128xf32>
    %20 = vector.shape_cast %19 : vector<1x8x128xf32> to vector<8x128xf32>
    %21 = arith.addf %20, %18 : vector<8x128xf32>
    %c0_15 = arith.constant 0 : index
    %c0_16 = arith.constant 0 : index
    %c0_17 = arith.constant 0 : index
    %22 = vector.load %arg5[%c0_15, %c0_16, %c0_17] : memref<1x8x128xf32, #tpu.memory_space<vmem>>, vector<1x8x128xf32>
    %23 = vector.shape_cast %22 : vector<1x8x128xf32> to vector<8x128xf32>
    %24 = vector.shape_cast %21 : vector<8x128xf32> to vector<1x8x128xf32>
    tpu.vector_store %arg5[%c0_15, %c0_16, %c0_17], %24 {strides = array<i32>} : memref<1x8x128xf32, #tpu.memory_space<vmem>>, vector<1x8x128xf32>,
    return
  }
  func.func @transform_0(%arg0: i32, %arg1: i32) -> (i32, i32, i32) {
    %c0_i32 = arith.constant 0 : i32
    %c0_i32_0 = arith.constant 0 : i32
    return %arg0, %arg1, %c0_i32 : i32, i32, i32
  }
  func.func @transform_1(%arg0: i32, %arg1: i32) -> (i32, i32, i32) {
    %c0_i32 = arith.constant 0 : i32
    %c0_i32_0 = arith.constant 0 : i32
    %c0_i32_1 = arith.constant 0 : i32
    return %arg0, %c0_i32, %c0_i32_0 : i32, i32, i32
  }
  func.func @transform_2(%arg0: i32, %arg1: i32) -> (i32, i32, i32) {
    %c0_i32 = arith.constant 0 : i32
    %c0_i32_0 = arith.constant 0 : i32
    return %arg0, %arg1, %c0_i32 : i32, i32, i32
  }
  func.func @transform_3(%arg0: i32, %arg1: i32) -> (i32, i32, i32) {
    %c0_i32 = arith.constant 0 : i32
    %c0_i32_0 = arith.constant 0 : i32
    %c0_i32_1 = arith.constant 0 : i32
    return %arg0, %c0_i32, %c0_i32_0 : i32, i32, i32
  }
}

module attributes {stable_mosaic.version = 11 : i64} {
  func.func @_bn_relu_kernel(%arg0: i32, %arg1: memref<64x128xbf16, #tpu.memory_space<vmem>>, %arg2: memref<1x128xf32, #tpu.memory_space<vmem>>, %arg3: memref<1x128xf32, #tpu.memory_space<vmem>>, %arg4: memref<64x128xbf16, #tpu.memory_space<vmem>>) attributes {dimension_semantics = [#tpu.dimension_semantics<parallel>], iteration_bounds = array<i64: 2>, scalar_prefetch = 0 : i64, scratch_operands = 0 : i64, tpu.core_type = #tpu.core_type<tc>, window_params = [{transform_indices = @transform_0, window_bounds = array<i64: 64, 128>}, {pipeline_mode = #tpu.pipeline_mode<synchronous>, transform_indices = @transform_1, window_bounds = array<i64: 1, 128>}, {pipeline_mode = #tpu.pipeline_mode<synchronous>, transform_indices = @transform_2, window_bounds = array<i64: 1, 128>}, {transform_indices = @transform_3, window_bounds = array<i64: 64, 128>}]} {
    %c0 = arith.constant 0 : index
    %c0_0 = arith.constant 0 : index
    %0 = vector.load %arg1[%c0, %c0_0] : memref<64x128xbf16, #tpu.memory_space<vmem>>, vector<64x128xbf16>
    %1 = arith.extf %0 : vector<64x128xbf16> to vector<64x128xf32>
    %c0_1 = arith.constant 0 : index
    %c0_2 = arith.constant 0 : index
    %2 = vector.load %arg2[%c0_1, %c0_2] : memref<1x128xf32, #tpu.memory_space<vmem>>, vector<1x128xf32>
    %3 = vector.broadcast %2 : vector<1x128xf32> to vector<64x128xf32>
    %4 = arith.mulf %1, %3 : vector<64x128xf32>
    %c0_3 = arith.constant 0 : index
    %c0_4 = arith.constant 0 : index
    %5 = vector.load %arg3[%c0_3, %c0_4] : memref<1x128xf32, #tpu.memory_space<vmem>>, vector<1x128xf32>
    %6 = vector.broadcast %5 : vector<1x128xf32> to vector<64x128xf32>
    %7 = arith.addf %4, %6 : vector<64x128xf32>
    %cst = arith.constant 0.000000e+00 : f32
    %8 = vector.broadcast %cst : f32 to vector<64x128xf32>
    %9 = arith.maximumf %7, %8 : vector<64x128xf32>
    %10 = arith.truncf %9 : vector<64x128xf32> to vector<64x128xbf16>
    %c0_5 = arith.constant 0 : index
    %c0_6 = arith.constant 0 : index
    %11 = vector.load %arg4[%c0_5, %c0_6] : memref<64x128xbf16, #tpu.memory_space<vmem>>, vector<64x128xbf16>
    tpu.vector_store %arg4[%c0_5, %c0_6], %10 {strides = array<i32>} : memref<64x128xbf16, #tpu.memory_space<vmem>>, vector<64x128xbf16>,
    return
  }
  func.func @transform_0(%arg0: i32) -> (i32, i32) {
    %c0_i32 = arith.constant 0 : i32
    %c0_i32_0 = arith.constant 0 : i32
    return %arg0, %c0_i32 : i32, i32
  }
  func.func @transform_1(%arg0: i32) -> (i32, i32) {
    %c0_i32 = arith.constant 0 : i32
    %c0_i32_0 = arith.constant 0 : i32
    %c0_i32_1 = arith.constant 0 : i32
    return %c0_i32, %c0_i32_0 : i32, i32
  }
  func.func @transform_2(%arg0: i32) -> (i32, i32) {
    %c0_i32 = arith.constant 0 : i32
    %c0_i32_0 = arith.constant 0 : i32
    %c0_i32_1 = arith.constant 0 : i32
    return %c0_i32, %c0_i32_0 : i32, i32
  }
  func.func @transform_3(%arg0: i32) -> (i32, i32) {
    %c0_i32 = arith.constant 0 : i32
    %c0_i32_0 = arith.constant 0 : i32
    return %arg0, %c0_i32 : i32, i32
  }
}

module attributes {stable_mosaic.version = 11 : i64} {
  func.func @_mm_stats_kernel(%arg0: i32, %arg1: i32, %arg2: memref<1x128x128xbf16, #tpu.memory_space<vmem>>, %arg3: memref<1x128x128xbf16, #tpu.memory_space<vmem>>, %arg4: memref<1x128x128xbf16, #tpu.memory_space<vmem>>, %arg5: memref<1x8x128xf32, #tpu.memory_space<vmem>>) attributes {dimension_semantics = [#tpu.dimension_semantics<parallel>, #tpu.dimension_semantics<arbitrary>], iteration_bounds = array<i64: 4, 1>, scalar_prefetch = 0 : i64, scratch_operands = 0 : i64, tpu.core_type = #tpu.core_type<tc>, window_params = [{transform_indices = @transform_0, window_bounds = array<i64: 1, 128, 128>}, {transform_indices = @transform_1, window_bounds = array<i64: 1, 128, 128>}, {transform_indices = @transform_2, window_bounds = array<i64: 1, 128, 128>}, {transform_indices = @transform_3, window_bounds = array<i64: 1, 8, 128>}]} {
    %c0_i32 = arith.constant 0 : i32
    %0 = arith.cmpi eq, %arg1, %c0_i32 : i32
    %1 = arith.extui %0 : i1 to i32
    %c0_i32_0 = arith.constant 0 : i32
    %2 = arith.cmpi ne, %1, %c0_i32_0 : i32
    scf.if %2 {
      %cst_18 = arith.constant 0.000000e+00 : f32
      %25 = vector.broadcast %cst_18 : f32 to vector<8x128xf32>
      %c0_19 = arith.constant 0 : index
      %c0_20 = arith.constant 0 : index
      %c0_21 = arith.constant 0 : index
      %26 = vector.load %arg5[%c0_19, %c0_20, %c0_21] : memref<1x8x128xf32, #tpu.memory_space<vmem>>, vector<1x8x128xf32>
      %27 = vector.shape_cast %26 : vector<1x8x128xf32> to vector<8x128xf32>
      %28 = vector.shape_cast %25 : vector<8x128xf32> to vector<1x8x128xf32>
      tpu.vector_store %arg5[%c0_19, %c0_20, %c0_21], %28 {strides = array<i32>} : memref<1x8x128xf32, #tpu.memory_space<vmem>>, vector<1x8x128xf32>,
    } else {
    }
    %c0 = arith.constant 0 : index
    %c0_1 = arith.constant 0 : index
    %c0_2 = arith.constant 0 : index
    %3 = vector.load %arg2[%c0, %c0_1, %c0_2] : memref<1x128x128xbf16, #tpu.memory_space<vmem>>, vector<1x128x128xbf16>
    %4 = vector.shape_cast %3 : vector<1x128x128xbf16> to vector<128x128xbf16>
    %c0_3 = arith.constant 0 : index
    %c0_4 = arith.constant 0 : index
    %c0_5 = arith.constant 0 : index
    %5 = vector.load %arg3[%c0_3, %c0_4, %c0_5] : memref<1x128x128xbf16, #tpu.memory_space<vmem>>, vector<1x128x128xbf16>
    %6 = vector.shape_cast %5 : vector<1x128x128xbf16> to vector<128x128xbf16>
    %cst = arith.constant dense<0.000000e+00> : vector<128x128xf32>
    %7 = tpu.matmul %4, %6, %cst {dimension_numbers = #tpu.dot_dimension_numbers<[1], [0], [0], [1], [0, 0, 1, 1], [], []>} : vector<128x128xbf16>, vector<128x128xbf16>, vector<128x128xf32> -> vector<128x128xf32>
    %8 = arith.truncf %7 : vector<128x128xf32> to vector<128x128xbf16>
    %c0_6 = arith.constant 0 : index
    %c0_7 = arith.constant 0 : index
    %c0_8 = arith.constant 0 : index
    %9 = vector.load %arg4[%c0_6, %c0_7, %c0_8] : memref<1x128x128xbf16, #tpu.memory_space<vmem>>, vector<1x128x128xbf16>
    %10 = vector.shape_cast %9 : vector<1x128x128xbf16> to vector<128x128xbf16>
    %11 = vector.shape_cast %8 : vector<128x128xbf16> to vector<1x128x128xbf16>
    tpu.vector_store %arg4[%c0_6, %c0_7, %c0_8], %11 {strides = array<i32>} : memref<1x128x128xbf16, #tpu.memory_space<vmem>>, vector<1x128x128xbf16>,
    %cst_9 = arith.constant dense<0.000000e+00> : vector<128xf32>
    %12 = vector.multi_reduction <add>, %7, %cst_9 [0] : vector<128x128xf32> to vector<128xf32>
    %13 = vector.shape_cast %12 : vector<128xf32> to vector<1x128xf32>
    %14 = arith.mulf %7, %7 : vector<128x128xf32>
    %cst_10 = arith.constant dense<0.000000e+00> : vector<128xf32>
    %15 = vector.multi_reduction <add>, %14, %cst_10 [0] : vector<128x128xf32> to vector<128xf32>
    %16 = vector.shape_cast %15 : vector<128xf32> to vector<1x128xf32>
    %cst_11 = arith.constant 0.000000e+00 : f32
    %17 = vector.broadcast %cst_11 : f32 to vector<6x128xf32>
    %18 = tpu.concatenate %13, %16, %17 in 0 : vector<1x128xf32>, vector<1x128xf32>, vector<6x128xf32> -> vector<8x128xf32>
    %c0_12 = arith.constant 0 : index
    %c0_13 = arith.constant 0 : index
    %c0_14 = arith.constant 0 : index
    %19 = vector.load %arg5[%c0_12, %c0_13, %c0_14] : memref<1x8x128xf32, #tpu.memory_space<vmem>>, vector<1x8x128xf32>
    %20 = vector.shape_cast %19 : vector<1x8x128xf32> to vector<8x128xf32>
    %21 = arith.addf %20, %18 : vector<8x128xf32>
    %c0_15 = arith.constant 0 : index
    %c0_16 = arith.constant 0 : index
    %c0_17 = arith.constant 0 : index
    %22 = vector.load %arg5[%c0_15, %c0_16, %c0_17] : memref<1x8x128xf32, #tpu.memory_space<vmem>>, vector<1x8x128xf32>
    %23 = vector.shape_cast %22 : vector<1x8x128xf32> to vector<8x128xf32>
    %24 = vector.shape_cast %21 : vector<8x128xf32> to vector<1x8x128xf32>
    tpu.vector_store %arg5[%c0_15, %c0_16, %c0_17], %24 {strides = array<i32>} : memref<1x8x128xf32, #tpu.memory_space<vmem>>, vector<1x8x128xf32>,
    return
  }
  func.func @transform_0(%arg0: i32, %arg1: i32) -> (i32, i32, i32) {
    %c0_i32 = arith.constant 0 : i32
    %c0_i32_0 = arith.constant 0 : i32
    return %arg0, %arg1, %c0_i32 : i32, i32, i32
  }
  func.func @transform_1(%arg0: i32, %arg1: i32) -> (i32, i32, i32) {
    %c0_i32 = arith.constant 0 : i32
    %c0_i32_0 = arith.constant 0 : i32
    %c0_i32_1 = arith.constant 0 : i32
    return %arg0, %c0_i32, %c0_i32_0 : i32, i32, i32
  }
  func.func @transform_2(%arg0: i32, %arg1: i32) -> (i32, i32, i32) {
    %c0_i32 = arith.constant 0 : i32
    %c0_i32_0 = arith.constant 0 : i32
    return %arg0, %arg1, %c0_i32 : i32, i32, i32
  }
  func.func @transform_3(%arg0: i32, %arg1: i32) -> (i32, i32, i32) {
    %c0_i32 = arith.constant 0 : i32
    %c0_i32_0 = arith.constant 0 : i32
    %c0_i32_1 = arith.constant 0 : i32
    return %arg0, %c0_i32, %c0_i32_0 : i32, i32, i32
  }
}

module attributes {stable_mosaic.version = 11 : i64} {
  func.func @_bn_relu_kernel(%arg0: i32, %arg1: memref<256x128xbf16, #tpu.memory_space<vmem>>, %arg2: memref<1x128xf32, #tpu.memory_space<vmem>>, %arg3: memref<1x128xf32, #tpu.memory_space<vmem>>, %arg4: memref<256x128xbf16, #tpu.memory_space<vmem>>) attributes {dimension_semantics = [#tpu.dimension_semantics<parallel>], iteration_bounds = array<i64: 2>, scalar_prefetch = 0 : i64, scratch_operands = 0 : i64, tpu.core_type = #tpu.core_type<tc>, window_params = [{transform_indices = @transform_0, window_bounds = array<i64: 256, 128>}, {pipeline_mode = #tpu.pipeline_mode<synchronous>, transform_indices = @transform_1, window_bounds = array<i64: 1, 128>}, {pipeline_mode = #tpu.pipeline_mode<synchronous>, transform_indices = @transform_2, window_bounds = array<i64: 1, 128>}, {transform_indices = @transform_3, window_bounds = array<i64: 256, 128>}]} {
    %c0 = arith.constant 0 : index
    %c0_0 = arith.constant 0 : index
    %0 = vector.load %arg1[%c0, %c0_0] : memref<256x128xbf16, #tpu.memory_space<vmem>>, vector<256x128xbf16>
    %1 = arith.extf %0 : vector<256x128xbf16> to vector<256x128xf32>
    %c0_1 = arith.constant 0 : index
    %c0_2 = arith.constant 0 : index
    %2 = vector.load %arg2[%c0_1, %c0_2] : memref<1x128xf32, #tpu.memory_space<vmem>>, vector<1x128xf32>
    %3 = vector.broadcast %2 : vector<1x128xf32> to vector<256x128xf32>
    %4 = arith.mulf %1, %3 : vector<256x128xf32>
    %c0_3 = arith.constant 0 : index
    %c0_4 = arith.constant 0 : index
    %5 = vector.load %arg3[%c0_3, %c0_4] : memref<1x128xf32, #tpu.memory_space<vmem>>, vector<1x128xf32>
    %6 = vector.broadcast %5 : vector<1x128xf32> to vector<256x128xf32>
    %7 = arith.addf %4, %6 : vector<256x128xf32>
    %cst = arith.constant 0.000000e+00 : f32
    %8 = vector.broadcast %cst : f32 to vector<256x128xf32>
    %9 = arith.maximumf %7, %8 : vector<256x128xf32>
    %10 = arith.truncf %9 : vector<256x128xf32> to vector<256x128xbf16>
    %c0_5 = arith.constant 0 : index
    %c0_6 = arith.constant 0 : index
    %11 = vector.load %arg4[%c0_5, %c0_6] : memref<256x128xbf16, #tpu.memory_space<vmem>>, vector<256x128xbf16>
    tpu.vector_store %arg4[%c0_5, %c0_6], %10 {strides = array<i32>} : memref<256x128xbf16, #tpu.memory_space<vmem>>, vector<256x128xbf16>,
    return
  }
  func.func @transform_0(%arg0: i32) -> (i32, i32) {
    %c0_i32 = arith.constant 0 : i32
    %c0_i32_0 = arith.constant 0 : i32
    return %arg0, %c0_i32 : i32, i32
  }
  func.func @transform_1(%arg0: i32) -> (i32, i32) {
    %c0_i32 = arith.constant 0 : i32
    %c0_i32_0 = arith.constant 0 : i32
    %c0_i32_1 = arith.constant 0 : i32
    return %c0_i32, %c0_i32_0 : i32, i32
  }
  func.func @transform_2(%arg0: i32) -> (i32, i32) {
    %c0_i32 = arith.constant 0 : i32
    %c0_i32_0 = arith.constant 0 : i32
    %c0_i32_1 = arith.constant 0 : i32
    return %c0_i32, %c0_i32_0 : i32, i32
  }
  func.func @transform_3(%arg0: i32) -> (i32, i32) {
    %c0_i32 = arith.constant 0 : i32
    %c0_i32_0 = arith.constant 0 : i32
    return %arg0, %c0_i32 : i32, i32
  }
}

module attributes {stable_mosaic.version = 11 : i64} {
  func.func @_mm_stats_kernel(%arg0: i32, %arg1: i32, %arg2: memref<1x512x64xbf16, #tpu.memory_space<vmem>>, %arg3: memref<1x64x128xbf16, #tpu.memory_space<vmem>>, %arg4: memref<1x512x128xbf16, #tpu.memory_space<vmem>>, %arg5: memref<1x8x128xf32, #tpu.memory_space<vmem>>) attributes {dimension_semantics = [#tpu.dimension_semantics<parallel>, #tpu.dimension_semantics<arbitrary>], iteration_bounds = array<i64: 4, 1>, scalar_prefetch = 0 : i64, scratch_operands = 0 : i64, tpu.core_type = #tpu.core_type<tc>, window_params = [{transform_indices = @transform_0, window_bounds = array<i64: 1, 512, 64>}, {transform_indices = @transform_1, window_bounds = array<i64: 1, 64, 128>}, {transform_indices = @transform_2, window_bounds = array<i64: 1, 512, 128>}, {transform_indices = @transform_3, window_bounds = array<i64: 1, 8, 128>}]} {
    %c0_i32 = arith.constant 0 : i32
    %0 = arith.cmpi eq, %arg1, %c0_i32 : i32
    %1 = arith.extui %0 : i1 to i32
    %c0_i32_0 = arith.constant 0 : i32
    %2 = arith.cmpi ne, %1, %c0_i32_0 : i32
    scf.if %2 {
      %cst_18 = arith.constant 0.000000e+00 : f32
      %25 = vector.broadcast %cst_18 : f32 to vector<8x128xf32>
      %c0_19 = arith.constant 0 : index
      %c0_20 = arith.constant 0 : index
      %c0_21 = arith.constant 0 : index
      %26 = vector.load %arg5[%c0_19, %c0_20, %c0_21] : memref<1x8x128xf32, #tpu.memory_space<vmem>>, vector<1x8x128xf32>
      %27 = vector.shape_cast %26 : vector<1x8x128xf32> to vector<8x128xf32>
      %28 = vector.shape_cast %25 : vector<8x128xf32> to vector<1x8x128xf32>
      tpu.vector_store %arg5[%c0_19, %c0_20, %c0_21], %28 {strides = array<i32>} : memref<1x8x128xf32, #tpu.memory_space<vmem>>, vector<1x8x128xf32>,
    } else {
    }
    %c0 = arith.constant 0 : index
    %c0_1 = arith.constant 0 : index
    %c0_2 = arith.constant 0 : index
    %3 = vector.load %arg2[%c0, %c0_1, %c0_2] : memref<1x512x64xbf16, #tpu.memory_space<vmem>>, vector<1x512x64xbf16>
    %4 = vector.shape_cast %3 : vector<1x512x64xbf16> to vector<512x64xbf16>
    %c0_3 = arith.constant 0 : index
    %c0_4 = arith.constant 0 : index
    %c0_5 = arith.constant 0 : index
    %5 = vector.load %arg3[%c0_3, %c0_4, %c0_5] : memref<1x64x128xbf16, #tpu.memory_space<vmem>>, vector<1x64x128xbf16>
    %6 = vector.shape_cast %5 : vector<1x64x128xbf16> to vector<64x128xbf16>
    %cst = arith.constant dense<0.000000e+00> : vector<512x128xf32>
    %7 = tpu.matmul %4, %6, %cst {dimension_numbers = #tpu.dot_dimension_numbers<[1], [0], [0], [1], [0, 0, 1, 1], [], []>} : vector<512x64xbf16>, vector<64x128xbf16>, vector<512x128xf32> -> vector<512x128xf32>
    %8 = arith.truncf %7 : vector<512x128xf32> to vector<512x128xbf16>
    %c0_6 = arith.constant 0 : index
    %c0_7 = arith.constant 0 : index
    %c0_8 = arith.constant 0 : index
    %9 = vector.load %arg4[%c0_6, %c0_7, %c0_8] : memref<1x512x128xbf16, #tpu.memory_space<vmem>>, vector<1x512x128xbf16>
    %10 = vector.shape_cast %9 : vector<1x512x128xbf16> to vector<512x128xbf16>
    %11 = vector.shape_cast %8 : vector<512x128xbf16> to vector<1x512x128xbf16>
    tpu.vector_store %arg4[%c0_6, %c0_7, %c0_8], %11 {strides = array<i32>} : memref<1x512x128xbf16, #tpu.memory_space<vmem>>, vector<1x512x128xbf16>,
    %cst_9 = arith.constant dense<0.000000e+00> : vector<128xf32>
    %12 = vector.multi_reduction <add>, %7, %cst_9 [0] : vector<512x128xf32> to vector<128xf32>
    %13 = vector.shape_cast %12 : vector<128xf32> to vector<1x128xf32>
    %14 = arith.mulf %7, %7 : vector<512x128xf32>
    %cst_10 = arith.constant dense<0.000000e+00> : vector<128xf32>
    %15 = vector.multi_reduction <add>, %14, %cst_10 [0] : vector<512x128xf32> to vector<128xf32>
    %16 = vector.shape_cast %15 : vector<128xf32> to vector<1x128xf32>
    %cst_11 = arith.constant 0.000000e+00 : f32
    %17 = vector.broadcast %cst_11 : f32 to vector<6x128xf32>
    %18 = tpu.concatenate %13, %16, %17 in 0 : vector<1x128xf32>, vector<1x128xf32>, vector<6x128xf32> -> vector<8x128xf32>
    %c0_12 = arith.constant 0 : index
    %c0_13 = arith.constant 0 : index
    %c0_14 = arith.constant 0 : index
    %19 = vector.load %arg5[%c0_12, %c0_13, %c0_14] : memref<1x8x128xf32, #tpu.memory_space<vmem>>, vector<1x8x128xf32>
    %20 = vector.shape_cast %19 : vector<1x8x128xf32> to vector<8x128xf32>
    %21 = arith.addf %20, %18 : vector<8x128xf32>
    %c0_15 = arith.constant 0 : index
    %c0_16 = arith.constant 0 : index
    %c0_17 = arith.constant 0 : index
    %22 = vector.load %arg5[%c0_15, %c0_16, %c0_17] : memref<1x8x128xf32, #tpu.memory_space<vmem>>, vector<1x8x128xf32>
    %23 = vector.shape_cast %22 : vector<1x8x128xf32> to vector<8x128xf32>
    %24 = vector.shape_cast %21 : vector<8x128xf32> to vector<1x8x128xf32>
    tpu.vector_store %arg5[%c0_15, %c0_16, %c0_17], %24 {strides = array<i32>} : memref<1x8x128xf32, #tpu.memory_space<vmem>>, vector<1x8x128xf32>,
    return
  }
  func.func @transform_0(%arg0: i32, %arg1: i32) -> (i32, i32, i32) {
    %c0_i32 = arith.constant 0 : i32
    %c0_i32_0 = arith.constant 0 : i32
    return %arg0, %arg1, %c0_i32 : i32, i32, i32
  }
  func.func @transform_1(%arg0: i32, %arg1: i32) -> (i32, i32, i32) {
    %c0_i32 = arith.constant 0 : i32
    %c0_i32_0 = arith.constant 0 : i32
    %c0_i32_1 = arith.constant 0 : i32
    return %arg0, %c0_i32, %c0_i32_0 : i32, i32, i32
  }
  func.func @transform_2(%arg0: i32, %arg1: i32) -> (i32, i32, i32) {
    %c0_i32 = arith.constant 0 : i32
    %c0_i32_0 = arith.constant 0 : i32
    return %arg0, %arg1, %c0_i32 : i32, i32, i32
  }
  func.func @transform_3(%arg0: i32, %arg1: i32) -> (i32, i32, i32) {
    %c0_i32 = arith.constant 0 : i32
    %c0_i32_0 = arith.constant 0 : i32
    %c0_i32_1 = arith.constant 0 : i32
    return %arg0, %c0_i32, %c0_i32_0 : i32, i32, i32
  }
}

module attributes {stable_mosaic.version = 11 : i64} {
  func.func @_bn_relu_kernel(%arg0: i32, %arg1: memref<1024x128xbf16, #tpu.memory_space<vmem>>, %arg2: memref<1x128xf32, #tpu.memory_space<vmem>>, %arg3: memref<1x128xf32, #tpu.memory_space<vmem>>, %arg4: memref<1024x128xbf16, #tpu.memory_space<vmem>>) attributes {dimension_semantics = [#tpu.dimension_semantics<parallel>], iteration_bounds = array<i64: 2>, scalar_prefetch = 0 : i64, scratch_operands = 0 : i64, tpu.core_type = #tpu.core_type<tc>, window_params = [{transform_indices = @transform_0, window_bounds = array<i64: 1024, 128>}, {pipeline_mode = #tpu.pipeline_mode<synchronous>, transform_indices = @transform_1, window_bounds = array<i64: 1, 128>}, {pipeline_mode = #tpu.pipeline_mode<synchronous>, transform_indices = @transform_2, window_bounds = array<i64: 1, 128>}, {transform_indices = @transform_3, window_bounds = array<i64: 1024, 128>}]} {
    %c0 = arith.constant 0 : index
    %c0_0 = arith.constant 0 : index
    %0 = vector.load %arg1[%c0, %c0_0] : memref<1024x128xbf16, #tpu.memory_space<vmem>>, vector<1024x128xbf16>
    %1 = arith.extf %0 : vector<1024x128xbf16> to vector<1024x128xf32>
    %c0_1 = arith.constant 0 : index
    %c0_2 = arith.constant 0 : index
    %2 = vector.load %arg2[%c0_1, %c0_2] : memref<1x128xf32, #tpu.memory_space<vmem>>, vector<1x128xf32>
    %3 = vector.broadcast %2 : vector<1x128xf32> to vector<1024x128xf32>
    %4 = arith.mulf %1, %3 : vector<1024x128xf32>
    %c0_3 = arith.constant 0 : index
    %c0_4 = arith.constant 0 : index
    %5 = vector.load %arg3[%c0_3, %c0_4] : memref<1x128xf32, #tpu.memory_space<vmem>>, vector<1x128xf32>
    %6 = vector.broadcast %5 : vector<1x128xf32> to vector<1024x128xf32>
    %7 = arith.addf %4, %6 : vector<1024x128xf32>
    %cst = arith.constant 0.000000e+00 : f32
    %8 = vector.broadcast %cst : f32 to vector<1024x128xf32>
    %9 = arith.maximumf %7, %8 : vector<1024x128xf32>
    %10 = arith.truncf %9 : vector<1024x128xf32> to vector<1024x128xbf16>
    %c0_5 = arith.constant 0 : index
    %c0_6 = arith.constant 0 : index
    %11 = vector.load %arg4[%c0_5, %c0_6] : memref<1024x128xbf16, #tpu.memory_space<vmem>>, vector<1024x128xbf16>
    tpu.vector_store %arg4[%c0_5, %c0_6], %10 {strides = array<i32>} : memref<1024x128xbf16, #tpu.memory_space<vmem>>, vector<1024x128xbf16>,
    return
  }
  func.func @transform_0(%arg0: i32) -> (i32, i32) {
    %c0_i32 = arith.constant 0 : i32
    %c0_i32_0 = arith.constant 0 : i32
    return %arg0, %c0_i32 : i32, i32
  }
  func.func @transform_1(%arg0: i32) -> (i32, i32) {
    %c0_i32 = arith.constant 0 : i32
    %c0_i32_0 = arith.constant 0 : i32
    %c0_i32_1 = arith.constant 0 : i32
    return %c0_i32, %c0_i32_0 : i32, i32
  }
  func.func @transform_2(%arg0: i32) -> (i32, i32) {
    %c0_i32 = arith.constant 0 : i32
    %c0_i32_0 = arith.constant 0 : i32
    %c0_i32_1 = arith.constant 0 : i32
    return %c0_i32, %c0_i32_0 : i32, i32
  }
  func.func @transform_3(%arg0: i32) -> (i32, i32) {
    %c0_i32 = arith.constant 0 : i32
    %c0_i32_0 = arith.constant 0 : i32
    return %arg0, %c0_i32 : i32, i32
  }
}

module attributes {stable_mosaic.version = 11 : i64} {
  func.func @_mm_sigmoid_kernel(%arg0: i32, %arg1: i32, %arg2: memref<1x512x8xbf16, #tpu.memory_space<vmem>>, %arg3: memref<1x8x128xbf16, #tpu.memory_space<vmem>>, %arg4: memref<1x512x128xf32, #tpu.memory_space<vmem>>) attributes {dimension_semantics = [#tpu.dimension_semantics<parallel>, #tpu.dimension_semantics<parallel>], iteration_bounds = array<i64: 1, 4>, scalar_prefetch = 0 : i64, scratch_operands = 0 : i64, tpu.core_type = #tpu.core_type<tc>, window_params = [{transform_indices = @transform_0, window_bounds = array<i64: 1, 512, 8>}, {transform_indices = @transform_1, window_bounds = array<i64: 1, 8, 128>}, {transform_indices = @transform_2, window_bounds = array<i64: 1, 512, 128>}]} {
    %c0 = arith.constant 0 : index
    %c0_0 = arith.constant 0 : index
    %c0_1 = arith.constant 0 : index
    %0 = vector.load %arg2[%c0, %c0_0, %c0_1] : memref<1x512x8xbf16, #tpu.memory_space<vmem>>, vector<1x512x8xbf16>
    %1 = vector.shape_cast %0 : vector<1x512x8xbf16> to vector<512x8xbf16>
    %c0_2 = arith.constant 0 : index
    %c0_3 = arith.constant 0 : index
    %c0_4 = arith.constant 0 : index
    %2 = vector.load %arg3[%c0_2, %c0_3, %c0_4] : memref<1x8x128xbf16, #tpu.memory_space<vmem>>, vector<1x8x128xbf16>
    %3 = vector.shape_cast %2 : vector<1x8x128xbf16> to vector<8x128xbf16>
    %cst = arith.constant dense<0.000000e+00> : vector<512x128xf32>
    %4 = tpu.matmul %1, %3, %cst {dimension_numbers = #tpu.dot_dimension_numbers<[1], [0], [0], [1], [0, 0, 1, 1], [], []>} : vector<512x8xbf16>, vector<8x128xbf16>, vector<512x128xf32> -> vector<512x128xf32>
    %cst_5 = arith.constant 0.000000e+00 : f32
    %5 = vector.broadcast %cst_5 : f32 to vector<512x128xf32>
    %6 = arith.subf %5, %4 : vector<512x128xf32>
    %7 = math.exp %6 : vector<512x128xf32>
    %cst_6 = arith.constant 1.000000e+00 : f32
    %8 = vector.broadcast %cst_6 : f32 to vector<512x128xf32>
    %9 = arith.addf %8, %7 : vector<512x128xf32>
    %10 = tpu.reciprocal %9 {approx = true} : vector<512x128xf32> -> vector<512x128xf32>
    %c0_7 = arith.constant 0 : index
    %c0_8 = arith.constant 0 : index
    %c0_9 = arith.constant 0 : index
    %11 = vector.load %arg4[%c0_7, %c0_8, %c0_9] : memref<1x512x128xf32, #tpu.memory_space<vmem>>, vector<1x512x128xf32>
    %12 = vector.shape_cast %11 : vector<1x512x128xf32> to vector<512x128xf32>
    %13 = vector.shape_cast %10 : vector<512x128xf32> to vector<1x512x128xf32>
    tpu.vector_store %arg4[%c0_7, %c0_8, %c0_9], %13 {strides = array<i32>} : memref<1x512x128xf32, #tpu.memory_space<vmem>>, vector<1x512x128xf32>,
    return
  }
  func.func @transform_0(%arg0: i32, %arg1: i32) -> (i32, i32, i32) {
    %c0_i32 = arith.constant 0 : i32
    %c0_i32_0 = arith.constant 0 : i32
    return %arg0, %arg1, %c0_i32 : i32, i32, i32
  }
  func.func @transform_1(%arg0: i32, %arg1: i32) -> (i32, i32, i32) {
    %c0_i32 = arith.constant 0 : i32
    %c0_i32_0 = arith.constant 0 : i32
    %c0_i32_1 = arith.constant 0 : i32
    return %arg0, %c0_i32, %c0_i32_0 : i32, i32, i32
  }
  func.func @transform_2(%arg0: i32, %arg1: i32) -> (i32, i32, i32) {
    %c0_i32 = arith.constant 0 : i32
    %c0_i32_0 = arith.constant 0 : i32
    return %arg0, %arg1, %c0_i32 : i32, i32, i32
  }
}

</mosaic_0001>

<bundles_post_ra>
// kernel: _lambda_.9
= control target key start
LH: loop header
LB: loop body
LE: loop exit
PB: predicated region body
PF: predicated region fallthrough
CT: control target
= control target key end

     0   :  { %9 = vsyncpa [#allocation3], 0  ;;  %s672_s0 = inlined_call_operand.vmem [shape: bf16[1,2,8], index: 0, kind: input, shape index: {}]   ;;  %s673_s1 = inlined_call_operand.hbm [shape: bf16[16,8,128], index: 1, kind: input, shape index: {}]   ;;  %s674_s2 = inlined_call_operand.vmem [shape: bf16[16,2,128], index: 2, kind: output, shape index: {0}]   ;;  %s675_s3 = inlined_call_operand.vmem [shape: f32[16,8,128], index: 3, kind: output, shape index: {1}]  }
   0x1   :  { %11 = vsyncpa [#allocation3 + $0x1], 0  ;;  %s575_s12 = smov 0   ;;  %s577_s13 = smov 0  }
   0x2   :  { %s579_s14 = smov 0   ;;  %s581_s15 = smov 0  }
   0x3   :  { %s583_s16 = smov 0   ;;  %s585_s17 = smov 0  }
   0x4 LB: > { %s404_s18 = sadd.s32 4294967295, %s553_s17   ;;  %s29_s19 = sadd.s32 1, %s549_s16  ;;  %s553_s17 = sphi %s585_s17, %s17_s17   ;;  %s549_s16 = sphi %s583_s16, %s682_s16   ;;  %s545_s15 = sphi %s581_s15, %s681_s15   ;;  %s541_s14 = sphi %s579_s14, %s680_s14   ;;  %s537_s13 = sphi %s577_s13, %s679_s13   ;;  %s533_s12 = sphi %s575_s12, %s678_s12  }
   0x5   : > { %p31_p0 = scmp.ge.s32.totalorder %s29_s19, 16  ;;  %s62_s20 = sadd.s32 1, %s541_s14 }
   0x6   : > { %p69_p1 = scmp.ne.s32.totalorder %s541_s14, %s537_s13  ;;  %p70_p2 = scmp.eq.s32.totalorder %s553_s17, 0 }
   0x7   : > { %s684_s19 = smov (%p31_p0, %s29_s19), 0  ;;  %p75_p4 = scmp.ne.s32.totalorder %s537_s13, %s533_s12 }
   0x8   : > { %p611_p3 = por %p70_p2, %p69_p1  ;;  %s59_s22 = ssub.s32 %s549_s16, %s684_s19 }
   0x9   : > { %p76_p5 = scmp.eq.s32.totalorder %s404_s18, 0  ;;  %p60_p6 = scmp.eq.s32.totalorder %s59_s22, 0 }
   0xa   : > { %p423_p8 = scmp.lt.s32.totalorder %s553_s17, 16  ;;  %s159_s25 = sand.u32 1, %s541_s14  }
   0xb   : > { %p618_p7 = por %p76_p5, %p75_p4  ;;  %s410_s26 = sshll.u32 %s549_s16, 2 }
   0xc   : > { %s624_s24 = scalar_select %p60_p6, %s541_s14, %s62_s20  }
   0xd   : > { %s409_s27 = sshll.u32 %s159_s25, 2  ;;  %s167_s30 = scalar_lea.hbm %s673_s1, %s410_s26 }
   0xe   : > { %s169_s4 = sshll.u32 %s167_s30, 4  ;;  %s163_s5 = scalar_lea.vmem [#allocation2], %s409_s27  ;;  %s170_s4 = int_to_ptr.hbm [resolvable:$true] %s169_s4 }
   0xf   : > { %s171_s6 = sshll.u32 %s163_s5, 4  ;;  %p420_p9 = pnand %p423_p8, %p611_p3  ;;  %s172_s6 = int_to_ptr.vmem [resolvable:$true] %s171_s6 }
  0x10   : > { %p411_p10 = scmp.ge.s32.totalorder %s553_s17, 1  ;;  %p176_p11 = scmp.lt.s32.totalorder %s553_s17, 17 }
  0x11   : > { %s160_s7 = scalar_lea.sflag [#allocation3], %s159_s25 }
  0x12   : > { %422 = dma.hbm_to_vmem [thread:$0]  (!%p420_p9), %s170_s4, 64, %s172_s6, %s160_s7  }
  0x13   : > { %p177_p12 = pnand %p411_p10, %p176_p11 }
  0x14   : > { %s182_s8 = sand.u32 (!%p177_p12), 1, %s537_s13  }
  0x15   : > { %180 = sbr.rel (%p177_p12) target bundleno = 176 (0xb0), region = 28  ;;  %s412_s9 = sshll.u32 (!%p177_p12), %s182_s8, 2 }
  0x16   : > { %s183_s10 = scalar_lea.sflag (!%p177_p12), [#allocation3], %s182_s8  ;;  %s186_s11 = scalar_lea.vmem (!%p177_p12), [#allocation2], %s412_s9 }
  0x1a   : > { %528 = dma.done.wait (%p618_p7), %s183_s10, 64  }
  0x1b   : > { %530 = vsyncadd (%p618_p7), %s183_s10, 4294967232  ;;  %vm243_vm0 = vcmask 1043456   ;;  %v238_v0 = vld [vmem:[%s186_s11] sm:$0xf]  ;;  %vm239_vm1 = vcmask 64512   ;;  %p221_p13 = scmp.lt.s32.totalorder %s545_s15, 15 }
  0x1c   : > { %v245_v1 = vsel %vm243_vm0, %v238_v0, 0  ;;  %v237_v2 = vld [vmem:[%s672_s0] sm:$0x1]  ;;  %vm262_vm2 = vcmask 1041408   ;;  %vm278_vm3 = vcmask 1040384  }
  0x1d   : > { %254 = vmatpush.bf16.msra.mxu0 %v245_v1  ;;  %s686_s15 = smov (!%p221_p13, %s545_s15), 15 }
  0x1e   : > { %s226_s22 = scalar_lea.vmem %s674_s2, %s686_s15  ;;  %s413_s23 = sshll.u32 %s686_s15, 3 }
  0x1f   : > { %s230_s27 = scalar_lea.vmem %s675_s3, %s413_s23 }
  0x20   : > { %414 = vmatmul.msk.bf16.vlgmr.msra.gmra.mxu0 %vm239_vm1, %v237_v2 }
  0x9d   : > { %v256_v3 = vpop.f32.mrf.mxu0 }
  0x9e   : > { %v260_v4 = vpack.c.bf16 %v256_v3, %v256_v3  ;;  %v263_v5 = vsel %vm262_vm2, %v256_v3, 0.0  ;;  %v270_v6 = vmul.f32 %v256_v3, %v256_v3 }
  0x9f   : > { %v264_v7 = vrot.slane %v263_v5, 4 }
  0xa0   : > { %261 = vst [vmem:[%s226_s22] sm:$0x1] %v260_v4  ;;  %v271_v8 = vsel %vm262_vm2, %v270_v6, 0.0 }
  0xa1   : > { %v265_v9 = vadd.f32 %v264_v7, %v263_v5  ;;  %v272_v10 = vrot.slane %v271_v8, 4 }
  0xa3   : > { %v266_v11 = vrot.slane %v265_v9, 2  ;;  %v273_v12 = vadd.f32 %v272_v10, %v271_v8 }
  0xa5   : > { %v267_v13 = vadd.f32 %v266_v11, %v265_v9  ;;  %v274_v14 = vrot.slane %v273_v12, 2  ;;  %v258_v15 = vpop.f32.mrf.mxu0 }
  0xa7   : > { %v268_v16 = vrot.slane %v267_v13, 1  ;;  %v275_v17 = vadd.f32 %v274_v14, %v273_v12 }
  0xa9   : > { %v276_v18 = vrot.slane %v275_v17, 1  ;;  %v269_v19 = vadd.f32 %v268_v16, %v267_v13 }
  0xab   : > { %v277_v20 = vadd.f32 %v276_v18, %v275_v17 }
  0xad   : > { %v279_v21 = vsel %vm278_vm3, %v269_v19, %v277_v20 }
  0xae   : > { %v280_v22 = vsel %vm262_vm2, %v279_v21, 0.0 }
  0xaf   : > { %283 = vst [vmem:[%s230_s27] sm:$0xff] %v280_v22 }
  0xb0 PF: > { %s17_s17 = sadd.s32 1, %s553_s17   ;;  %s678_s12 = smov %s537_s13 }
  0xb1   : > { %p14_p0 = scmp.ge.s32.totalorder %s17_s17, 18   ;;  %s679_s13 = smov %s541_s14 }
  0xb2   : > { %s680_s14 = smov %s624_s24  ;;  %s681_s15 = smov %s549_s16 }
  0xb3   : > { %s682_s16 = smov %s684_s19  ;;  %16 = sbr.rel (!%p14_p0) target bundleno = 4 (0x4), region = 87 }
  0xb8   :  { %321 = vsyncpa [#allocation3], 1 }
  0xb9   :  { %323 = vsyncpa [#allocation3 + $0x1], 1 }

// kernel: _lambda_.10
= control target key start
LH: loop header
LB: loop body
LE: loop exit
PB: predicated region body
PF: predicated region fallthrough
CT: control target
= control target key end

     0   :  { %s310_s12 = smov 0   ;;  %s327_s0 = inlined_call_operand.vmem [shape: bf16[32,128], index: 0, kind: input, shape index: {}]   ;;  %s328_s1 = inlined_call_operand.vmem [shape: f32[1,128], index: 1, kind: input, shape index: {}]   ;;  %s329_s2 = inlined_call_operand.vmem [shape: f32[1,128], index: 2, kind: input, shape index: {}]   ;;  %s330_s3 = inlined_call_operand.vmem [shape: bf16[32,128], index: 3, kind: output, shape index: {}]  }
   0x1 LB: > { %s252_s13 = sadd.s32 4294967295, %s288_s12   ;;  %p256_p0 = scmp.ge.s32.totalorder %s288_s12, 1  ;;  %s288_s12 = sphi %s310_s12, %s13_s12  }
   0x2   : > { %p138_p1 = scmp.lt.s32.totalorder %s288_s12, 3 }
   0x4   : > { %p139_p2 = pnand %p256_p0, %p138_p1 }
   0x5   : > { %s257_s14 = sshll.u32 (!%p139_p2), %s252_s13, 1 }
   0x6   : > { %142 = sbr.rel (%p139_p2) target bundleno = 26 (0x1a), region = 32  ;;  %p163_p3 = scmp.lt.s32.totalorder (!%p139_p2), %s257_s14, 3 }
   0xb   : > { %s332_s14 = smov (!%p163_p3, %s257_s14), 3  ;;  %v280_v0 = vld [vmem:[%s328_s1] ss:$0 sm:$0xff] }
   0xc   : > { %s258_s15 = sshll.u32 %s332_s14, 2  ;;  %v281_v4 = vld [vmem:[%s329_s2] ss:$0 sm:$0xff] }
   0xd   : > { %s166_s18 = scalar_lea.vmem %s327_s0, %s258_s15  ;;  %s172_s25 = scalar_lea.vmem %s330_s3, %s258_s15 }
   0xe   : > { %v264_v1 = vld [vmem:[%s166_s18] sm:$0xff]  }
   0xf   : > { %v265_v2 = vunpack.c.l.bf16 %v264_v1  ;;  %v266_v3 = vunpack.c.h.bf16 %v264_v1 }
  0x11   : > { %v182_v5 = vmul.f32 %v280_v0, %v265_v2  ;;  %v183_v6 = vmul.f32 %v280_v0, %v266_v3 }
  0x13   : > { %v188_v7 = vadd.f32 %v281_v4, %v182_v5  ;;  %v189_v8 = vadd.f32 %v281_v4, %v183_v6 }
  0x15   : > { %v190_v9 = vmax.f32 %v188_v7, 0.0  ;;  %v191_v10 = vmax.f32 %v189_v8, 0.0 }
  0x17   : > { %v270_v11 = vpack.c.bf16 %v191_v10, %v190_v9 }
  0x19   : > { %271 = vst [vmem:[%s172_s25] sm:$0xff] %v270_v11  }
  0x1a PF: > { %s13_s12 = sadd.s32 1, %s288_s12  }
  0x1b   : > { %p10_p4 = scmp.ge.s32.totalorder %s13_s12, 4  }
  0x1d   :  { %12 = sbr.rel (!%p10_p4) target bundleno = 1 (0x1), region = 62 }

// kernel: _lambda_.11
= control target key start
LH: loop header
LB: loop body
LE: loop exit
PB: predicated region body
PF: predicated region fallthrough
CT: control target
= control target key end

     0   :  { %s822_s12 = smov 0   ;;  %s824_s13 = smov 0   ;;  %s885_s0 = inlined_call_operand.vmem [shape: bf16[4,32,256], index: 0, kind: input, shape index: {}]   ;;  %s886_s1 = inlined_call_operand.vmem [shape: bf16[4,256,128], index: 1, kind: input, shape index: {}]   ;;  %s887_s2 = inlined_call_operand.vmem [shape: bf16[4,32,128], index: 2, kind: output, shape index: {0}]   ;;  %s888_s3 = inlined_call_operand.vmem [shape: f32[4,8,128], index: 3, kind: output, shape index: {1}]  }
   0x1   :  { %s826_s14 = smov 0  }
   0x2 LB: > { %s26_s15 = sadd.s32 1, %s796_s13  ;;  %p613_p0 = scmp.ge.s32.totalorder %s800_s14, 1  ;;  %s800_s14 = sphi %s826_s14, %s14_s14   ;;  %s796_s13 = sphi %s824_s13, %s890_s13   ;;  %s792_s12 = sphi %s822_s12, %s889_s12  }
   0x3   : > { %p28_p1 = scmp.ge.s32.totalorder %s26_s15, 4  ;;  %p172_p2 = scmp.lt.s32.totalorder %s800_s14, 5 }
   0x5   : > { %s892_s15 = smov (%p28_p1, %s26_s15), 0  ;;  %p173_p3 = pnand %p613_p0, %p172_p2 }
   0x6   : > { %p215_p4 = scmp.lt.s32.totalorder (!%p173_p3), %s792_s12, 3 }
   0x7   : > { %176 = sbr.rel (%p173_p3) target bundleno = 209 (0xd1), region = 28 }
   0xc   : > { %s894_s12 = smov (!%p215_p4, %s792_s12), 3  ;;  %vm469_vm0 = vcmask 1040384   ;;  %vm471_vm1 = vcmask 1041408  }
   0xd   : > { %s704_s16 = sshll.u32 %s894_s12, 7  ;;  %s703_s20 = sshll.u32 %s894_s12, 5 }
   0xe   : > { %s846_s19 = scalar_lea.vmem %s886_s1, %s704_s16  ;;  %s223_s23 = scalar_lea.vmem %s885_s0, %s703_s20 }
   0xf   : > { %v717_v0 = vld [vmem:[%s846_s19 + $0x38] sm:$0xff]  ;;  %v716_v2 = vld [vmem:[%s846_s19 + $0x30] sm:$0xff]  ;;  %v715_v4 = vld [vmem:[%s846_s19 + $0x28] sm:$0xff]  ;;  %s705_s24 = sshll.u32 %s894_s12, 4  ;;  %s620_s28 = sshll.u32 %s894_s12, 3 }
  0x10   : > { %v725_v1 = vld [vmem:[%s846_s19 + $0x78] sm:$0xff]  ;;  %401 = vmatpush.bf16.msra.mxu0 %v717_v0  ;;  %737 = vmatpush.bf16.msra.mxu2 %v717_v0  ;;  %v724_v3 = vld [vmem:[%s846_s19 + $0x70] sm:$0xff]  ;;  %v723_v5 = vld [vmem:[%s846_s19 + $0x68] sm:$0xff]  ;;  %s238_s27 = scalar_lea.vmem %s887_s2, %s705_s24  ;;  %s243_s4 = scalar_lea.vmem %s888_s3, %s620_s28 }
  0x11   : > { %420 = vmatpush.bf16.msra.mxu1 %v725_v1  ;;  %745 = vmatpush.bf16.msra.mxu3 %v725_v1  ;;  %v714_v6 = vld [vmem:[%s846_s19 + $0x20] sm:$0xff]  ;;  %v713_v8 = vld [vmem:[%s846_s19 + $0x18] sm:$0xff]  ;;  %v712_v10 = vld [vmem:[%s846_s19 + $0x10] sm:$0xff] }
  0x12   : > { %v722_v7 = vld [vmem:[%s846_s19 + $0x60] sm:$0xff]  ;;  %v721_v9 = vld [vmem:[%s846_s19 + $0x58] sm:$0xff]  ;;  %v720_v11 = vld [vmem:[%s846_s19 + $0x50] sm:$0xff] }
  0x13   : > { %v711_v12 = vld [vmem:[%s846_s19 + $0x8] sm:$0xff]  ;;  %v710_v14 = vld [vmem:[%s846_s19] sm:$0xff]  ;;  %v631_v18 = vld [vmem:[%s223_s23 + $0x10] sm:$0xf] }
  0x14   : > { %402 = vmatpush.bf16.msra.mxu0 %v716_v2  ;;  %738 = vmatpush.bf16.msra.mxu2 %v716_v2  ;;  %v719_v13 = vld [vmem:[%s846_s19 + $0x48] sm:$0xff]  ;;  %v718_v15 = vld [vmem:[%s846_s19 + $0x40] sm:$0xff]  ;;  %v709_v19 = vld [vmem:[%s223_s23 + $0x14] sm:$0xf0] }
  0x15   : > { %421 = vmatpush.bf16.msra.mxu1 %v724_v3  ;;  %746 = vmatpush.bf16.msra.mxu3 %v724_v3  ;;  %v623_v16 = vld [vmem:[%s223_s23] sm:$0xf]  ;;  %v707_v17 = vld [vmem:[%s223_s23 + $0x4] sm:$0xf0]  ;;  %v706_v20 = vld [vmem:[%s223_s23 + $0x4] sm:$0xf]  ;;  %v632_v25 = vor.u32 %v709_v19, %v631_v18 }
  0x16   : > { %v625_v21 = vld [vmem:[%s223_s23 + $0x8] sm:$0xf0]  ;;  %v708_v22 = vld [vmem:[%s223_s23 + $0x14] sm:$0xf]  ;;  %v633_v23 = vld [vmem:[%s223_s23 + $0x18] sm:$0xf0]  ;;  %v624_v24 = vor.u32 %v707_v17, %v623_v16 }
  0x17   : > { %v628_v26 = vor.u32 %v706_v20, %v625_v21  ;;  %v636_v27 = vor.u32 %v708_v22, %v633_v23 }
  0x18   : > { %403 = vmatpush.bf16.msra.mxu0 %v715_v4  ;;  %739 = vmatpush.bf16.msra.mxu2 %v715_v4 }
  0x19   : > { %422 = vmatpush.bf16.msra.mxu1 %v723_v5  ;;  %747 = vmatpush.bf16.msra.mxu3 %v723_v5 }
  0x1c   : > { %404 = vmatpush.bf16.msra.mxu0 %v714_v6  ;;  %740 = vmatpush.bf16.msra.mxu2 %v714_v6 }
  0x1d   : > { %423 = vmatpush.bf16.msra.mxu1 %v722_v7  ;;  %748 = vmatpush.bf16.msra.mxu3 %v722_v7 }
  0x20   : > { %405 = vmatpush.bf16.msra.mxu0 %v713_v8  ;;  %741 = vmatpush.bf16.msra.mxu2 %v713_v8 }
  0x21   : > { %424 = vmatpush.bf16.msra.mxu1 %v721_v9  ;;  %749 = vmatpush.bf16.msra.mxu3 %v721_v9 }
  0x24   : > { %406 = vmatpush.bf16.msra.mxu0 %v712_v10  ;;  %742 = vmatpush.bf16.msra.mxu2 %v712_v10 }
  0x25   : > { %425 = vmatpush.bf16.msra.mxu1 %v720_v11  ;;  %750 = vmatpush.bf16.msra.mxu3 %v720_v11 }
  0x28   : > { %407 = vmatpush.bf16.msra.mxu0 %v711_v12  ;;  %743 = vmatpush.bf16.msra.mxu2 %v711_v12 }
  0x29   : > { %426 = vmatpush.bf16.msra.mxu1 %v719_v13  ;;  %751 = vmatpush.bf16.msra.mxu3 %v719_v13 }
  0x2c   : > { %408 = vmatpush.bf16.msra.mxu0 %v710_v14  ;;  %744 = vmatpush.bf16.msra.mxu2 %v710_v14 }
  0x2d   : > { %427 = vmatpush.bf16.msra.mxu1 %v718_v15  ;;  %752 = vmatpush.bf16.msra.mxu3 %v718_v15 }
  0x2f   : > { %409 = vmatmul.bf16.vlgmr.msra.gmra.mxu0 %v624_v24  ;;  %414 = vmatmul.bf16.vlgmr.msra.gmra.mxu2 %v632_v25 }
  0x30   : > { %428 = vmatmul.bf16.vlgmr.msra.gmra.mxu1 %v628_v26  ;;  %433 = vmatmul.bf16.vlgmr.msra.gmra.mxu3 %v636_v27 }
  0xac   : > { %v410_v28 = vpop.f32.mrf.mxu0 }
  0xad   : > { %v429_v29 = vpop.f32.mrf.mxu1 }
  0xae   : > { %v430_v31 = vadd.f32 %v429_v29, %v410_v28 }
  0xb0   : > { %v456_v36 = vmul.f32 %v430_v31, %v430_v31 }
  0xb2   : > { %v415_v30 = vpop.f32.mrf.mxu2 }
  0xb3   : > { %v434_v32 = vpop.f32.mrf.mxu3 }
  0xb4   : > { %v412_v33 = vpop.f32.mrf.mxu0  ;;  %v435_v37 = vadd.f32 %v434_v32, %v415_v30 }
  0xb5   : > { %v431_v34 = vpop.f32.mrf.mxu1 }
  0xb6   : > { %v432_v35 = vadd.f32 %v431_v34, %v412_v33  ;;  %v458_v44 = vmul.f32 %v435_v37, %v435_v37 }
  0xb8   : > { %v729_v38 = vpack.c.bf16 %v432_v35, %v430_v31  ;;  %v447_v39 = vadd.f32 %v432_v35, %v430_v31  ;;  %v457_v40 = vmul.f32 %v432_v35, %v432_v35 }
  0xba   : > { %730 = vst [vmem:[%s238_s27] sm:$0xff] %v729_v38   ;;  %v460_v41 = vadd.f32 %v457_v40, %v456_v36  ;;  %v417_v42 = vpop.f32.mrf.mxu2  ;;  %v448_v46 = vadd.f32 %v447_v39, %v435_v37 }
  0xbb   : > { %v436_v43 = vpop.f32.mrf.mxu3 }
  0xbc   : > { %v437_v45 = vadd.f32 %v436_v43, %v417_v42  ;;  %v461_v50 = vadd.f32 %v460_v41, %v458_v44 }
  0xbe   : > { %v734_v47 = vpack.c.bf16 %v437_v45, %v435_v37  ;;  %v449_v48 = vadd.f32 %v448_v46, %v437_v45  ;;  %v459_v49 = vmul.f32 %v437_v45, %v437_v45 }
  0xc0   : > { %736 = vst [vmem:[%s238_s27 + $0x8] sm:$0xff] %v734_v47   ;;  %v450_v51 = vrot.slane %v449_v48, 4  ;;  %v462_v52 = vadd.f32 %v461_v50, %v459_v49 }
  0xc2   : > { %v451_v53 = vadd.f32 %v450_v51, %v449_v48  ;;  %v463_v54 = vrot.slane %v462_v52, 4 }
  0xc4   : > { %v452_v55 = vrot.slane %v451_v53, 2  ;;  %v464_v56 = vadd.f32 %v463_v54, %v462_v52 }
  0xc6   : > { %v453_v57 = vadd.f32 %v452_v55, %v451_v53  ;;  %v465_v58 = vrot.slane %v464_v56, 2 }
  0xc8   : > { %v454_v59 = vrot.slane %v453_v57, 1  ;;  %v466_v60 = vadd.f32 %v465_v58, %v464_v56 }
  0xca   : > { %v467_v61 = vrot.slane %v466_v60, 1  ;;  %v455_v62 = vadd.f32 %v454_v59, %v453_v57 }
  0xcc   : > { %v468_v63 = vadd.f32 %v467_v61, %v466_v60 }
  0xce   : > { %v470_v0 = vsel %vm469_vm0, %v455_v62, %v468_v63 }
  0xcf   : > { %v472_v1 = vsel %vm471_vm1, %v470_v0, 0.0 }
  0xd0   : > { %475 = vst [vmem:[%s243_s4] sm:$0xff] %v472_v1 }
  0xd1 PF: > { %s14_s14 = sadd.s32 1, %s800_s14   ;;  %s889_s12 = smov %s796_s13 }
  0xd2   : > { %p11_p5 = scmp.ge.s32.totalorder %s14_s14, 6   ;;  %s890_s13 = smov %s892_s15 }
  0xd4   :  { %13 = sbr.rel (!%p11_p5) target bundleno = 2 (0x2), region = 77 }

// kernel: _lambda_.12
= control target key start
LH: loop header
LB: loop body
LE: loop exit
PB: predicated region body
PF: predicated region fallthrough
CT: control target
= control target key end

     0   :  { %s385_s12 = smov 0   ;;  %s415_s0 = inlined_call_operand.vmem [shape: bf16[128,128], index: 0, kind: input, shape index: {}]   ;;  %s416_s1 = inlined_call_operand.vmem [shape: f32[1,128], index: 1, kind: input, shape index: {}]   ;;  %s417_s2 = inlined_call_operand.vmem [shape: f32[1,128], index: 2, kind: input, shape index: {}]   ;;  %s418_s3 = inlined_call_operand.vmem [shape: bf16[128,128], index: 3, kind: output, shape index: {}]  }
   0x1 LB: > { %s294_s13 = sadd.s32 4294967295, %s363_s12   ;;  %p298_p0 = scmp.ge.s32.totalorder %s363_s12, 1  ;;  %s363_s12 = sphi %s385_s12, %s13_s12  }
   0x2   : > { %p138_p1 = scmp.lt.s32.totalorder %s363_s12, 3 }
   0x4   : > { %p139_p2 = pnand %p298_p0, %p138_p1 }
   0x5   : > { %s299_s14 = sshll.u32 (!%p139_p2), %s294_s13, 3 }
   0x6   : > { %142 = sbr.rel (%p139_p2) target bundleno = 29 (0x1d), region = 32  ;;  %p163_p3 = scmp.lt.s32.totalorder (!%p139_p2), %s299_s14, 15 }
   0xb   : > { %s420_s14 = smov (!%p163_p3, %s299_s14), 15  ;;  %v355_v0 = vld [vmem:[%s416_s1] ss:$0 sm:$0xff] }
   0xc   : > { %s300_s15 = sshll.u32 %s420_s14, 2  ;;  %v356_v6 = vld [vmem:[%s417_s2] ss:$0 sm:$0xff] }
   0xd   : > { %s166_s18 = scalar_lea.vmem %s415_s0, %s300_s15  ;;  %s172_s25 = scalar_lea.vmem %s418_s3, %s300_s15 }
   0xe   : > { %v306_v1 = vld [vmem:[%s166_s18] sm:$0xff]   ;;  %v341_v2 = vld [vmem:[%s166_s18 + $0x8] sm:$0xff]   ;;  %v342_v3 = vld [vmem:[%s166_s18 + $0x10] sm:$0xff]  }
   0xf   : > { %v307_v4 = vunpack.c.l.bf16 %v306_v1  ;;  %v308_v5 = vunpack.c.h.bf16 %v306_v1  ;;  %v311_v7 = vunpack.c.l.bf16 %v341_v2  ;;  %v312_v8 = vunpack.c.h.bf16 %v341_v2  ;;  %v343_v9 = vld [vmem:[%s166_s18 + $0x18] sm:$0xff]  }
  0x10   : > { %v315_v10 = vunpack.c.l.bf16 %v342_v3  ;;  %v316_v11 = vunpack.c.h.bf16 %v342_v3  ;;  %v319_v12 = vunpack.c.l.bf16 %v343_v9  ;;  %v320_v13 = vunpack.c.h.bf16 %v343_v9 }
  0x11   : > { %v194_v14 = vmul.f32 %v355_v0, %v307_v4  ;;  %v195_v15 = vmul.f32 %v355_v0, %v308_v5  ;;  %v196_v16 = vmul.f32 %v355_v0, %v311_v7  ;;  %v197_v17 = vmul.f32 %v355_v0, %v312_v8 }
  0x12   : > { %v198_v18 = vmul.f32 %v355_v0, %v315_v10  ;;  %v199_v19 = vmul.f32 %v355_v0, %v316_v11  ;;  %v200_v20 = vmul.f32 %v355_v0, %v319_v12  ;;  %v201_v21 = vmul.f32 %v355_v0, %v320_v13 }
  0x13   : > { %v206_v22 = vadd.f32 %v356_v6, %v194_v14  ;;  %v207_v23 = vadd.f32 %v356_v6, %v195_v15  ;;  %v208_v24 = vadd.f32 %v356_v6, %v196_v16  ;;  %v209_v25 = vadd.f32 %v356_v6, %v197_v17 }
  0x14   : > { %v210_v26 = vadd.f32 %v356_v6, %v198_v18  ;;  %v211_v27 = vadd.f32 %v356_v6, %v199_v19  ;;  %v212_v28 = vadd.f32 %v356_v6, %v200_v20  ;;  %v213_v29 = vadd.f32 %v356_v6, %v201_v21 }
  0x15   : > { %v214_v30 = vmax.f32 %v206_v22, 0.0  ;;  %v215_v31 = vmax.f32 %v207_v23, 0.0  ;;  %v216_v32 = vmax.f32 %v208_v24, 0.0  ;;  %v217_v33 = vmax.f32 %v209_v25, 0.0 }
  0x16   : > { %v218_v34 = vmax.f32 %v210_v26, 0.0  ;;  %v219_v35 = vmax.f32 %v211_v27, 0.0  ;;  %v220_v36 = vmax.f32 %v212_v28, 0.0  ;;  %v221_v37 = vmax.f32 %v213_v29, 0.0 }
  0x17   : > { %v324_v38 = vpack.c.bf16 %v215_v31, %v214_v30  ;;  %v329_v39 = vpack.c.bf16 %v217_v33, %v216_v32 }
  0x18   : > { %v334_v40 = vpack.c.bf16 %v219_v35, %v218_v34  ;;  %v339_v41 = vpack.c.bf16 %v221_v37, %v220_v36 }
  0x19   : > { %325 = vst [vmem:[%s172_s25] sm:$0xff] %v324_v38  }
  0x1a   : > { %344 = vst [vmem:[%s172_s25 + $0x8] sm:$0xff] %v329_v39  }
  0x1b   : > { %345 = vst [vmem:[%s172_s25 + $0x10] sm:$0xff] %v334_v40  }
  0x1c   : > { %346 = vst [vmem:[%s172_s25 + $0x18] sm:$0xff] %v339_v41  }
  0x1d PF: > { %s13_s12 = sadd.s32 1, %s363_s12  }
  0x1e   : > { %p10_p4 = scmp.ge.s32.totalorder %s13_s12, 4  }
  0x20   :  { %12 = sbr.rel (!%p10_p4) target bundleno = 1 (0x1), region = 62 }

// kernel: _lambda_.13
= control target key start
LH: loop header
LB: loop body
LE: loop exit
PB: predicated region body
PF: predicated region fallthrough
CT: control target
= control target key end

     0   :  { %s887_s12 = smov 0   ;;  %s889_s13 = smov 0   ;;  %s961_s0 = inlined_call_operand.vmem [shape: bf16[4,128,128], index: 0, kind: input, shape index: {}]   ;;  %s962_s1 = inlined_call_operand.vmem [shape: bf16[4,128,128], index: 1, kind: input, shape index: {}]   ;;  %s963_s2 = inlined_call_operand.vmem [shape: bf16[4,128,128], index: 2, kind: output, shape index: {0}]   ;;  %s964_s3 = inlined_call_operand.vmem [shape: f32[4,8,128], index: 3, kind: output, shape index: {1}]  }
   0x1   :  { %s891_s14 = smov 0  }
   0x2 LB: > { %s26_s15 = sadd.s32 1, %s861_s13  ;;  %p654_p0 = scmp.ge.s32.totalorder %s865_s14, 1  ;;  %s865_s14 = sphi %s891_s14, %s14_s14   ;;  %s861_s13 = sphi %s889_s13, %s966_s13   ;;  %s857_s12 = sphi %s887_s12, %s965_s12  }
   0x3   : > { %p28_p1 = scmp.ge.s32.totalorder %s26_s15, 4  ;;  %p171_p2 = scmp.lt.s32.totalorder %s865_s14, 5 }
   0x5   : > { %s968_s15 = smov (%p28_p1, %s26_s15), 0  ;;  %p172_p3 = pnand %p654_p0, %p171_p2 }
   0x6   : > { %p213_p4 = scmp.lt.s32.totalorder (!%p172_p3), %s857_s12, 3 }
   0x7   : > { %175 = sbr.rel (%p172_p3) target bundleno = 240 (0xf0), region = 28 }
   0xc   : > { %s970_s12 = smov (!%p213_p4, %s857_s12), 3  ;;  %vm513_vm0 = vcmask 1040384   ;;  %vm515_vm1 = vcmask 1041408  }
   0xd   : > { %s908_s16 = sshll.u32 %s970_s12, 6  ;;  %s661_s26 = sshll.u32 %s970_s12, 3 }
   0xe   : > { %s914_s19 = scalar_lea.vmem %s962_s1, %s908_s16  ;;  %s220_s22 = scalar_lea.vmem %s961_s0, %s908_s16 }
   0xf   : > { %v746_v0 = vld [vmem:[%s914_s19 + $0x38] sm:$0xff]  ;;  %v745_v1 = vld [vmem:[%s914_s19 + $0x30] sm:$0xff]  ;;  %v744_v2 = vld [vmem:[%s914_s19 + $0x28] sm:$0xff]  ;;  %s934_s25 = scalar_lea.vmem %s963_s2, %s908_s16  ;;  %s240_s29 = scalar_lea.vmem %s964_s3, %s661_s26 }
  0x10   : > { %374 = vmatpush.bf16.msra.mxu0 %v746_v0  ;;  %794 = vmatpush.bf16.msra.mxu1 %v746_v0  ;;  %v743_v3 = vld [vmem:[%s914_s19 + $0x20] sm:$0xff]  ;;  %v742_v4 = vld [vmem:[%s914_s19 + $0x18] sm:$0xff]  ;;  %v741_v5 = vld [vmem:[%s914_s19 + $0x10] sm:$0xff] }
  0x11   : > { %795 = vmatpush.bf16.msra.mxu2 %v746_v0  ;;  %796 = vmatpush.bf16.msra.mxu3 %v746_v0  ;;  %v740_v6 = vld [vmem:[%s914_s19 + $0x8] sm:$0xff]  ;;  %v739_v7 = vld [vmem:[%s914_s19] sm:$0xff]  ;;  %v733_v9 = vld [vmem:[%s220_s22 + $0x10] sm:$0xff] }
  0x12   : > { %v731_v8 = vld [vmem:[%s220_s22] sm:$0xff]  ;;  %v737_v11 = vld [vmem:[%s220_s22 + $0x30] sm:$0xff]  ;;  %v732_v12 = vld [vmem:[%s220_s22 + $0x8] sm:$0xff] }
  0x13   : > { %v735_v10 = vld [vmem:[%s220_s22 + $0x20] sm:$0xff]  ;;  %v734_v13 = vld [vmem:[%s220_s22 + $0x18] sm:$0xff]  ;;  %v736_v14 = vld [vmem:[%s220_s22 + $0x28] sm:$0xff] }
  0x14   : > { %375 = vmatpush.bf16.msra.mxu0 %v745_v1  ;;  %797 = vmatpush.bf16.msra.mxu1 %v745_v1  ;;  %v738_v15 = vld [vmem:[%s220_s22 + $0x38] sm:$0xff] }
  0x15   : > { %798 = vmatpush.bf16.msra.mxu2 %v745_v1  ;;  %799 = vmatpush.bf16.msra.mxu3 %v745_v1 }
  0x18   : > { %376 = vmatpush.bf16.msra.mxu0 %v744_v2  ;;  %800 = vmatpush.bf16.msra.mxu1 %v744_v2 }
  0x19   : > { %801 = vmatpush.bf16.msra.mxu2 %v744_v2  ;;  %802 = vmatpush.bf16.msra.mxu3 %v744_v2 }
  0x1c   : > { %377 = vmatpush.bf16.msra.mxu0 %v743_v3  ;;  %803 = vmatpush.bf16.msra.mxu1 %v743_v3 }
  0x1d   : > { %804 = vmatpush.bf16.msra.mxu2 %v743_v3  ;;  %805 = vmatpush.bf16.msra.mxu3 %v743_v3 }
  0x20   : > { %378 = vmatpush.bf16.msra.mxu0 %v742_v4  ;;  %806 = vmatpush.bf16.msra.mxu1 %v742_v4 }
  0x21   : > { %807 = vmatpush.bf16.msra.mxu2 %v742_v4  ;;  %808 = vmatpush.bf16.msra.mxu3 %v742_v4 }
  0x24   : > { %379 = vmatpush.bf16.msra.mxu0 %v741_v5  ;;  %809 = vmatpush.bf16.msra.mxu1 %v741_v5 }
  0x25   : > { %810 = vmatpush.bf16.msra.mxu2 %v741_v5  ;;  %811 = vmatpush.bf16.msra.mxu3 %v741_v5 }
  0x28   : > { %380 = vmatpush.bf16.msra.mxu0 %v740_v6  ;;  %812 = vmatpush.bf16.msra.mxu1 %v740_v6 }
  0x29   : > { %813 = vmatpush.bf16.msra.mxu2 %v740_v6  ;;  %814 = vmatpush.bf16.msra.mxu3 %v740_v6 }
  0x2c   : > { %381 = vmatpush.bf16.msra.mxu0 %v739_v7  ;;  %815 = vmatpush.bf16.msra.mxu1 %v739_v7 }
  0x2d   : > { %816 = vmatpush.bf16.msra.mxu2 %v739_v7  ;;  %817 = vmatpush.bf16.msra.mxu3 %v739_v7 }
  0x2f   : > { %382 = vmatmul.bf16.vlgmr.msra.gmra.mxu0 %v731_v8  ;;  %392 = vmatmul.bf16.vlgmr.msra.gmra.mxu1 %v733_v9 }
  0x30   : > { %402 = vmatmul.bf16.vlgmr.msra.gmra.mxu2 %v735_v10  ;;  %412 = vmatmul.bf16.vlgmr.msra.gmra.mxu3 %v737_v11 }
  0x3f   : > { %387 = vmatmul.bf16.gmra.mxu0 %v732_v12  ;;  %397 = vmatmul.bf16.gmra.mxu1 %v734_v13 }
  0x40   : > { %407 = vmatmul.bf16.gmra.mxu2 %v736_v14  ;;  %417 = vmatmul.bf16.gmra.mxu3 %v738_v15 }
  0xac   : > { %v383_v16 = vpop.f32.mrf.mxu0  ;;  %v393_v17 = vpop.f32.mrf.mxu1 }
  0xad   : > { %v476_v31 = vmul.f32 %v383_v16, %v383_v16  ;;  %v480_v45 = vmul.f32 %v393_v17, %v393_v17 }
  0xb3   : > { %v403_v18 = vpop.f32.mrf.mxu2  ;;  %v928_v19 = vpop.f32.mrf.mxu3 }
  0xb4   : > { %v385_v20 = vpop.f32.mrf.mxu0  ;;  %v395_v21 = vpop.f32.mrf.mxu1  ;;  %v484_v61 = vmul.f32 %v403_v18, %v403_v18  ;;  %v488_v9 = vmul.f32 %v928_v19, %v928_v19 }
  0xb5   : > { %v750_v22 = vpack.c.bf16 %v385_v20, %v383_v16  ;;  %v760_v23 = vpack.c.bf16 %v395_v21, %v393_v17  ;;  %v477_v30 = vmul.f32 %v385_v20, %v385_v20  ;;  %v455_v33 = vadd.f32 %v385_v20, %v383_v16 }
  0xb6   : > { %v481_v48 = vmul.f32 %v395_v21, %v395_v21 }
  0xb7   : > { %751 = vst [vmem:[%s934_s25] sm:$0xff] %v750_v22   ;;  %v492_v34 = vadd.f32 %v477_v30, %v476_v31 }
  0xb8   : > { %788 = vst [vmem:[%s934_s25 + $0x10] sm:$0xff] %v760_v23  }
  0xbb   : > { %v405_v24 = vpop.f32.mrf.mxu2  ;;  %v415_v25 = vpop.f32.mrf.mxu3 }
  0xbc   : > { %v388_v26 = vpop.f32.mrf.mxu0  ;;  %v398_v27 = vpop.f32.mrf.mxu1  ;;  %v770_v28 = vpack.c.bf16 %v405_v24, %v403_v18  ;;  %v780_v29 = vpack.c.bf16 %v415_v25, %v928_v19  ;;  %v485_v0 = vmul.f32 %v405_v24, %v405_v24  ;;  %v489_v12 = vmul.f32 %v415_v25, %v415_v25 }
  0xbd   : > { %v478_v32 = vmul.f32 %v388_v26, %v388_v26  ;;  %v456_v35 = vadd.f32 %v455_v33, %v388_v26  ;;  %v482_v51 = vmul.f32 %v398_v27, %v398_v27 }
  0xbe   : > { %790 = vst [vmem:[%s934_s25 + $0x20] sm:$0xff] %v770_v28  }
  0xbf   : > { %792 = vst [vmem:[%s934_s25 + $0x30] sm:$0xff] %v780_v29   ;;  %v493_v38 = vadd.f32 %v492_v34, %v478_v32 }
  0xc3   : > { %v408_v36 = vpop.f32.mrf.mxu2  ;;  %v418_v37 = vpop.f32.mrf.mxu3 }
  0xc4   : > { %v390_v39 = vpop.f32.mrf.mxu0  ;;  %v400_v40 = vpop.f32.mrf.mxu1  ;;  %v486_v4 = vmul.f32 %v408_v36, %v408_v36  ;;  %v490_v16 = vmul.f32 %v418_v37, %v418_v37 }
  0xc5   : > { %v755_v41 = vpack.c.bf16 %v390_v39, %v388_v26  ;;  %v457_v42 = vadd.f32 %v456_v35, %v390_v39  ;;  %v479_v43 = vmul.f32 %v390_v39, %v390_v39  ;;  %v765_v44 = vpack.c.bf16 %v400_v40, %v398_v27 }
  0xc6   : > { %v483_v59 = vmul.f32 %v400_v40, %v400_v40 }
  0xc7   : > { %787 = vst [vmem:[%s934_s25 + $0x8] sm:$0xff] %v755_v41   ;;  %v458_v46 = vadd.f32 %v457_v42, %v393_v17  ;;  %v494_v47 = vadd.f32 %v493_v38, %v479_v43 }
  0xc8   : > { %789 = vst [vmem:[%s934_s25 + $0x18] sm:$0xff] %v765_v44  }
  0xc9   : > { %v495_v49 = vadd.f32 %v494_v47, %v480_v45  ;;  %v459_v50 = vadd.f32 %v458_v46, %v395_v21 }
  0xcb   : > { %v460_v52 = vadd.f32 %v459_v50, %v398_v27  ;;  %v496_v53 = vadd.f32 %v495_v49, %v481_v48  ;;  %v410_v54 = vpop.f32.mrf.mxu2  ;;  %v420_v55 = vpop.f32.mrf.mxu3 }
  0xcc   : > { %v775_v56 = vpack.c.bf16 %v410_v54, %v408_v36  ;;  %v785_v57 = vpack.c.bf16 %v420_v55, %v418_v37  ;;  %v487_v8 = vmul.f32 %v410_v54, %v410_v54  ;;  %v491_v21 = vmul.f32 %v420_v55, %v420_v55 }
  0xcd   : > { %v461_v58 = vadd.f32 %v460_v52, %v400_v40  ;;  %v497_v60 = vadd.f32 %v496_v53, %v482_v51 }
  0xce   : > { %791 = vst [vmem:[%s934_s25 + $0x28] sm:$0xff] %v775_v56  }
  0xcf   : > { %v462_v62 = vadd.f32 %v461_v58, %v403_v18  ;;  %v498_v63 = vadd.f32 %v497_v60, %v483_v59  ;;  %793 = vst [vmem:[%s934_s25 + $0x38] sm:$0xff] %v785_v57  }
  0xd1   : > { %v499_v1 = vadd.f32 %v498_v63, %v484_v61  ;;  %v463_v2 = vadd.f32 %v462_v62, %v405_v24 }
  0xd3   : > { %v464_v3 = vadd.f32 %v463_v2, %v408_v36  ;;  %v500_v5 = vadd.f32 %v499_v1, %v485_v0 }
  0xd5   : > { %v501_v6 = vadd.f32 %v500_v5, %v486_v4  ;;  %v465_v7 = vadd.f32 %v464_v3, %v410_v54 }
  0xd7   : > { %v466_v10 = vadd.f32 %v465_v7, %v928_v19  ;;  %v502_v11 = vadd.f32 %v501_v6, %v487_v8 }
  0xd9   : > { %v503_v13 = vadd.f32 %v502_v11, %v488_v9  ;;  %v467_v14 = vadd.f32 %v466_v10, %v415_v25 }
  0xdb   : > { %v468_v15 = vadd.f32 %v467_v14, %v418_v37  ;;  %v504_v17 = vadd.f32 %v503_v13, %v489_v12 }
  0xdd   : > { %v505_v18 = vadd.f32 %v504_v17, %v490_v16  ;;  %v469_v20 = vadd.f32 %v468_v15, %v420_v55 }
  0xdf   : > { %v470_v22 = vrot.slane %v469_v20, 4  ;;  %v506_v23 = vadd.f32 %v505_v18, %v491_v21 }
  0xe1   : > { %v471_v24 = vadd.f32 %v470_v22, %v469_v20  ;;  %v507_v26 = vrot.slane %v506_v23, 4 }
  0xe3   : > { %v472_v27 = vrot.slane %v471_v24, 2  ;;  %v508_v28 = vadd.f32 %v507_v26, %v506_v23 }
  0xe5   : > { %v473_v29 = vadd.f32 %v472_v27, %v471_v24  ;;  %v509_v30 = vrot.slane %v508_v28, 2 }
  0xe7   : > { %v474_v19 = vrot.slane %v473_v29, 1  ;;  %v510_v31 = vadd.f32 %v509_v30, %v508_v28 }
  0xe9   : > { %v511_v32 = vrot.slane %v510_v31, 1  ;;  %v475_v25 = vadd.f32 %v474_v19, %v473_v29 }
  0xeb   : > { %v512_v33 = vadd.f32 %v511_v32, %v510_v31 }
  0xed   : > { %v514_v34 = vsel %vm513_vm0, %v475_v25, %v512_v33 }
  0xee   : > { %v516_v35 = vsel %vm515_vm1, %v514_v34, 0.0 }
  0xef   : > { %519 = vst [vmem:[%s240_s29] sm:$0xff] %v516_v35 }
  0xf0 PF: > { %s14_s14 = sadd.s32 1, %s865_s14   ;;  %s965_s12 = smov %s861_s13 }
  0xf1   : > { %p11_p5 = scmp.ge.s32.totalorder %s14_s14, 6   ;;  %s966_s13 = smov %s968_s15 }
  0xf3   :  { %13 = sbr.rel (!%p11_p5) target bundleno = 2 (0x2), region = 77 }

// kernel: _lambda_.14
= control target key start
LH: loop header
LB: loop body
LE: loop exit
PB: predicated region body
PF: predicated region fallthrough
CT: control target
= control target key end

     0   :  { %s685_s12 = smov 0   ;;  %s819_s0 = inlined_call_operand.vmem [shape: bf16[512,128], index: 0, kind: input, shape index: {}]   ;;  %s820_s1 = inlined_call_operand.vmem [shape: f32[1,128], index: 1, kind: input, shape index: {}]   ;;  %s821_s2 = inlined_call_operand.vmem [shape: f32[1,128], index: 2, kind: input, shape index: {}]   ;;  %s822_s3 = inlined_call_operand.vmem [shape: bf16[512,128], index: 3, kind: output, shape index: {}]  }
   0x1 LB: > { %s462_s13 = sadd.s32 4294967295, %s663_s12   ;;  %p466_p0 = scmp.ge.s32.totalorder %s663_s12, 1  ;;  %s663_s12 = sphi %s685_s12, %s13_s12  }
   0x2   : > { %p138_p1 = scmp.lt.s32.totalorder %s663_s12, 3 }
   0x4   : > { %p139_p2 = pnand %p466_p0, %p138_p1 }
   0x5   : > { %s467_s14 = sshll.u32 (!%p139_p2), %s462_s13, 5 }
   0x6   : > { %142 = sbr.rel (%p139_p2) target bundleno = 57 (0x39), region = 32  ;;  %p163_p3 = scmp.lt.s32.totalorder (!%p139_p2), %s467_s14, 63 }
   0xb   : > { %s824_s14 = smov (!%p163_p3, %s467_s14), 63  ;;  %v706_v0 = vld [vmem:[%s820_s1] ss:$0 sm:$0xff] }
   0xc   : > { %s468_s15 = sshll.u32 %s824_s14, 2  ;;  %v714_v6 = vld [vmem:[%s821_s2] ss:$0 sm:$0xff] }
   0xd   : > { %s701_s18 = scalar_lea.vmem %s819_s0, %s468_s15  ;;  %s740_s25 = scalar_lea.vmem %s822_s3, %s468_s15 }
   0xe   : > { %v474_v1 = vld [vmem:[%s701_s18] sm:$0xff]   ;;  %v617_v2 = vld [vmem:[%s701_s18 + $0x8] sm:$0xff]   ;;  %v618_v3 = vld [vmem:[%s701_s18 + $0x10] sm:$0xff]  }
   0xf   : > { %v475_v4 = vunpack.c.l.bf16 %v474_v1  ;;  %v476_v5 = vunpack.c.h.bf16 %v474_v1  ;;  %v479_v7 = vunpack.c.l.bf16 %v617_v2  ;;  %v480_v8 = vunpack.c.h.bf16 %v617_v2  ;;  %v619_v9 = vld [vmem:[%s701_s18 + $0x18] sm:$0xff]   ;;  %v620_v30 = vld [vmem:[%s701_s18 + $0x20] sm:$0xff]   ;;  %v621_v35 = vld [vmem:[%s701_s18 + $0x28] sm:$0xff]  }
  0x10   : > { %v483_v10 = vunpack.c.l.bf16 %v618_v3  ;;  %v484_v11 = vunpack.c.h.bf16 %v618_v3  ;;  %v487_v12 = vunpack.c.l.bf16 %v619_v9  ;;  %v488_v13 = vunpack.c.h.bf16 %v619_v9  ;;  %v622_v40 = vld [vmem:[%s701_s18 + $0x30] sm:$0xff]   ;;  %v623_v45 = vld [vmem:[%s701_s18 + $0x38] sm:$0xff]   ;;  %v624_v3 = vld [vmem:[%s701_s18 + $0x40] sm:$0xff]  }
  0x11   : > { %v242_v14 = vmul.f32 %v706_v0, %v475_v4  ;;  %v243_v15 = vmul.f32 %v706_v0, %v476_v5  ;;  %v244_v16 = vmul.f32 %v706_v0, %v479_v7  ;;  %v245_v17 = vmul.f32 %v706_v0, %v480_v8 }
  0x12   : > { %v246_v18 = vmul.f32 %v706_v0, %v483_v10  ;;  %v247_v19 = vmul.f32 %v706_v0, %v484_v11  ;;  %v248_v20 = vmul.f32 %v706_v0, %v487_v12  ;;  %v249_v21 = vmul.f32 %v706_v0, %v488_v13  ;;  %v625_v13 = vld [vmem:[%s701_s18 + $0x48] sm:$0xff]  }
  0x13   : > { %v278_v22 = vadd.f32 %v714_v6, %v242_v14  ;;  %v279_v23 = vadd.f32 %v714_v6, %v243_v15  ;;  %v280_v24 = vadd.f32 %v714_v6, %v244_v16  ;;  %v281_v25 = vadd.f32 %v714_v6, %v245_v17 }
  0x14   : > { %v282_v26 = vadd.f32 %v714_v6, %v246_v18  ;;  %v283_v27 = vadd.f32 %v714_v6, %v247_v19  ;;  %v284_v28 = vadd.f32 %v714_v6, %v248_v20  ;;  %v285_v29 = vadd.f32 %v714_v6, %v249_v21  ;;  %v626_v18 = vld [vmem:[%s701_s18 + $0x50] sm:$0xff]  }
  0x15   : > { %v310_v31 = vmax.f32 %v278_v22, 0.0  ;;  %v311_v32 = vmax.f32 %v279_v23, 0.0  ;;  %v312_v33 = vmax.f32 %v280_v24, 0.0  ;;  %v313_v34 = vmax.f32 %v281_v25, 0.0  ;;  %v627_v23 = vld [vmem:[%s701_s18 + $0x58] sm:$0xff]  }
  0x16   : > { %v314_v36 = vmax.f32 %v282_v26, 0.0  ;;  %v315_v37 = vmax.f32 %v283_v27, 0.0  ;;  %v316_v38 = vmax.f32 %v284_v28, 0.0  ;;  %v317_v39 = vmax.f32 %v285_v29, 0.0 }
  0x17   : > { %v540_v41 = vpack.c.bf16 %v311_v32, %v310_v31  ;;  %v545_v42 = vpack.c.bf16 %v313_v34, %v312_v33  ;;  %v491_v43 = vunpack.c.l.bf16 %v620_v30  ;;  %v492_v44 = vunpack.c.h.bf16 %v620_v30 }
  0x18   : > { %v550_v46 = vpack.c.bf16 %v315_v37, %v314_v36  ;;  %v555_v47 = vpack.c.bf16 %v317_v39, %v316_v38  ;;  %v495_v48 = vunpack.c.l.bf16 %v621_v35  ;;  %v496_v49 = vunpack.c.h.bf16 %v621_v35 }
  0x19   : > { %541 = vst [vmem:[%s740_s25] sm:$0xff] %v540_v41   ;;  %v250_v50 = vmul.f32 %v706_v0, %v491_v43  ;;  %v251_v51 = vmul.f32 %v706_v0, %v492_v44  ;;  %v499_v52 = vunpack.c.l.bf16 %v622_v40  ;;  %v500_v53 = vunpack.c.h.bf16 %v622_v40  ;;  %v628_v40 = vld [vmem:[%s701_s18 + $0x60] sm:$0xff]  }
  0x1a   : > { %632 = vst [vmem:[%s740_s25 + $0x8] sm:$0xff] %v545_v42   ;;  %v252_v54 = vmul.f32 %v706_v0, %v495_v48  ;;  %v253_v55 = vmul.f32 %v706_v0, %v496_v49  ;;  %v503_v56 = vunpack.c.l.bf16 %v623_v45  ;;  %v504_v57 = vunpack.c.h.bf16 %v623_v45 }
  0x1b   : > { %633 = vst [vmem:[%s740_s25 + $0x10] sm:$0xff] %v550_v46   ;;  %v286_v58 = vadd.f32 %v714_v6, %v250_v50  ;;  %v287_v59 = vadd.f32 %v714_v6, %v251_v51  ;;  %v254_v60 = vmul.f32 %v706_v0, %v499_v52  ;;  %v255_v61 = vmul.f32 %v706_v0, %v500_v53  ;;  %v629_v53 = vld [vmem:[%s701_s18 + $0x68] sm:$0xff]  }
  0x1c   : > { %634 = vst [vmem:[%s740_s25 + $0x18] sm:$0xff] %v555_v47   ;;  %v288_v62 = vadd.f32 %v714_v6, %v252_v54  ;;  %v289_v63 = vadd.f32 %v714_v6, %v253_v55  ;;  %v256_v1 = vmul.f32 %v706_v0, %v503_v56  ;;  %v257_v2 = vmul.f32 %v706_v0, %v504_v57 }
  0x1d   : > { %v318_v4 = vmax.f32 %v286_v58, 0.0  ;;  %v319_v5 = vmax.f32 %v287_v59, 0.0  ;;  %v290_v7 = vadd.f32 %v714_v6, %v254_v60  ;;  %v291_v8 = vadd.f32 %v714_v6, %v255_v61  ;;  %v630_v58 = vld [vmem:[%s701_s18 + $0x70] sm:$0xff]  }
  0x1e   : > { %v320_v9 = vmax.f32 %v288_v62, 0.0  ;;  %v321_v10 = vmax.f32 %v289_v63, 0.0  ;;  %v292_v11 = vadd.f32 %v714_v6, %v256_v1  ;;  %v293_v12 = vadd.f32 %v714_v6, %v257_v2  ;;  %v631_v63 = vld [vmem:[%s701_s18 + $0x78] sm:$0xff]  }
  0x1f   : > { %v560_v14 = vpack.c.bf16 %v319_v5, %v318_v4  ;;  %v322_v15 = vmax.f32 %v290_v7, 0.0  ;;  %v323_v16 = vmax.f32 %v291_v8, 0.0  ;;  %v507_v17 = vunpack.c.l.bf16 %v624_v3 }
  0x20   : > { %v565_v19 = vpack.c.bf16 %v321_v10, %v320_v9  ;;  %v324_v20 = vmax.f32 %v292_v11, 0.0  ;;  %v325_v21 = vmax.f32 %v293_v12, 0.0  ;;  %v508_v22 = vunpack.c.h.bf16 %v624_v3 }
  0x21   : > { %635 = vst [vmem:[%s740_s25 + $0x20] sm:$0xff] %v560_v14   ;;  %v570_v24 = vpack.c.bf16 %v323_v16, %v322_v15  ;;  %v258_v25 = vmul.f32 %v706_v0, %v507_v17  ;;  %v511_v26 = vunpack.c.l.bf16 %v625_v13  ;;  %v512_v27 = vunpack.c.h.bf16 %v625_v13 }
  0x22   : > { %636 = vst [vmem:[%s740_s25 + $0x28] sm:$0xff] %v565_v19   ;;  %v575_v28 = vpack.c.bf16 %v325_v21, %v324_v20  ;;  %v259_v29 = vmul.f32 %v706_v0, %v508_v22  ;;  %v515_v30 = vunpack.c.l.bf16 %v626_v18  ;;  %v516_v31 = vunpack.c.h.bf16 %v626_v18 }
  0x23   : > { %637 = vst [vmem:[%s740_s25 + $0x30] sm:$0xff] %v570_v24   ;;  %v294_v32 = vadd.f32 %v714_v6, %v258_v25  ;;  %v260_v33 = vmul.f32 %v706_v0, %v511_v26  ;;  %v261_v34 = vmul.f32 %v706_v0, %v512_v27  ;;  %v519_v35 = vunpack.c.l.bf16 %v627_v23 }
  0x24   : > { %638 = vst [vmem:[%s740_s25 + $0x38] sm:$0xff] %v575_v28   ;;  %v295_v36 = vadd.f32 %v714_v6, %v259_v29  ;;  %v262_v37 = vmul.f32 %v706_v0, %v515_v30  ;;  %v263_v38 = vmul.f32 %v706_v0, %v516_v31  ;;  %v520_v39 = vunpack.c.h.bf16 %v627_v23 }
  0x25   : > { %v326_v41 = vmax.f32 %v294_v32, 0.0  ;;  %v296_v42 = vadd.f32 %v714_v6, %v260_v33  ;;  %v297_v43 = vadd.f32 %v714_v6, %v261_v34  ;;  %v264_v44 = vmul.f32 %v706_v0, %v519_v35 }
  0x26   : > { %v327_v45 = vmax.f32 %v295_v36, 0.0  ;;  %v298_v46 = vadd.f32 %v714_v6, %v262_v37  ;;  %v299_v47 = vadd.f32 %v714_v6, %v263_v38  ;;  %v265_v48 = vmul.f32 %v706_v0, %v520_v39 }
  0x27   : > { %v328_v49 = vmax.f32 %v296_v42, 0.0  ;;  %v329_v50 = vmax.f32 %v297_v43, 0.0  ;;  %v300_v51 = vadd.f32 %v714_v6, %v264_v44  ;;  %v523_v52 = vunpack.c.l.bf16 %v628_v40 }
  0x28   : > { %v580_v54 = vpack.c.bf16 %v327_v45, %v326_v41  ;;  %v330_v55 = vmax.f32 %v298_v46, 0.0  ;;  %v331_v56 = vmax.f32 %v299_v47, 0.0  ;;  %v301_v57 = vadd.f32 %v714_v6, %v265_v48 }
  0x29   : > { %v585_v59 = vpack.c.bf16 %v329_v50, %v328_v49  ;;  %v332_v60 = vmax.f32 %v300_v51, 0.0  ;;  %v524_v61 = vunpack.c.h.bf16 %v628_v40  ;;  %v266_v62 = vmul.f32 %v706_v0, %v523_v52 }
  0x2a   : > { %639 = vst [vmem:[%s740_s25 + $0x40] sm:$0xff] %v580_v54   ;;  %v590_v1 = vpack.c.bf16 %v331_v56, %v330_v55  ;;  %v333_v2 = vmax.f32 %v301_v57, 0.0  ;;  %v527_v3 = vunpack.c.l.bf16 %v629_v53  ;;  %v528_v4 = vunpack.c.h.bf16 %v629_v53 }
  0x2b   : > { %640 = vst [vmem:[%s740_s25 + $0x48] sm:$0xff] %v585_v59   ;;  %v267_v5 = vmul.f32 %v706_v0, %v524_v61  ;;  %v302_v7 = vadd.f32 %v714_v6, %v266_v62  ;;  %v531_v8 = vunpack.c.l.bf16 %v630_v58  ;;  %v532_v9 = vunpack.c.h.bf16 %v630_v58 }
  0x2c   : > { %641 = vst [vmem:[%s740_s25 + $0x50] sm:$0xff] %v590_v1   ;;  %v595_v10 = vpack.c.bf16 %v333_v2, %v332_v60  ;;  %v268_v11 = vmul.f32 %v706_v0, %v527_v3  ;;  %v269_v12 = vmul.f32 %v706_v0, %v528_v4  ;;  %v535_v13 = vunpack.c.l.bf16 %v631_v63 }
  0x2d   : > { %v303_v14 = vadd.f32 %v714_v6, %v267_v5  ;;  %v334_v15 = vmax.f32 %v302_v7, 0.0  ;;  %v270_v16 = vmul.f32 %v706_v0, %v531_v8  ;;  %v271_v17 = vmul.f32 %v706_v0, %v532_v9 }
  0x2e   : > { %642 = vst [vmem:[%s740_s25 + $0x58] sm:$0xff] %v595_v10   ;;  %v304_v18 = vadd.f32 %v714_v6, %v268_v11  ;;  %v305_v19 = vadd.f32 %v714_v6, %v269_v12  ;;  %v536_v20 = vunpack.c.h.bf16 %v631_v63  ;;  %v272_v21 = vmul.f32 %v706_v0, %v535_v13 }
  0x2f   : > { %v335_v22 = vmax.f32 %v303_v14, 0.0  ;;  %v306_v23 = vadd.f32 %v714_v6, %v270_v16  ;;  %v307_v24 = vadd.f32 %v714_v6, %v271_v17 }
  0x30   : > { %v336_v25 = vmax.f32 %v304_v18, 0.0  ;;  %v337_v26 = vmax.f32 %v305_v19, 0.0  ;;  %v273_v27 = vmul.f32 %v706_v0, %v536_v20  ;;  %v308_v28 = vadd.f32 %v714_v6, %v272_v21 }
  0x31   : > { %v600_v29 = vpack.c.bf16 %v335_v22, %v334_v15  ;;  %v338_v30 = vmax.f32 %v306_v23, 0.0  ;;  %v339_v31 = vmax.f32 %v307_v24, 0.0 }
  0x32   : > { %v605_v32 = vpack.c.bf16 %v337_v26, %v336_v25  ;;  %v309_v33 = vadd.f32 %v714_v6, %v273_v27  ;;  %v340_v34 = vmax.f32 %v308_v28, 0.0 }
  0x33   : > { %643 = vst [vmem:[%s740_s25 + $0x60] sm:$0xff] %v600_v29   ;;  %v610_v35 = vpack.c.bf16 %v339_v31, %v338_v30 }
  0x34   : > { %644 = vst [vmem:[%s740_s25 + $0x68] sm:$0xff] %v605_v32   ;;  %v341_v36 = vmax.f32 %v309_v33, 0.0 }
  0x35   : > { %645 = vst [vmem:[%s740_s25 + $0x70] sm:$0xff] %v610_v35  }
  0x36   : > { %v615_v37 = vpack.c.bf16 %v341_v36, %v340_v34 }
  0x38   : > { %646 = vst [vmem:[%s740_s25 + $0x78] sm:$0xff] %v615_v37  }
  0x39 PF: > { %s13_s12 = sadd.s32 1, %s663_s12  }
  0x3a   : > { %p10_p4 = scmp.ge.s32.totalorder %s13_s12, 4  }
  0x3c   :  { %12 = sbr.rel (!%p10_p4) target bundleno = 1 (0x1), region = 62 }

// kernel: _lambda_.15
= control target key start
LH: loop header
LB: loop body
LE: loop exit
PB: predicated region body
PF: predicated region fallthrough
CT: control target
= control target key end

     0   :  { %s1737_s12 = smov 0   ;;  %s1739_s13 = smov 0   ;;  %s2173_s0 = inlined_call_operand.vmem [shape: bf16[4,512,64], index: 0, kind: input, shape index: {}]   ;;  %s2174_s1 = inlined_call_operand.vmem [shape: bf16[4,64,128], index: 1, kind: input, shape index: {}]   ;;  %s2175_s2 = inlined_call_operand.vmem [shape: bf16[4,512,128], index: 2, kind: output, shape index: {0}]   ;;  %s2176_s3 = inlined_call_operand.vmem [shape: f32[4,8,128], index: 3, kind: output, shape index: {1}]  }
   0x1   :  { %s1741_s14 = smov 0  }
   0x2 LB: > { %s26_s15 = sadd.s32 1, %s1711_s13  ;;  %p1240_p0 = scmp.ge.s32.totalorder %s1715_s14, 1  ;;  %s1715_s14 = sphi %s1741_s14, %s14_s14   ;;  %s1711_s13 = sphi %s1739_s13, %s2178_s13   ;;  %s1707_s12 = sphi %s1737_s12, %s2177_s12  }
   0x3   : > { %p28_p1 = scmp.ge.s32.totalorder %s26_s15, 4  ;;  %p171_p2 = scmp.lt.s32.totalorder %s1715_s14, 5 }
   0x5   : > { %s2180_s15 = smov (%p28_p1, %s26_s15), 0  ;;  %p172_p3 = pnand %p1240_p0, %p171_p2 }
   0x6   : > { %p213_p4 = scmp.lt.s32.totalorder (!%p172_p3), %s1707_s12, 3 }
   0x7   : > { %175 = sbr.rel (%p172_p3) target bundleno = 392 (0x188), region = 28 }
   0xc   : > { %s2182_s12 = smov (!%p213_p4, %s1707_s12), 3  ;;  %vm503_vm0 = vcmask 523264   ;;  %vm1099_vm1 = vcmask 1040384   ;;  %vm1101_vm2 = vcmask 1041408  }
   0xd   : > { %s1427_s16 = sshll.u32 %s2182_s12, 5  ;;  %s1426_s20 = sshll.u32 %s2182_s12, 8 }
   0xe   : > { %s226_s19 = scalar_lea.vmem %s2174_s1, %s1427_s16  ;;  %s1767_s23 = scalar_lea.vmem %s2173_s0, %s1426_s20 }
   0xf   : > { %v1464_v0 = vld [vmem:[%s226_s19 + $0x18] sm:$0xff]  ;;  %v1463_v1 = vld [vmem:[%s226_s19 + $0x10] sm:$0xff]  ;;  %v1462_v2 = vld [vmem:[%s226_s19 + $0x8] sm:$0xff]  ;;  %s1836_s26 = scalar_lea.vmem %s2175_s2, %s1426_s20  ;;  %s1247_s27 = sshll.u32 %s2182_s12, 3 }
  0x10   : > { %604 = vmatpush.bf16.msra.mxu0 %v1464_v0  ;;  %1656 = vmatpush.bf16.msra.mxu1 %v1464_v0  ;;  %v1461_v3 = vld [vmem:[%s226_s19] sm:$0xff]  ;;  %v1430_v6 = vld [vmem:[%s1767_s23 + $0x8] sm:$0xff]  ;;  %v1431_v9 = vld [vmem:[%s1767_s23 + $0x10] sm:$0xff]  ;;  %s240_s30 = scalar_lea.vmem %s2176_s3, %s1247_s27 }
  0x11   : > { %1657 = vmatpush.bf16.msra.mxu2 %v1464_v0  ;;  %1658 = vmatpush.bf16.msra.mxu3 %v1464_v0  ;;  %v1429_v4 = vld [vmem:[%s1767_s23] sm:$0xff]  ;;  %v1438_v7 = vld [vmem:[%s1767_s23 + $0x48] sm:$0xff]  ;;  %v1439_v10 = vld [vmem:[%s1767_s23 + $0x50] sm:$0xff] }
  0x12   : > { %v1437_v5 = vld [vmem:[%s1767_s23 + $0x40] sm:$0xff]  ;;  %v1446_v11 = vld [vmem:[%s1767_s23 + $0x88] sm:$0xff]  ;;  %v1432_v12 = vld [vmem:[%s1767_s23 + $0x18] sm:$0xff] }
  0x13   : > { %v1445_v8 = vld [vmem:[%s1767_s23 + $0x80] sm:$0xff]  ;;  %v1440_v13 = vld [vmem:[%s1767_s23 + $0x58] sm:$0xff]  ;;  %v1447_v14 = vld [vmem:[%s1767_s23 + $0x90] sm:$0xff] }
  0x14   : > { %605 = vmatpush.bf16.msra.mxu0 %v1463_v1  ;;  %1659 = vmatpush.bf16.msra.mxu1 %v1463_v1  ;;  %v1453_v15 = vld [vmem:[%s1767_s23 + $0xc0] sm:$0xff]  ;;  %v1448_v18 = vld [vmem:[%s1767_s23 + $0x98] sm:$0xff]  ;;  %v1454_v19 = vld [vmem:[%s1767_s23 + $0xc8] sm:$0xff] }
  0x15   : > { %1660 = vmatpush.bf16.msra.mxu2 %v1463_v1  ;;  %1661 = vmatpush.bf16.msra.mxu3 %v1463_v1  ;;  %v1433_v16 = vld [vmem:[%s1767_s23 + $0x20] sm:$0xff]  ;;  %v1434_v20 = vld [vmem:[%s1767_s23 + $0x28] sm:$0xff]  ;;  %v1455_v23 = vld [vmem:[%s1767_s23 + $0xd0] sm:$0xff] }
  0x16   : > { %v1441_v17 = vld [vmem:[%s1767_s23 + $0x60] sm:$0xff]  ;;  %v1442_v21 = vld [vmem:[%s1767_s23 + $0x68] sm:$0xff]  ;;  %v1435_v24 = vld [vmem:[%s1767_s23 + $0x30] sm:$0xff] }
  0x17   : > { %v1449_v22 = vld [vmem:[%s1767_s23 + $0xa0] sm:$0xff]  ;;  %v1443_v25 = vld [vmem:[%s1767_s23 + $0x70] sm:$0xff]  ;;  %v1450_v26 = vld [vmem:[%s1767_s23 + $0xa8] sm:$0xff] }
  0x18   : > { %606 = vmatpush.bf16.msra.mxu0 %v1462_v2  ;;  %1662 = vmatpush.bf16.msra.mxu1 %v1462_v2  ;;  %v1456_v27 = vld [vmem:[%s1767_s23 + $0xd8] sm:$0xff]  ;;  %v1451_v30 = vld [vmem:[%s1767_s23 + $0xb0] sm:$0xff]  ;;  %v1457_v31 = vld [vmem:[%s1767_s23 + $0xe0] sm:$0xff] }
  0x19   : > { %1663 = vmatpush.bf16.msra.mxu2 %v1462_v2  ;;  %1664 = vmatpush.bf16.msra.mxu3 %v1462_v2  ;;  %v1436_v28 = vld [vmem:[%s1767_s23 + $0x38] sm:$0xff]  ;;  %v1458_v35 = vld [vmem:[%s1767_s23 + $0xe8] sm:$0xff]  ;;  %v1459_v49 = vld [vmem:[%s1767_s23 + $0xf0] sm:$0xff] }
  0x1a   : > { %v1444_v29 = vld [vmem:[%s1767_s23 + $0x78] sm:$0xff] }
  0x1b   : > { %v1452_v34 = vld [vmem:[%s1767_s23 + $0xb8] sm:$0xff] }
  0x1c   : > { %607 = vmatpush.bf16.msra.mxu0 %v1461_v3  ;;  %1665 = vmatpush.bf16.msra.mxu1 %v1461_v3  ;;  %v1460_v1 = vld [vmem:[%s1767_s23 + $0xf8] sm:$0xff] }
  0x1d   : > { %1666 = vmatpush.bf16.msra.mxu2 %v1461_v3  ;;  %1667 = vmatpush.bf16.msra.mxu3 %v1461_v3 }
  0x1f   : > { %1392 = vmatmul.msk.bf16.vlgmr.msra.gmra.mxu0 %vm503_vm0, %v1429_v4  ;;  %1400 = vmatmul.msk.bf16.vlgmr.msra.gmra.mxu1 %vm503_vm0, %v1437_v5 }
  0x20   : > { %1408 = vmatmul.msk.bf16.vlgmr.msra.gmra.mxu2 %vm503_vm0, %v1445_v8  ;;  %1416 = vmatmul.msk.bf16.vlgmr.msra.gmra.mxu3 %vm503_vm0, %v1453_v15 }
  0x2f   : > { %1393 = vmatmul.msk.bf16.gmra.mxu0 %vm503_vm0, %v1430_v6  ;;  %1401 = vmatmul.msk.bf16.gmra.mxu1 %vm503_vm0, %v1438_v7 }
  0x30   : > { %1409 = vmatmul.msk.bf16.gmra.mxu2 %vm503_vm0, %v1446_v11  ;;  %1417 = vmatmul.msk.bf16.gmra.mxu3 %vm503_vm0, %v1454_v19 }
  0x3f   : > { %1394 = vmatmul.msk.bf16.gmra.mxu0 %vm503_vm0, %v1431_v9  ;;  %1402 = vmatmul.msk.bf16.gmra.mxu1 %vm503_vm0, %v1439_v10 }
  0x40   : > { %1410 = vmatmul.msk.bf16.gmra.mxu2 %vm503_vm0, %v1447_v14  ;;  %1418 = vmatmul.msk.bf16.gmra.mxu3 %vm503_vm0, %v1455_v23 }
  0x4f   : > { %1395 = vmatmul.msk.bf16.gmra.mxu0 %vm503_vm0, %v1432_v12  ;;  %1403 = vmatmul.msk.bf16.gmra.mxu1 %vm503_vm0, %v1440_v13 }
  0x50   : > { %1411 = vmatmul.msk.bf16.gmra.mxu2 %vm503_vm0, %v1448_v18  ;;  %1419 = vmatmul.msk.bf16.gmra.mxu3 %vm503_vm0, %v1456_v27 }
  0x5f   : > { %1396 = vmatmul.msk.bf16.gmra.mxu0 %vm503_vm0, %v1433_v16  ;;  %1404 = vmatmul.msk.bf16.gmra.mxu1 %vm503_vm0, %v1441_v17 }
  0x60   : > { %1412 = vmatmul.msk.bf16.gmra.mxu2 %vm503_vm0, %v1449_v22  ;;  %1420 = vmatmul.msk.bf16.gmra.mxu3 %vm503_vm0, %v1457_v31 }
  0x6f   : > { %1397 = vmatmul.msk.bf16.gmra.mxu0 %vm503_vm0, %v1434_v20  ;;  %1405 = vmatmul.msk.bf16.gmra.mxu1 %vm503_vm0, %v1442_v21 }
  0x70   : > { %1413 = vmatmul.msk.bf16.gmra.mxu2 %vm503_vm0, %v1450_v26  ;;  %1421 = vmatmul.msk.bf16.gmra.mxu3 %vm503_vm0, %v1458_v35 }
  0x7f   : > { %1398 = vmatmul.msk.bf16.gmra.mxu0 %vm503_vm0, %v1435_v24  ;;  %1406 = vmatmul.msk.bf16.gmra.mxu1 %vm503_vm0, %v1443_v25 }
  0x80   : > { %1414 = vmatmul.msk.bf16.gmra.mxu2 %vm503_vm0, %v1451_v30  ;;  %1422 = vmatmul.msk.bf16.gmra.mxu3 %vm503_vm0, %v1459_v49 }
  0x8f   : > { %1399 = vmatmul.msk.bf16.gmra.mxu0 %vm503_vm0, %v1436_v28  ;;  %1407 = vmatmul.msk.bf16.gmra.mxu1 %vm503_vm0, %v1444_v29 }
  0x90   : > { %1415 = vmatmul.msk.bf16.gmra.mxu2 %vm503_vm0, %v1452_v34  ;;  %1423 = vmatmul.msk.bf16.gmra.mxu3 %vm503_vm0, %v1460_v1 }
  0x9c   : > { %v609_v32 = vpop.f32.mrf.mxu0  ;;  %v1825_v33 = vpop.f32.mrf.mxu1 }
  0x9d   : > { %v966_v36 = vmul.f32 %v609_v32, %v609_v32 }
  0xa3   : > { %v1852_v56 = vpop.f32.mrf.mxu2  ;;  %v1890_v16 = vpop.f32.mrf.mxu3 }
  0xa4   : > { %v611_v37 = vpop.f32.mrf.mxu0  ;;  %v1838_v38 = vpop.f32.mrf.mxu1 }
  0xa5   : > { %v1468_v39 = vpack.c.bf16 %v611_v37, %v609_v32  ;;  %v897_v40 = vadd.f32 %v611_v37, %v609_v32  ;;  %v967_v41 = vmul.f32 %v611_v37, %v611_v37  ;;  %v1508_v42 = vpack.c.bf16 %v1838_v38, %v1825_v33 }
  0xa7   : > { %1469 = vst [vmem:[%s1836_s26] sm:$0xff] %v1468_v39   ;;  %v1030_v43 = vadd.f32 %v967_v41, %v966_v36 }
  0xa8   : > { %1632 = vst [vmem:[%s1836_s26 + $0x40] sm:$0xff] %v1508_v42  }
  0xab   : > { %v1860_v62 = vpop.f32.mrf.mxu2  ;;  %v1898_v20 = vpop.f32.mrf.mxu3 }
  0xac   : > { %v614_v44 = vpop.f32.mrf.mxu0  ;;  %v1844_v45 = vpop.f32.mrf.mxu1  ;;  %v1548_v63 = vpack.c.bf16 %v1860_v62, %v1852_v56  ;;  %v1588_v22 = vpack.c.bf16 %v1898_v20, %v1890_v16 }
  0xad   : > { %v898_v46 = vadd.f32 %v897_v40, %v614_v44  ;;  %v968_v47 = vmul.f32 %v614_v44, %v614_v44 }
  0xae   : > { %1640 = vst [vmem:[%s1836_s26 + $0x80] sm:$0xff] %v1548_v63  }
  0xaf   : > { %v1031_v48 = vadd.f32 %v1030_v43, %v968_v47  ;;  %1648 = vst [vmem:[%s1836_s26 + $0xc0] sm:$0xff] %v1588_v22  }
  0xb3   : > { %v1873_v6 = vpop.f32.mrf.mxu2  ;;  %v1912_v28 = vpop.f32.mrf.mxu3 }
  0xb4   : > { %v616_v50 = vpop.f32.mrf.mxu0  ;;  %v1848_v51 = vpop.f32.mrf.mxu1 }
  0xb5   : > { %v1473_v52 = vpack.c.bf16 %v616_v50, %v614_v44  ;;  %v899_v53 = vadd.f32 %v898_v46, %v616_v50  ;;  %v969_v54 = vmul.f32 %v616_v50, %v616_v50  ;;  %v1513_v55 = vpack.c.bf16 %v1848_v51, %v1844_v45 }
  0xb7   : > { %1625 = vst [vmem:[%s1836_s26 + $0x8] sm:$0xff] %v1473_v52   ;;  %v1032_v57 = vadd.f32 %v1031_v48, %v969_v54 }
  0xb8   : > { %1633 = vst [vmem:[%s1836_s26 + $0x48] sm:$0xff] %v1513_v55  }
  0xbb   : > { %v1879_v9 = vpop.f32.mrf.mxu2  ;;  %v1920_v32 = vpop.f32.mrf.mxu3 }
  0xbc   : > { %v619_v58 = vpop.f32.mrf.mxu0  ;;  %v1856_v59 = vpop.f32.mrf.mxu1  ;;  %v1553_v10 = vpack.c.bf16 %v1879_v9, %v1873_v6  ;;  %v1593_v35 = vpack.c.bf16 %v1920_v32, %v1912_v28 }
  0xbd   : > { %v1858_v60 = vadd.f32 %v899_v53, %v619_v58  ;;  %v970_v61 = vmul.f32 %v619_v58, %v619_v58 }
  0xbe   : > { %1641 = vst [vmem:[%s1836_s26 + $0x88] sm:$0xff] %v1553_v10  }
  0xbf   : > { %v1864_v0 = vadd.f32 %v1032_v57, %v970_v61  ;;  %1649 = vst [vmem:[%s1836_s26 + $0xc8] sm:$0xff] %v1593_v35  }
  0xc3   : > { %v1888_v15 = vpop.f32.mrf.mxu2  ;;  %v1934_v42 = vpop.f32.mrf.mxu3 }
  0xc4   : > { %v621_v2 = vpop.f32.mrf.mxu0  ;;  %v1869_v3 = vpop.f32.mrf.mxu1 }
  0xc5   : > { %v1478_v4 = vpack.c.bf16 %v621_v2, %v619_v58  ;;  %v1518_v5 = vpack.c.bf16 %v1869_v3, %v1856_v59  ;;  %v971_v48 = vmul.f32 %v621_v2, %v621_v2  ;;  %v901_v53 = vadd.f32 %v1858_v60, %v621_v2 }
  0xc7   : > { %1626 = vst [vmem:[%s1836_s26 + $0x10] sm:$0xff] %v1478_v4   ;;  %v1034_v54 = vadd.f32 %v1864_v0, %v971_v48 }
  0xc8   : > { %1634 = vst [vmem:[%s1836_s26 + $0x50] sm:$0xff] %v1518_v5  }
  0xcb   : > { %v1896_v19 = vpop.f32.mrf.mxu2  ;;  %v1942_v47 = vpop.f32.mrf.mxu3 }
  0xcc   : > { %v624_v7 = vpop.f32.mrf.mxu0  ;;  %v1877_v8 = vpop.f32.mrf.mxu1  ;;  %v1558_v21 = vpack.c.bf16 %v1896_v19, %v1888_v15  ;;  %v1598_v50 = vpack.c.bf16 %v1942_v47, %v1934_v42 }
  0xcd   : > { %v972_v52 = vmul.f32 %v624_v7, %v624_v7  ;;  %v902_v57 = vadd.f32 %v901_v53, %v624_v7 }
  0xce   : > { %1642 = vst [vmem:[%s1836_s26 + $0x90] sm:$0xff] %v1558_v21  }
  0xcf   : > { %1650 = vst [vmem:[%s1836_s26 + $0xd0] sm:$0xff] %v1598_v50   ;;  %v1035_v58 = vadd.f32 %v1034_v54, %v972_v52 }
  0xd3   : > { %v1910_v27 = vpop.f32.mrf.mxu2  ;;  %v1958_v60 = vpop.f32.mrf.mxu3 }
  0xd4   : > { %v626_v11 = vpop.f32.mrf.mxu0  ;;  %v1884_v12 = vpop.f32.mrf.mxu1 }
  0xd5   : > { %v1483_v13 = vpack.c.bf16 %v626_v11, %v624_v7  ;;  %v1523_v14 = vpack.c.bf16 %v1884_v12, %v1877_v8  ;;  %v973_v55 = vmul.f32 %v626_v11, %v626_v11  ;;  %v903_v4 = vadd.f32 %v902_v57, %v626_v11 }
  0xd7   : > { %1627 = vst [vmem:[%s1836_s26 + $0x18] sm:$0xff] %v1483_v13   ;;  %v1036_v2 = vadd.f32 %v1035_v58, %v973_v55 }
  0xd8   : > { %1635 = vst [vmem:[%s1836_s26 + $0x58] sm:$0xff] %v1523_v14  }
  0xdb   : > { %v1918_v31 = vpop.f32.mrf.mxu2  ;;  %v1966_v50 = vpop.f32.mrf.mxu3 }
  0xdc   : > { %v629_v17 = vpop.f32.mrf.mxu0  ;;  %v1894_v18 = vpop.f32.mrf.mxu1  ;;  %v1563_v34 = vpack.c.bf16 %v1918_v31, %v1910_v27  ;;  %v1603_v53 = vpack.c.bf16 %v1966_v50, %v1958_v60 }
  0xdd   : > { %v974_v61 = vmul.f32 %v629_v17, %v629_v17  ;;  %v904_v0 = vadd.f32 %v903_v4, %v629_v17 }
  0xde   : > { %1643 = vst [vmem:[%s1836_s26 + $0x98] sm:$0xff] %v1563_v34  }
  0xdf   : > { %v1037_v7 = vadd.f32 %v1036_v2, %v974_v61  ;;  %1651 = vst [vmem:[%s1836_s26 + $0xd8] sm:$0xff] %v1603_v53  }
  0xe3   : > { %v1932_v41 = vpop.f32.mrf.mxu2 }
  0xe4   : > { %v631_v23 = vpop.f32.mrf.mxu0  ;;  %v1906_v24 = vpop.f32.mrf.mxu1 }
  0xe5   : > { %v1488_v25 = vpack.c.bf16 %v631_v23, %v629_v17  ;;  %v1528_v26 = vpack.c.bf16 %v1906_v24, %v1894_v18  ;;  %v975_v14 = vmul.f32 %v631_v23, %v631_v23  ;;  %v905_v22 = vadd.f32 %v904_v0, %v631_v23 }
  0xe7   : > { %1628 = vst [vmem:[%s1836_s26 + $0x20] sm:$0xff] %v1488_v25   ;;  %v1038_v25 = vadd.f32 %v1037_v7, %v975_v14  ;;  %v1980_v7 = vpop.f32.mrf.mxu3 }
  0xe8   : > { %1636 = vst [vmem:[%s1836_s26 + $0x60] sm:$0xff] %v1528_v26  }
  0xeb   : > { %v1940_v46 = vpop.f32.mrf.mxu2 }
  0xec   : > { %v634_v29 = vpop.f32.mrf.mxu0  ;;  %v1916_v30 = vpop.f32.mrf.mxu1  ;;  %v1568_v49 = vpack.c.bf16 %v1940_v46, %v1932_v41 }
  0xed   : > { %v976_v21 = vmul.f32 %v634_v29, %v634_v29  ;;  %v906_v11 = vadd.f32 %v905_v22, %v634_v29 }
  0xee   : > { %1644 = vst [vmem:[%s1836_s26 + $0xa0] sm:$0xff] %v1568_v49  }
  0xef   : > { %v1039_v34 = vadd.f32 %v1038_v25, %v976_v21  ;;  %v983_v25 = vmul.f32 %v1838_v38, %v1838_v38 }
  0xf3   : > { %v1956_v13 = vpop.f32.mrf.mxu2 }
  0xf4   : > { %v636_v36 = vpop.f32.mrf.mxu0  ;;  %v1928_v37 = vpop.f32.mrf.mxu1 }
  0xf5   : > { %v1493_v39 = vpack.c.bf16 %v636_v36, %v634_v29  ;;  %v1533_v40 = vpack.c.bf16 %v1928_v37, %v1916_v30  ;;  %v977_v26 = vmul.f32 %v636_v36, %v636_v36  ;;  %v907_v48 = vadd.f32 %v906_v11, %v636_v36 }
  0xf7   : > { %1629 = vst [vmem:[%s1836_s26 + $0x28] sm:$0xff] %v1493_v39   ;;  %v1040_v17 = vadd.f32 %v1039_v34, %v977_v26  ;;  %v984_v34 = vmul.f32 %v1844_v45, %v1844_v45 }
  0xf8   : > { %1637 = vst [vmem:[%s1836_s26 + $0x68] sm:$0xff] %v1533_v40  }
  0xfb   : > { %v1964_v49 = vpop.f32.mrf.mxu2 }
  0xfc   : > { %v639_v43 = vpop.f32.mrf.mxu0  ;;  %v1938_v44 = vpop.f32.mrf.mxu1  ;;  %v1573_v23 = vpack.c.bf16 %v1964_v49, %v1956_v13 }
  0xfd   : > { %v978_v35 = vmul.f32 %v639_v43, %v639_v43  ;;  %v908_v29 = vadd.f32 %v907_v48, %v639_v43  ;;  %v985_v48 = vmul.f32 %v1848_v51, %v1848_v51 }
  0xfe   : > { %1645 = vst [vmem:[%s1836_s26 + $0xa8] sm:$0xff] %v1573_v23   ;;  %v1998_v23 = vpop.f32.mrf.mxu3 }
  0xff   : > { %v1041_v54 = vadd.f32 %v1040_v17, %v978_v35  ;;  %v1608_v53 = vpack.c.bf16 %v1998_v23, %v1980_v7 }
 0x101   : > { %1652 = vst [vmem:[%s1836_s26 + $0xe0] sm:$0xff] %v1608_v53  }
 0x104   : > { %v641_v63 = vpop.f32.mrf.mxu0  ;;  %v1952_v1 = vpop.f32.mrf.mxu1 }
 0x105   : > { %v1498_v5 = vpack.c.bf16 %v641_v63, %v639_v43  ;;  %v1538_v10 = vpack.c.bf16 %v1952_v1, %v1938_v44  ;;  %v979_v52 = vmul.f32 %v641_v63, %v641_v63  ;;  %v909_v57 = vadd.f32 %v908_v29, %v641_v63  ;;  %v1978_v43 = vpop.f32.mrf.mxu2 }
 0x106   : > { %v982_v63 = vmul.f32 %v1825_v33, %v1825_v33  ;;  %v995_v53 = vmul.f32 %v1952_v1, %v1952_v1 }
 0x107   : > { %1630 = vst [vmem:[%s1836_s26 + $0x30] sm:$0xff] %v1498_v5   ;;  %v1042_v36 = vadd.f32 %v1041_v54, %v979_v52 }
 0x108   : > { %1638 = vst [vmem:[%s1836_s26 + $0x70] sm:$0xff] %v1538_v10  }
 0x10c   : > { %v644_v39 = vpop.f32.mrf.mxu0  ;;  %v1962_v40 = vpop.f32.mrf.mxu1 }
 0x10d   : > { %v980_v55 = vmul.f32 %v644_v39, %v644_v39  ;;  %v910_v58 = vadd.f32 %v909_v57, %v644_v39  ;;  %v1996_v52 = vpop.f32.mrf.mxu2 }
 0x10f   : > { %v1043_v61 = vadd.f32 %v1042_v36, %v980_v55  ;;  %v988_v36 = vmul.f32 %v1877_v8, %v1877_v8 }
 0x114   : > { %v646_v4 = vpop.f32.mrf.mxu0  ;;  %v1974_v5 = vpop.f32.mrf.mxu1 }
 0x115   : > { %v1503_v10 = vpack.c.bf16 %v646_v4, %v644_v39  ;;  %v911_v2 = vadd.f32 %v910_v58, %v646_v4  ;;  %v981_v14 = vmul.f32 %v646_v4, %v646_v4  ;;  %v1543_v0 = vpack.c.bf16 %v1974_v5, %v1962_v40 }
 0x116   : > { %v989_v4 = vmul.f32 %v1884_v12, %v1884_v12 }
 0x117   : > { %1631 = vst [vmem:[%s1836_s26 + $0x38] sm:$0xff] %v1503_v10   ;;  %v912_v21 = vadd.f32 %v911_v2, %v1825_v33  ;;  %v1044_v22 = vadd.f32 %v1043_v61, %v981_v14  ;;  %v2018_v2 = vpop.f32.mrf.mxu2  ;;  %v2020_v14 = vpop.f32.mrf.mxu3 }
 0x118   : > { %1639 = vst [vmem:[%s1836_s26 + $0x78] sm:$0xff] %v1543_v0  }
 0x119   : > { %v913_v26 = vadd.f32 %v912_v21, %v1838_v38  ;;  %v1045_v11 = vadd.f32 %v1044_v22, %v982_v63  ;;  %v1578_v38 = vpack.c.bf16 %v1996_v52, %v1978_v43  ;;  %v991_v21 = vmul.f32 %v1906_v24, %v1906_v24 }
 0x11b   : > { %v914_v35 = vadd.f32 %v913_v26, %v1844_v45  ;;  %v1046_v39 = vadd.f32 %v1045_v11, %v983_v25  ;;  %v986_v45 = vmul.f32 %v1856_v59, %v1856_v59  ;;  %1646 = vst [vmem:[%s1836_s26 + $0xb0] sm:$0xff] %v1578_v38   ;;  %v993_v11 = vmul.f32 %v1928_v37, %v1928_v37 }
 0x11d   : > { %v915_v33 = vadd.f32 %v914_v35, %v1848_v51  ;;  %v1047_v17 = vadd.f32 %v1046_v39, %v984_v34  ;;  %v987_v51 = vmul.f32 %v1869_v3, %v1869_v3 }
 0x11f   : > { %v916_v29 = vadd.f32 %v915_v33, %v1856_v59  ;;  %v1048_v54 = vadd.f32 %v1047_v17, %v985_v48  ;;  %v2034_v35 = vpop.f32.mrf.mxu2  ;;  %v2036_v39 = vpop.f32.mrf.mxu3  ;;  %v994_v33 = vmul.f32 %v1938_v44, %v1938_v44 }
 0x120   : > { %v1613_v48 = vpack.c.bf16 %v2036_v39, %v2020_v14 }
 0x121   : > { %v917_v55 = vadd.f32 %v916_v29, %v1869_v3  ;;  %v1049_v57 = vadd.f32 %v1048_v54, %v986_v45  ;;  %v990_v3 = vmul.f32 %v1894_v18, %v1894_v18  ;;  %v996_v54 = vmul.f32 %v1962_v40, %v1962_v40 }
 0x122   : > { %1653 = vst [vmem:[%s1836_s26 + $0xe8] sm:$0xff] %v1613_v48   ;;  %v1006_v48 = vmul.f32 %v1932_v41, %v1932_v41 }
 0x123   : > { %v1050_v58 = vadd.f32 %v1049_v57, %v987_v51  ;;  %v918_v61 = vadd.f32 %v917_v55, %v1877_v8 }
 0x125   : > { %v919_v59 = vadd.f32 %v918_v61, %v1884_v12  ;;  %v1051_v10 = vadd.f32 %v1050_v58, %v988_v36  ;;  %v992_v12 = vmul.f32 %v1916_v30, %v1916_v30  ;;  %v998_v36 = vmul.f32 %v1852_v56, %v1852_v56 }
 0x126   : > { %v999_v61 = vmul.f32 %v1860_v62, %v1860_v62 }
 0x127   : > { %v920_v0 = vadd.f32 %v919_v59, %v1894_v18  ;;  %v1052_v63 = vadd.f32 %v1051_v10, %v989_v4  ;;  %v2056_v57 = vpop.f32.mrf.mxu3  ;;  %v1000_v59 = vmul.f32 %v1873_v6, %v1873_v6 }
 0x129   : > { %v921_v8 = vadd.f32 %v920_v0, %v1906_v24  ;;  %v1053_v22 = vadd.f32 %v1052_v63, %v990_v3  ;;  %v1583_v24 = vpack.c.bf16 %v2034_v35, %v2018_v2  ;;  %v1001_v3 = vmul.f32 %v1879_v9, %v1879_v9 }
 0x12b   : > { %v922_v25 = vadd.f32 %v921_v8, %v1916_v30  ;;  %v1054_v26 = vadd.f32 %v1053_v22, %v991_v21  ;;  %1647 = vst [vmem:[%s1836_s26 + $0xb8] sm:$0xff] %v1583_v24  }
 0x12d   : > { %v923_v18 = vadd.f32 %v922_v25, %v1928_v37  ;;  %v1055_v34 = vadd.f32 %v1054_v26, %v992_v12 }
 0x12f   : > { %v924_v30 = vadd.f32 %v923_v18, %v1938_v44  ;;  %v1056_v17 = vadd.f32 %v1055_v34, %v993_v11  ;;  %v997_v44 = vmul.f32 %v1974_v5, %v1974_v5  ;;  %v2070_v63 = vpop.f32.mrf.mxu3  ;;  %v1005_v18 = vmul.f32 %v1918_v31, %v1918_v31 }
 0x130   : > { %v1618_v21 = vpack.c.bf16 %v2070_v63, %v2056_v57 }
 0x131   : > { %v1057_v38 = vadd.f32 %v1056_v17, %v994_v33  ;;  %v925_v37 = vadd.f32 %v924_v30, %v1952_v1  ;;  %v1007_v33 = vmul.f32 %v1940_v46, %v1940_v46 }
 0x132   : > { %1654 = vst [vmem:[%s1836_s26 + $0xf0] sm:$0xff] %v1618_v21  }
 0x133   : > { %v1058_v45 = vadd.f32 %v1057_v38, %v995_v53  ;;  %v926_v29 = vadd.f32 %v925_v37, %v1962_v40  ;;  %v1008_v38 = vmul.f32 %v1956_v13, %v1956_v13 }
 0x135   : > { %v1059_v51 = vadd.f32 %v1058_v45, %v996_v54  ;;  %v927_v55 = vadd.f32 %v926_v29, %v1974_v5  ;;  %v1009_v45 = vmul.f32 %v1964_v49, %v1964_v49 }
 0x137   : > { %v928_v1 = vadd.f32 %v927_v55, %v1852_v56  ;;  %v1060_v58 = vadd.f32 %v1059_v51, %v997_v44  ;;  %v2087_v24 = vpop.f32.mrf.mxu3 }
 0x139   : > { %v929_v40 = vadd.f32 %v928_v1, %v1860_v62  ;;  %v1061_v4 = vadd.f32 %v1060_v58, %v998_v36  ;;  %v1002_v62 = vmul.f32 %v1888_v15, %v1888_v15  ;;  %v1011_v36 = vmul.f32 %v1996_v52, %v1996_v52 }
 0x13a   : > { %v1012_v58 = vmul.f32 %v2018_v2, %v2018_v2 }
 0x13b   : > { %v930_v5 = vadd.f32 %v929_v40, %v1873_v6  ;;  %v1062_v10 = vadd.f32 %v1061_v4, %v999_v61  ;;  %v1003_v6 = vmul.f32 %v1896_v19, %v1896_v19  ;;  %v1013_v4 = vmul.f32 %v2034_v35, %v2034_v35 }
 0x13d   : > { %v931_v0 = vadd.f32 %v930_v5, %v1879_v9  ;;  %v1063_v56 = vadd.f32 %v1062_v10, %v1000_v59  ;;  %v1004_v9 = vmul.f32 %v1910_v27, %v1910_v27 }
 0x13f   : > { %v932_v8 = vadd.f32 %v931_v0, %v1888_v15  ;;  %v1064_v22 = vadd.f32 %v1063_v56, %v1001_v3  ;;  %v766_v29 = vpop.f32.mrf.mxu3 }
 0x140   : > { %v1623_v54 = vpack.c.bf16 %v766_v29, %v2087_v24 }
 0x141   : > { %v933_v12 = vadd.f32 %v932_v8, %v1896_v19  ;;  %v1065_v25 = vadd.f32 %v1064_v22, %v1002_v62 }
 0x142   : > { %1655 = vst [vmem:[%s1836_s26 + $0xf8] sm:$0xff] %v1623_v54   ;;  %v1029_v54 = vmul.f32 %v766_v29, %v766_v29 }
 0x143   : > { %v1066_v26 = vadd.f32 %v1065_v25, %v1003_v6  ;;  %v934_v11 = vadd.f32 %v933_v12, %v1910_v27 }
 0x145   : > { %v935_v34 = vadd.f32 %v934_v11, %v1918_v31  ;;  %v1067_v15 = vadd.f32 %v1066_v26, %v1004_v9 }
 0x147   : > { %v936_v19 = vadd.f32 %v935_v34, %v1932_v41  ;;  %v1068_v30 = vadd.f32 %v1067_v15, %v1005_v18 }
 0x149   : > { %v937_v27 = vadd.f32 %v936_v19, %v1940_v46  ;;  %v1069_v17 = vadd.f32 %v1068_v30, %v1006_v48  ;;  %v1010_v46 = vmul.f32 %v1978_v43, %v1978_v43 }
 0x14b   : > { %v938_v31 = vadd.f32 %v937_v27, %v1956_v13  ;;  %v1070_v37 = vadd.f32 %v1069_v17, %v1007_v33  ;;  %v1025_v33 = vmul.f32 %v2036_v39, %v2036_v39 }
 0x14d   : > { %v939_v53 = vadd.f32 %v938_v31, %v1964_v49  ;;  %v1071_v41 = vadd.f32 %v1070_v37, %v1008_v38  ;;  %v1026_v38 = vmul.f32 %v2056_v57, %v2056_v57  ;;  %v1027_v37 = vmul.f32 %v2070_v63, %v2070_v63 }
 0x14f   : > { %v1072_v51 = vadd.f32 %v1071_v41, %v1009_v45  ;;  %v940_v55 = vadd.f32 %v939_v53, %v1978_v43  ;;  %v1014_v43 = vmul.f32 %v1890_v16, %v1890_v16  ;;  %v1028_v45 = vmul.f32 %v2087_v24, %v2087_v24 }
 0x151   : > { %v1073_v44 = vadd.f32 %v1072_v51, %v1010_v46  ;;  %v941_v13 = vadd.f32 %v940_v55, %v1996_v52  ;;  %v1015_v52 = vmul.f32 %v1898_v20, %v1898_v20 }
 0x153   : > { %v1074_v1 = vadd.f32 %v1073_v44, %v1011_v36  ;;  %v942_v49 = vadd.f32 %v941_v13, %v2018_v2  ;;  %v1016_v2 = vmul.f32 %v1912_v28, %v1912_v28 }
 0x155   : > { %v1075_v61 = vadd.f32 %v1074_v1, %v1012_v58  ;;  %v943_v40 = vadd.f32 %v942_v49, %v2034_v35  ;;  %v1017_v35 = vmul.f32 %v1920_v32, %v1920_v32 }
 0x157   : > { %v944_v59 = vadd.f32 %v943_v40, %v1890_v16  ;;  %v1076_v5 = vadd.f32 %v1075_v61, %v1013_v4  ;;  %v1018_v16 = vmul.f32 %v1934_v42, %v1934_v42 }
 0x159   : > { %v945_v10 = vadd.f32 %v944_v59, %v1898_v20  ;;  %v1077_v3 = vadd.f32 %v1076_v5, %v1014_v43  ;;  %v1019_v20 = vmul.f32 %v1942_v47, %v1942_v47 }
 0x15b   : > { %v946_v0 = vadd.f32 %v945_v10, %v1912_v28  ;;  %v1078_v56 = vadd.f32 %v1077_v3, %v1015_v52  ;;  %v1020_v28 = vmul.f32 %v1958_v60, %v1958_v60 }
 0x15d   : > { %v947_v21 = vadd.f32 %v946_v0, %v1920_v32  ;;  %v1079_v62 = vadd.f32 %v1078_v56, %v1016_v2  ;;  %v1021_v32 = vmul.f32 %v1966_v50, %v1966_v50 }
 0x15f   : > { %v948_v8 = vadd.f32 %v947_v21, %v1934_v42  ;;  %v1080_v22 = vadd.f32 %v1079_v62, %v1017_v35  ;;  %v1022_v42 = vmul.f32 %v1980_v7, %v1980_v7 }
 0x161   : > { %v949_v6 = vadd.f32 %v948_v8, %v1942_v47  ;;  %v1081_v12 = vadd.f32 %v1080_v22, %v1018_v16  ;;  %v1023_v47 = vmul.f32 %v1998_v23, %v1998_v23 }
 0x163   : > { %v1082_v25 = vadd.f32 %v1081_v12, %v1019_v20  ;;  %v950_v9 = vadd.f32 %v949_v6, %v1958_v60  ;;  %v1024_v60 = vmul.f32 %v2020_v14, %v2020_v14 }
 0x165   : > { %v951_v26 = vadd.f32 %v950_v9, %v1966_v50  ;;  %v1083_v11 = vadd.f32 %v1082_v25, %v1020_v28 }
 0x167   : > { %v952_v18 = vadd.f32 %v951_v26, %v1980_v7  ;;  %v1084_v34 = vadd.f32 %v1083_v11, %v1021_v32 }
 0x169   : > { %v953_v15 = vadd.f32 %v952_v18, %v1998_v23  ;;  %v1085_v48 = vadd.f32 %v1084_v34, %v1022_v42 }
 0x16b   : > { %v954_v19 = vadd.f32 %v953_v15, %v2020_v14  ;;  %v1086_v30 = vadd.f32 %v1085_v48, %v1023_v47 }
 0x16d   : > { %v955_v50 = vadd.f32 %v954_v19, %v2036_v39  ;;  %v1087_v27 = vadd.f32 %v1086_v30, %v1024_v60 }
 0x16f   : > { %v1088_v7 = vadd.f32 %v1087_v27, %v1025_v33  ;;  %v956_v17 = vadd.f32 %v955_v50, %v2056_v57 }
 0x171   : > { %v1089_v23 = vadd.f32 %v1088_v7, %v1026_v38  ;;  %v957_v31 = vadd.f32 %v956_v17, %v2070_v63 }
 0x173   : > { %v1090_v14 = vadd.f32 %v1089_v23, %v1027_v37  ;;  %v958_v53 = vadd.f32 %v957_v31, %v2087_v24 }
 0x175   : > { %v1091_v39 = vadd.f32 %v1090_v14, %v1028_v45  ;;  %v959_v41 = vadd.f32 %v958_v53, %v766_v29 }
 0x177   : > { %v960_v51 = vrot.slane %v959_v41, 4  ;;  %v1092_v55 = vadd.f32 %v1091_v39, %v1029_v54 }
 0x179   : > { %v961_v46 = vadd.f32 %v960_v51, %v959_v41  ;;  %v1093_v57 = vrot.slane %v1092_v55, 4 }
 0x17b   : > { %v962_v44 = vrot.slane %v961_v46, 2  ;;  %v1094_v13 = vadd.f32 %v1093_v57, %v1092_v55 }
 0x17d   : > { %v963_v36 = vadd.f32 %v962_v44, %v961_v46  ;;  %v1095_v1 = vrot.slane %v1094_v13, 2 }
 0x17f   : > { %v964_v49 = vrot.slane %v963_v36, 1  ;;  %v1096_v63 = vadd.f32 %v1095_v1, %v1094_v13 }
 0x181   : > { %v1097_v58 = vrot.slane %v1096_v63, 1  ;;  %v965_v61 = vadd.f32 %v964_v49, %v963_v36 }
 0x183   : > { %v1098_v40 = vadd.f32 %v1097_v58, %v1096_v63 }
 0x185   : > { %v1100_v24 = vsel %vm1099_vm1, %v965_v61, %v1098_v40 }
 0x186   : > { %v1102_v29 = vsel %vm1101_vm2, %v1100_v24, 0.0 }
 0x187   : > { %1105 = vst [vmem:[%s240_s30] sm:$0xff] %v1102_v29 }
 0x188 PF: > { %s14_s14 = sadd.s32 1, %s1715_s14   ;;  %s2177_s12 = smov %s1711_s13 }
 0x189   : > { %p11_p5 = scmp.ge.s32.totalorder %s14_s14, 6   ;;  %s2178_s13 = smov %s2180_s15 }
 0x18b   :  { %13 = sbr.rel (!%p11_p5) target bundleno = 2 (0x2), region = 77 }

// kernel: _lambda_.16
= control target key start
LH: loop header
LB: loop body
LE: loop exit
PB: predicated region body
PF: predicated region fallthrough
CT: control target
= control target key end

     0   :  { %s1887_s12 = smov 0   ;;  %s2319_s0 = inlined_call_operand.vmem [shape: bf16[2048,128], index: 0, kind: input, shape index: {}]   ;;  %s2320_s1 = inlined_call_operand.vmem [shape: f32[1,128], index: 1, kind: input, shape index: {}]   ;;  %s2321_s2 = inlined_call_operand.vmem [shape: f32[1,128], index: 2, kind: input, shape index: {}]   ;;  %s2322_s3 = inlined_call_operand.vmem [shape: bf16[2048,128], index: 3, kind: output, shape index: {}]  }
   0x1 LB: > { %s1134_s13 = sadd.s32 4294967295, %s1865_s12   ;;  %p1138_p0 = scmp.ge.s32.totalorder %s1865_s12, 1  ;;  %s1865_s12 = sphi %s1887_s12, %s13_s12  }
   0x2   : > { %p138_p1 = scmp.lt.s32.totalorder %s1865_s12, 3 }
   0x4   : > { %p139_p2 = pnand %p1138_p0, %p138_p1 }
   0x5   : > { %s1139_s14 = sshll.u32 (!%p139_p2), %s1134_s13, 7 }
   0x6   : > { %142 = sbr.rel (%p139_p2) target bundleno = 165 (0xa5), region = 32  ;;  %p163_p3 = scmp.lt.s32.totalorder (!%p139_p2), %s1139_s14, 255 }
   0xb   : > { %s2324_s14 = smov (!%p163_p3, %s1139_s14), 255  ;;  %v1908_v0 = vld [vmem:[%s2320_s1] ss:$0 sm:$0xff] }
   0xc   : > { %s1140_s15 = sshll.u32 %s2324_s14, 2  ;;  %v1916_v6 = vld [vmem:[%s2321_s2] ss:$0 sm:$0xff] }
   0xd   : > { %s1903_s18 = scalar_lea.vmem %s2319_s0, %s1140_s15  ;;  %s1942_s25 = scalar_lea.vmem %s2322_s3, %s1140_s15 }
   0xe   : > { %v1146_v1 = vld [vmem:[%s1903_s18] sm:$0xff]   ;;  %v1721_v2 = vld [vmem:[%s1903_s18 + $0x8] sm:$0xff]   ;;  %v1722_v3 = vld [vmem:[%s1903_s18 + $0x10] sm:$0xff]  }
   0xf   : > { %v1147_v4 = vunpack.c.l.bf16 %v1146_v1  ;;  %v1148_v5 = vunpack.c.h.bf16 %v1146_v1  ;;  %v1151_v7 = vunpack.c.l.bf16 %v1721_v2  ;;  %v1152_v8 = vunpack.c.h.bf16 %v1721_v2  ;;  %v1723_v9 = vld [vmem:[%s1903_s18 + $0x18] sm:$0xff]   ;;  %v1724_v30 = vld [vmem:[%s1903_s18 + $0x20] sm:$0xff]   ;;  %v1725_v35 = vld [vmem:[%s1903_s18 + $0x28] sm:$0xff]  }
  0x10   : > { %v1155_v10 = vunpack.c.l.bf16 %v1722_v3  ;;  %v1156_v11 = vunpack.c.h.bf16 %v1722_v3  ;;  %v1159_v12 = vunpack.c.l.bf16 %v1723_v9  ;;  %v1160_v13 = vunpack.c.h.bf16 %v1723_v9  ;;  %v1726_v40 = vld [vmem:[%s1903_s18 + $0x30] sm:$0xff]   ;;  %v1727_v45 = vld [vmem:[%s1903_s18 + $0x38] sm:$0xff]   ;;  %v1728_v3 = vld [vmem:[%s1903_s18 + $0x40] sm:$0xff]  }
  0x11   : > { %v434_v14 = vmul.f32 %v1908_v0, %v1147_v4  ;;  %v435_v15 = vmul.f32 %v1908_v0, %v1148_v5  ;;  %v436_v16 = vmul.f32 %v1908_v0, %v1151_v7  ;;  %v437_v17 = vmul.f32 %v1908_v0, %v1152_v8 }
  0x12   : > { %v438_v18 = vmul.f32 %v1908_v0, %v1155_v10  ;;  %v439_v19 = vmul.f32 %v1908_v0, %v1156_v11  ;;  %v440_v20 = vmul.f32 %v1908_v0, %v1159_v12  ;;  %v441_v21 = vmul.f32 %v1908_v0, %v1160_v13  ;;  %v1729_v13 = vld [vmem:[%s1903_s18 + $0x48] sm:$0xff]  }
  0x13   : > { %v566_v22 = vadd.f32 %v1916_v6, %v434_v14  ;;  %v567_v23 = vadd.f32 %v1916_v6, %v435_v15  ;;  %v568_v24 = vadd.f32 %v1916_v6, %v436_v16  ;;  %v569_v25 = vadd.f32 %v1916_v6, %v437_v17 }
  0x14   : > { %v570_v26 = vadd.f32 %v1916_v6, %v438_v18  ;;  %v571_v27 = vadd.f32 %v1916_v6, %v439_v19  ;;  %v572_v28 = vadd.f32 %v1916_v6, %v440_v20  ;;  %v573_v29 = vadd.f32 %v1916_v6, %v441_v21  ;;  %v1730_v18 = vld [vmem:[%s1903_s18 + $0x50] sm:$0xff]  }
  0x15   : > { %v694_v31 = vmax.f32 %v566_v22, 0.0  ;;  %v695_v32 = vmax.f32 %v567_v23, 0.0  ;;  %v696_v33 = vmax.f32 %v568_v24, 0.0  ;;  %v697_v34 = vmax.f32 %v569_v25, 0.0  ;;  %v1731_v23 = vld [vmem:[%s1903_s18 + $0x58] sm:$0xff]  }
  0x16   : > { %v698_v36 = vmax.f32 %v570_v26, 0.0  ;;  %v699_v37 = vmax.f32 %v571_v27, 0.0  ;;  %v700_v38 = vmax.f32 %v572_v28, 0.0  ;;  %v701_v39 = vmax.f32 %v573_v29, 0.0 }
  0x17   : > { %v1404_v41 = vpack.c.bf16 %v695_v32, %v694_v31  ;;  %v1409_v42 = vpack.c.bf16 %v697_v34, %v696_v33  ;;  %v1163_v43 = vunpack.c.l.bf16 %v1724_v30  ;;  %v1164_v44 = vunpack.c.h.bf16 %v1724_v30 }
  0x18   : > { %v1414_v46 = vpack.c.bf16 %v699_v37, %v698_v36  ;;  %v1419_v47 = vpack.c.bf16 %v701_v39, %v700_v38  ;;  %v1167_v48 = vunpack.c.l.bf16 %v1725_v35  ;;  %v1168_v49 = vunpack.c.h.bf16 %v1725_v35 }
  0x19   : > { %1405 = vst [vmem:[%s1942_s25] sm:$0xff] %v1404_v41   ;;  %v442_v50 = vmul.f32 %v1908_v0, %v1163_v43  ;;  %v443_v51 = vmul.f32 %v1908_v0, %v1164_v44  ;;  %v1171_v52 = vunpack.c.l.bf16 %v1726_v40  ;;  %v1172_v53 = vunpack.c.h.bf16 %v1726_v40  ;;  %v1732_v40 = vld [vmem:[%s1903_s18 + $0x60] sm:$0xff]  }
  0x1a   : > { %1784 = vst [vmem:[%s1942_s25 + $0x8] sm:$0xff] %v1409_v42   ;;  %v444_v54 = vmul.f32 %v1908_v0, %v1167_v48  ;;  %v445_v55 = vmul.f32 %v1908_v0, %v1168_v49  ;;  %v1175_v56 = vunpack.c.l.bf16 %v1727_v45  ;;  %v1176_v57 = vunpack.c.h.bf16 %v1727_v45 }
  0x1b   : > { %1785 = vst [vmem:[%s1942_s25 + $0x10] sm:$0xff] %v1414_v46   ;;  %v574_v58 = vadd.f32 %v1916_v6, %v442_v50  ;;  %v575_v59 = vadd.f32 %v1916_v6, %v443_v51  ;;  %v446_v60 = vmul.f32 %v1908_v0, %v1171_v52  ;;  %v447_v61 = vmul.f32 %v1908_v0, %v1172_v53  ;;  %v1733_v53 = vld [vmem:[%s1903_s18 + $0x68] sm:$0xff]  }
  0x1c   : > { %1786 = vst [vmem:[%s1942_s25 + $0x18] sm:$0xff] %v1419_v47   ;;  %v576_v62 = vadd.f32 %v1916_v6, %v444_v54  ;;  %v577_v63 = vadd.f32 %v1916_v6, %v445_v55  ;;  %v448_v1 = vmul.f32 %v1908_v0, %v1175_v56  ;;  %v449_v2 = vmul.f32 %v1908_v0, %v1176_v57 }
  0x1d   : > { %v702_v4 = vmax.f32 %v574_v58, 0.0  ;;  %v703_v5 = vmax.f32 %v575_v59, 0.0  ;;  %v578_v7 = vadd.f32 %v1916_v6, %v446_v60  ;;  %v579_v8 = vadd.f32 %v1916_v6, %v447_v61  ;;  %v1734_v58 = vld [vmem:[%s1903_s18 + $0x70] sm:$0xff]  }
  0x1e   : > { %v704_v9 = vmax.f32 %v576_v62, 0.0  ;;  %v705_v10 = vmax.f32 %v577_v63, 0.0  ;;  %v580_v11 = vadd.f32 %v1916_v6, %v448_v1  ;;  %v581_v12 = vadd.f32 %v1916_v6, %v449_v2  ;;  %v1735_v63 = vld [vmem:[%s1903_s18 + $0x78] sm:$0xff]  }
  0x1f   : > { %v1424_v14 = vpack.c.bf16 %v703_v5, %v702_v4  ;;  %v706_v15 = vmax.f32 %v578_v7, 0.0  ;;  %v707_v16 = vmax.f32 %v579_v8, 0.0  ;;  %v1179_v17 = vunpack.c.l.bf16 %v1728_v3 }
  0x20   : > { %v1429_v19 = vpack.c.bf16 %v705_v10, %v704_v9  ;;  %v708_v20 = vmax.f32 %v580_v11, 0.0  ;;  %v709_v21 = vmax.f32 %v581_v12, 0.0  ;;  %v1180_v22 = vunpack.c.h.bf16 %v1728_v3 }
  0x21   : > { %1787 = vst [vmem:[%s1942_s25 + $0x20] sm:$0xff] %v1424_v14   ;;  %v1434_v24 = vpack.c.bf16 %v707_v16, %v706_v15  ;;  %v450_v25 = vmul.f32 %v1908_v0, %v1179_v17  ;;  %v1183_v26 = vunpack.c.l.bf16 %v1729_v13  ;;  %v1184_v27 = vunpack.c.h.bf16 %v1729_v13  ;;  %v1736_v14 = vld [vmem:[%s1903_s18 + $0x80] sm:$0xff]  }
  0x22   : > { %1788 = vst [vmem:[%s1942_s25 + $0x28] sm:$0xff] %v1429_v19   ;;  %v1439_v28 = vpack.c.bf16 %v709_v21, %v708_v20  ;;  %v451_v29 = vmul.f32 %v1908_v0, %v1180_v22  ;;  %v1187_v30 = vunpack.c.l.bf16 %v1730_v18  ;;  %v1188_v31 = vunpack.c.h.bf16 %v1730_v18 }
  0x23   : > { %1789 = vst [vmem:[%s1942_s25 + $0x30] sm:$0xff] %v1434_v24   ;;  %v582_v32 = vadd.f32 %v1916_v6, %v450_v25  ;;  %v452_v33 = vmul.f32 %v1908_v0, %v1183_v26  ;;  %v453_v34 = vmul.f32 %v1908_v0, %v1184_v27  ;;  %v1191_v35 = vunpack.c.l.bf16 %v1731_v23 }
  0x24   : > { %1790 = vst [vmem:[%s1942_s25 + $0x38] sm:$0xff] %v1439_v28   ;;  %v583_v36 = vadd.f32 %v1916_v6, %v451_v29  ;;  %v454_v37 = vmul.f32 %v1908_v0, %v1187_v30  ;;  %v455_v38 = vmul.f32 %v1908_v0, %v1188_v31  ;;  %v1192_v39 = vunpack.c.h.bf16 %v1731_v23  ;;  %v1737_v31 = vld [vmem:[%s1903_s18 + $0x88] sm:$0xff]  }
  0x25   : > { %v710_v41 = vmax.f32 %v582_v32, 0.0  ;;  %v584_v42 = vadd.f32 %v1916_v6, %v452_v33  ;;  %v585_v43 = vadd.f32 %v1916_v6, %v453_v34  ;;  %v456_v44 = vmul.f32 %v1908_v0, %v1191_v35 }
  0x26   : > { %v711_v45 = vmax.f32 %v583_v36, 0.0  ;;  %v586_v46 = vadd.f32 %v1916_v6, %v454_v37  ;;  %v587_v47 = vadd.f32 %v1916_v6, %v455_v38  ;;  %v457_v48 = vmul.f32 %v1908_v0, %v1192_v39  ;;  %v1738_v36 = vld [vmem:[%s1903_s18 + $0x90] sm:$0xff]  }
  0x27   : > { %v712_v49 = vmax.f32 %v584_v42, 0.0  ;;  %v713_v50 = vmax.f32 %v585_v43, 0.0  ;;  %v588_v51 = vadd.f32 %v1916_v6, %v456_v44  ;;  %v1195_v52 = vunpack.c.l.bf16 %v1732_v40 }
  0x28   : > { %v1444_v54 = vpack.c.bf16 %v711_v45, %v710_v41  ;;  %v714_v55 = vmax.f32 %v586_v46, 0.0  ;;  %v715_v56 = vmax.f32 %v587_v47, 0.0  ;;  %v589_v57 = vadd.f32 %v1916_v6, %v457_v48  ;;  %v1739_v41 = vld [vmem:[%s1903_s18 + $0x98] sm:$0xff]  }
  0x29   : > { %v1449_v59 = vpack.c.bf16 %v713_v50, %v712_v49  ;;  %v716_v60 = vmax.f32 %v588_v51, 0.0  ;;  %v1196_v61 = vunpack.c.h.bf16 %v1732_v40  ;;  %v458_v62 = vmul.f32 %v1908_v0, %v1195_v52 }
  0x2a   : > { %1791 = vst [vmem:[%s1942_s25 + $0x40] sm:$0xff] %v1444_v54   ;;  %v1454_v1 = vpack.c.bf16 %v715_v56, %v714_v55  ;;  %v717_v2 = vmax.f32 %v589_v57, 0.0  ;;  %v1199_v3 = vunpack.c.l.bf16 %v1733_v53  ;;  %v1200_v4 = vunpack.c.h.bf16 %v1733_v53  ;;  %v1740_v54 = vld [vmem:[%s1903_s18 + $0xa0] sm:$0xff]  }
  0x2b   : > { %1792 = vst [vmem:[%s1942_s25 + $0x48] sm:$0xff] %v1449_v59   ;;  %v459_v5 = vmul.f32 %v1908_v0, %v1196_v61  ;;  %v590_v7 = vadd.f32 %v1916_v6, %v458_v62  ;;  %v1203_v8 = vunpack.c.l.bf16 %v1734_v58  ;;  %v1204_v9 = vunpack.c.h.bf16 %v1734_v58 }
  0x2c   : > { %1793 = vst [vmem:[%s1942_s25 + $0x50] sm:$0xff] %v1454_v1   ;;  %v1459_v10 = vpack.c.bf16 %v717_v2, %v716_v60  ;;  %v460_v11 = vmul.f32 %v1908_v0, %v1199_v3  ;;  %v461_v12 = vmul.f32 %v1908_v0, %v1200_v4  ;;  %v1207_v13 = vunpack.c.l.bf16 %v1735_v63  ;;  %v1741_v4 = vld [vmem:[%s1903_s18 + $0xa8] sm:$0xff]  }
  0x2d   : > { %v591_v15 = vadd.f32 %v1916_v6, %v459_v5  ;;  %v718_v16 = vmax.f32 %v590_v7, 0.0  ;;  %v462_v17 = vmul.f32 %v1908_v0, %v1203_v8  ;;  %v463_v18 = vmul.f32 %v1908_v0, %v1204_v9 }
  0x2e   : > { %1794 = vst [vmem:[%s1942_s25 + $0x58] sm:$0xff] %v1459_v10   ;;  %v592_v19 = vadd.f32 %v1916_v6, %v460_v11  ;;  %v593_v20 = vadd.f32 %v1916_v6, %v461_v12  ;;  %v1208_v21 = vunpack.c.h.bf16 %v1735_v63  ;;  %v464_v22 = vmul.f32 %v1908_v0, %v1207_v13 }
  0x2f   : > { %v719_v23 = vmax.f32 %v591_v15, 0.0  ;;  %v594_v24 = vadd.f32 %v1916_v6, %v462_v17  ;;  %v595_v25 = vadd.f32 %v1916_v6, %v463_v18  ;;  %v1211_v26 = vunpack.c.l.bf16 %v1736_v14 }
  0x30   : > { %v720_v27 = vmax.f32 %v592_v19, 0.0  ;;  %v721_v28 = vmax.f32 %v593_v20, 0.0  ;;  %v465_v29 = vmul.f32 %v1908_v0, %v1208_v21  ;;  %v596_v30 = vadd.f32 %v1916_v6, %v464_v22  ;;  %v1743_v19 = vld [vmem:[%s1903_s18 + $0xb8] sm:$0xff]  }
  0x31   : > { %v1464_v32 = vpack.c.bf16 %v719_v23, %v718_v16  ;;  %v722_v33 = vmax.f32 %v594_v24, 0.0  ;;  %v723_v34 = vmax.f32 %v595_v25, 0.0  ;;  %v1212_v35 = vunpack.c.h.bf16 %v1736_v14  ;;  %v1742_v14 = vld [vmem:[%s1903_s18 + $0xb0] sm:$0xff]  }
  0x32   : > { %v1469_v37 = vpack.c.bf16 %v721_v28, %v720_v27  ;;  %v597_v38 = vadd.f32 %v1916_v6, %v465_v29  ;;  %v724_v39 = vmax.f32 %v596_v30, 0.0  ;;  %v466_v40 = vmul.f32 %v1908_v0, %v1211_v26 }
  0x33   : > { %1795 = vst [vmem:[%s1942_s25 + $0x60] sm:$0xff] %v1464_v32   ;;  %v1474_v42 = vpack.c.bf16 %v723_v34, %v722_v33  ;;  %v467_v43 = vmul.f32 %v1908_v0, %v1212_v35  ;;  %v1215_v44 = vunpack.c.l.bf16 %v1737_v31  ;;  %v1216_v45 = vunpack.c.h.bf16 %v1737_v31  ;;  %v1744_v32 = vld [vmem:[%s1903_s18 + $0xc0] sm:$0xff]  }
  0x34   : > { %1796 = vst [vmem:[%s1942_s25 + $0x68] sm:$0xff] %v1469_v37   ;;  %v725_v46 = vmax.f32 %v597_v38, 0.0  ;;  %v598_v47 = vadd.f32 %v1916_v6, %v466_v40  ;;  %v1219_v48 = vunpack.c.l.bf16 %v1738_v36  ;;  %v1220_v49 = vunpack.c.h.bf16 %v1738_v36 }
  0x35   : > { %1797 = vst [vmem:[%s1942_s25 + $0x70] sm:$0xff] %v1474_v42   ;;  %v599_v50 = vadd.f32 %v1916_v6, %v467_v43  ;;  %v468_v51 = vmul.f32 %v1908_v0, %v1215_v44  ;;  %v469_v52 = vmul.f32 %v1908_v0, %v1216_v45  ;;  %v1223_v53 = vunpack.c.l.bf16 %v1739_v41  ;;  %v1745_v45 = vld [vmem:[%s1903_s18 + $0xc8] sm:$0xff]  }
  0x36   : > { %v1479_v55 = vpack.c.bf16 %v725_v46, %v724_v39  ;;  %v726_v56 = vmax.f32 %v598_v47, 0.0  ;;  %v470_v57 = vmul.f32 %v1908_v0, %v1219_v48  ;;  %v471_v58 = vmul.f32 %v1908_v0, %v1220_v49 }
  0x37   : > { %v727_v59 = vmax.f32 %v599_v50, 0.0  ;;  %v600_v60 = vadd.f32 %v1916_v6, %v468_v51  ;;  %v601_v61 = vadd.f32 %v1916_v6, %v469_v52  ;;  %v1224_v62 = vunpack.c.h.bf16 %v1739_v41 }
  0x38   : > { %1798 = vst [vmem:[%s1942_s25 + $0x78] sm:$0xff] %v1479_v55   ;;  %v602_v63 = vadd.f32 %v1916_v6, %v470_v57  ;;  %v603_v1 = vadd.f32 %v1916_v6, %v471_v58  ;;  %v472_v2 = vmul.f32 %v1908_v0, %v1223_v53  ;;  %v1227_v3 = vunpack.c.l.bf16 %v1740_v54 }
  0x39   : > { %v1484_v5 = vpack.c.bf16 %v727_v59, %v726_v56  ;;  %v728_v7 = vmax.f32 %v600_v60, 0.0  ;;  %v729_v8 = vmax.f32 %v601_v61, 0.0  ;;  %v473_v9 = vmul.f32 %v1908_v0, %v1224_v62 }
  0x3a   : > { %v730_v10 = vmax.f32 %v602_v63, 0.0  ;;  %v731_v11 = vmax.f32 %v603_v1, 0.0  ;;  %v604_v12 = vadd.f32 %v1916_v6, %v472_v2  ;;  %v1228_v13 = vunpack.c.h.bf16 %v1740_v54  ;;  %v1746_v54 = vld [vmem:[%s1903_s18 + $0xd0] sm:$0xff]   ;;  %v1747_v63 = vld [vmem:[%s1903_s18 + $0xd8] sm:$0xff]  }
  0x3b   : > { %1799 = vst [vmem:[%s1942_s25 + $0x80] sm:$0xff] %v1484_v5   ;;  %v1489_v15 = vpack.c.bf16 %v729_v8, %v728_v7  ;;  %v605_v16 = vadd.f32 %v1916_v6, %v473_v9  ;;  %v474_v17 = vmul.f32 %v1908_v0, %v1227_v3  ;;  %v1231_v18 = vunpack.c.l.bf16 %v1741_v4 }
  0x3c   : > { %v1494_v20 = vpack.c.bf16 %v731_v11, %v730_v10  ;;  %v732_v21 = vmax.f32 %v604_v12, 0.0  ;;  %v475_v22 = vmul.f32 %v1908_v0, %v1228_v13  ;;  %v1232_v23 = vunpack.c.h.bf16 %v1741_v4  ;;  %v1748_v10 = vld [vmem:[%s1903_s18 + $0xe0] sm:$0xff]  }
  0x3d   : > { %1800 = vst [vmem:[%s1942_s25 + $0x88] sm:$0xff] %v1489_v15   ;;  %v733_v24 = vmax.f32 %v605_v16, 0.0  ;;  %v606_v25 = vadd.f32 %v1916_v6, %v474_v17  ;;  %v476_v26 = vmul.f32 %v1908_v0, %v1231_v18  ;;  %v1235_v27 = vunpack.c.l.bf16 %v1742_v14 }
  0x3e   : > { %1801 = vst [vmem:[%s1942_s25 + $0x90] sm:$0xff] %v1494_v20   ;;  %v607_v28 = vadd.f32 %v1916_v6, %v475_v22  ;;  %v477_v29 = vmul.f32 %v1908_v0, %v1232_v23  ;;  %v1236_v30 = vunpack.c.h.bf16 %v1742_v14  ;;  %v1239_v31 = vunpack.c.l.bf16 %v1743_v19  ;;  %v1749_v23 = vld [vmem:[%s1903_s18 + $0xe8] sm:$0xff]  }
  0x3f   : > { %v1499_v33 = vpack.c.bf16 %v733_v24, %v732_v21  ;;  %v734_v34 = vmax.f32 %v606_v25, 0.0  ;;  %v608_v35 = vadd.f32 %v1916_v6, %v476_v26  ;;  %v478_v36 = vmul.f32 %v1908_v0, %v1235_v27 }
  0x40   : > { %v735_v37 = vmax.f32 %v607_v28, 0.0  ;;  %v609_v38 = vadd.f32 %v1916_v6, %v477_v29  ;;  %v479_v39 = vmul.f32 %v1908_v0, %v1236_v30  ;;  %v1240_v40 = vunpack.c.h.bf16 %v1743_v19 }
  0x41   : > { %1802 = vst [vmem:[%s1942_s25 + $0x98] sm:$0xff] %v1499_v33   ;;  %v736_v41 = vmax.f32 %v608_v35, 0.0  ;;  %v610_v42 = vadd.f32 %v1916_v6, %v478_v36  ;;  %v480_v43 = vmul.f32 %v1908_v0, %v1239_v31  ;;  %v1243_v44 = vunpack.c.l.bf16 %v1744_v32 }
  0x42   : > { %v1504_v46 = vpack.c.bf16 %v735_v37, %v734_v34  ;;  %v737_v47 = vmax.f32 %v609_v38, 0.0  ;;  %v611_v48 = vadd.f32 %v1916_v6, %v479_v39  ;;  %v481_v49 = vmul.f32 %v1908_v0, %v1240_v40 }
  0x43   : > { %v738_v50 = vmax.f32 %v610_v42, 0.0  ;;  %v612_v51 = vadd.f32 %v1916_v6, %v480_v43  ;;  %v1244_v52 = vunpack.c.h.bf16 %v1744_v32  ;;  %v482_v53 = vmul.f32 %v1908_v0, %v1243_v44  ;;  %v1750_v32 = vld [vmem:[%s1903_s18 + $0xf0] sm:$0xff]  }
  0x44   : > { %1803 = vst [vmem:[%s1942_s25 + $0xa0] sm:$0xff] %v1504_v46   ;;  %v1509_v55 = vpack.c.bf16 %v737_v47, %v736_v41  ;;  %v739_v56 = vmax.f32 %v611_v48, 0.0  ;;  %v613_v57 = vadd.f32 %v1916_v6, %v481_v49  ;;  %v1247_v58 = vunpack.c.l.bf16 %v1745_v45  ;;  %v1751_v41 = vld [vmem:[%s1903_s18 + $0xf8] sm:$0xff]  }
  0x45   : > { %v740_v59 = vmax.f32 %v612_v51, 0.0  ;;  %v483_v60 = vmul.f32 %v1908_v0, %v1244_v52  ;;  %v614_v61 = vadd.f32 %v1916_v6, %v482_v53  ;;  %v1248_v62 = vunpack.c.h.bf16 %v1745_v45 }
  0x46   : > { %1804 = vst [vmem:[%s1942_s25 + $0xa8] sm:$0xff] %v1509_v55   ;;  %v1514_v1 = vpack.c.bf16 %v739_v56, %v738_v50  ;;  %v741_v2 = vmax.f32 %v613_v57, 0.0  ;;  %v484_v3 = vmul.f32 %v1908_v0, %v1247_v58  ;;  %v1251_v4 = vunpack.c.l.bf16 %v1746_v54  ;;  %v1752_v50 = vld [vmem:[%s1903_s18 + $0x100] sm:$0xff]  }
  0x47   : > { %v615_v5 = vadd.f32 %v1916_v6, %v483_v60  ;;  %v742_v7 = vmax.f32 %v614_v61, 0.0  ;;  %v485_v8 = vmul.f32 %v1908_v0, %v1248_v62  ;;  %v1252_v9 = vunpack.c.h.bf16 %v1746_v54 }
  0x48   : > { %1805 = vst [vmem:[%s1942_s25 + $0xb0] sm:$0xff] %v1514_v1   ;;  %v1519_v11 = vpack.c.bf16 %v741_v2, %v740_v59  ;;  %v616_v12 = vadd.f32 %v1916_v6, %v484_v3  ;;  %v486_v13 = vmul.f32 %v1908_v0, %v1251_v4  ;;  %v1255_v14 = vunpack.c.l.bf16 %v1747_v63 }
  0x49   : > { %v743_v15 = vmax.f32 %v615_v5, 0.0  ;;  %v617_v16 = vadd.f32 %v1916_v6, %v485_v8  ;;  %v487_v17 = vmul.f32 %v1908_v0, %v1252_v9  ;;  %v1256_v18 = vunpack.c.h.bf16 %v1747_v63  ;;  %v1753_v63 = vld [vmem:[%s1903_s18 + $0x108] sm:$0xff]  }
  0x4a   : > { %1806 = vst [vmem:[%s1942_s25 + $0xb8] sm:$0xff] %v1519_v11   ;;  %v744_v19 = vmax.f32 %v616_v12, 0.0  ;;  %v618_v20 = vadd.f32 %v1916_v6, %v486_v13  ;;  %v488_v21 = vmul.f32 %v1908_v0, %v1255_v14  ;;  %v1259_v22 = vunpack.c.l.bf16 %v1748_v10 }
  0x4b   : > { %v1524_v24 = vpack.c.bf16 %v743_v15, %v742_v7  ;;  %v745_v25 = vmax.f32 %v617_v16, 0.0  ;;  %v619_v26 = vadd.f32 %v1916_v6, %v487_v17  ;;  %v489_v27 = vmul.f32 %v1908_v0, %v1256_v18 }
  0x4c   : > { %v746_v28 = vmax.f32 %v618_v20, 0.0  ;;  %v620_v29 = vadd.f32 %v1916_v6, %v488_v21  ;;  %v1260_v30 = vunpack.c.h.bf16 %v1748_v10  ;;  %v490_v31 = vmul.f32 %v1908_v0, %v1259_v22  ;;  %v1754_v10 = vld [vmem:[%s1903_s18 + $0x110] sm:$0xff]  }
  0x4d   : > { %1807 = vst [vmem:[%s1942_s25 + $0xc0] sm:$0xff] %v1524_v24   ;;  %v1529_v33 = vpack.c.bf16 %v745_v25, %v744_v19  ;;  %v747_v34 = vmax.f32 %v619_v26, 0.0  ;;  %v621_v35 = vadd.f32 %v1916_v6, %v489_v27  ;;  %v1263_v36 = vunpack.c.l.bf16 %v1749_v23  ;;  %v1755_v19 = vld [vmem:[%s1903_s18 + $0x118] sm:$0xff]  }
  0x4e   : > { %v748_v37 = vmax.f32 %v620_v29, 0.0  ;;  %v491_v38 = vmul.f32 %v1908_v0, %v1260_v30  ;;  %v622_v39 = vadd.f32 %v1916_v6, %v490_v31  ;;  %v1264_v40 = vunpack.c.h.bf16 %v1749_v23 }
  0x4f   : > { %1808 = vst [vmem:[%s1942_s25 + $0xc8] sm:$0xff] %v1529_v33   ;;  %v1534_v42 = vpack.c.bf16 %v747_v34, %v746_v28  ;;  %v749_v43 = vmax.f32 %v621_v35, 0.0  ;;  %v492_v44 = vmul.f32 %v1908_v0, %v1263_v36  ;;  %v1267_v45 = vunpack.c.l.bf16 %v1750_v32  ;;  %v1756_v28 = vld [vmem:[%s1903_s18 + $0x120] sm:$0xff]  }
  0x50   : > { %v623_v46 = vadd.f32 %v1916_v6, %v491_v38  ;;  %v750_v47 = vmax.f32 %v622_v39, 0.0  ;;  %v493_v48 = vmul.f32 %v1908_v0, %v1264_v40  ;;  %v1268_v49 = vunpack.c.h.bf16 %v1750_v32 }
  0x51   : > { %1809 = vst [vmem:[%s1942_s25 + $0xd0] sm:$0xff] %v1534_v42   ;;  %v1539_v51 = vpack.c.bf16 %v749_v43, %v748_v37  ;;  %v624_v52 = vadd.f32 %v1916_v6, %v492_v44  ;;  %v494_v53 = vmul.f32 %v1908_v0, %v1267_v45  ;;  %v1271_v54 = vunpack.c.l.bf16 %v1751_v41 }
  0x52   : > { %v751_v55 = vmax.f32 %v623_v46, 0.0  ;;  %v625_v56 = vadd.f32 %v1916_v6, %v493_v48  ;;  %v495_v57 = vmul.f32 %v1908_v0, %v1268_v49  ;;  %v1272_v58 = vunpack.c.h.bf16 %v1751_v41  ;;  %v1757_v41 = vld [vmem:[%s1903_s18 + $0x128] sm:$0xff]  }
  0x53   : > { %1810 = vst [vmem:[%s1942_s25 + $0xd8] sm:$0xff] %v1539_v51   ;;  %v752_v59 = vmax.f32 %v624_v52, 0.0  ;;  %v626_v60 = vadd.f32 %v1916_v6, %v494_v53  ;;  %v496_v61 = vmul.f32 %v1908_v0, %v1271_v54  ;;  %v1275_v62 = vunpack.c.l.bf16 %v1752_v50 }
  0x54   : > { %v1544_v1 = vpack.c.bf16 %v751_v55, %v750_v47  ;;  %v753_v2 = vmax.f32 %v625_v56, 0.0  ;;  %v627_v3 = vadd.f32 %v1916_v6, %v495_v57  ;;  %v497_v4 = vmul.f32 %v1908_v0, %v1272_v58 }
  0x55   : > { %v754_v5 = vmax.f32 %v626_v60, 0.0  ;;  %v628_v7 = vadd.f32 %v1916_v6, %v496_v61  ;;  %v1276_v8 = vunpack.c.h.bf16 %v1752_v50  ;;  %v498_v9 = vmul.f32 %v1908_v0, %v1275_v62  ;;  %v1758_v50 = vld [vmem:[%s1903_s18 + $0x130] sm:$0xff]  }
  0x56   : > { %1811 = vst [vmem:[%s1942_s25 + $0xe0] sm:$0xff] %v1544_v1   ;;  %v1549_v11 = vpack.c.bf16 %v753_v2, %v752_v59  ;;  %v755_v12 = vmax.f32 %v627_v3, 0.0  ;;  %v629_v13 = vadd.f32 %v1916_v6, %v497_v4  ;;  %v1279_v14 = vunpack.c.l.bf16 %v1753_v63  ;;  %v1759_v59 = vld [vmem:[%s1903_s18 + $0x138] sm:$0xff]  }
  0x57   : > { %v756_v15 = vmax.f32 %v628_v7, 0.0  ;;  %v499_v16 = vmul.f32 %v1908_v0, %v1276_v8  ;;  %v630_v17 = vadd.f32 %v1916_v6, %v498_v9  ;;  %v1280_v18 = vunpack.c.h.bf16 %v1753_v63 }
  0x58   : > { %1812 = vst [vmem:[%s1942_s25 + $0xe8] sm:$0xff] %v1549_v11   ;;  %v1554_v20 = vpack.c.bf16 %v755_v12, %v754_v5  ;;  %v757_v21 = vmax.f32 %v629_v13, 0.0  ;;  %v500_v22 = vmul.f32 %v1908_v0, %v1279_v14  ;;  %v1283_v23 = vunpack.c.l.bf16 %v1754_v10  ;;  %v1760_v5 = vld [vmem:[%s1903_s18 + $0x140] sm:$0xff]  }
  0x59   : > { %v631_v24 = vadd.f32 %v1916_v6, %v499_v16  ;;  %v758_v25 = vmax.f32 %v630_v17, 0.0  ;;  %v501_v26 = vmul.f32 %v1908_v0, %v1280_v18  ;;  %v1284_v27 = vunpack.c.h.bf16 %v1754_v10 }
  0x5a   : > { %1813 = vst [vmem:[%s1942_s25 + $0xf0] sm:$0xff] %v1554_v20   ;;  %v1559_v29 = vpack.c.bf16 %v757_v21, %v756_v15  ;;  %v632_v30 = vadd.f32 %v1916_v6, %v500_v22  ;;  %v502_v31 = vmul.f32 %v1908_v0, %v1283_v23  ;;  %v1287_v32 = vunpack.c.l.bf16 %v1755_v19 }
  0x5b   : > { %v759_v33 = vmax.f32 %v631_v24, 0.0  ;;  %v633_v34 = vadd.f32 %v1916_v6, %v501_v26  ;;  %v503_v35 = vmul.f32 %v1908_v0, %v1284_v27  ;;  %v1288_v36 = vunpack.c.h.bf16 %v1755_v19  ;;  %v1761_v19 = vld [vmem:[%s1903_s18 + $0x148] sm:$0xff]  }
  0x5c   : > { %1814 = vst [vmem:[%s1942_s25 + $0xf8] sm:$0xff] %v1559_v29   ;;  %v760_v37 = vmax.f32 %v632_v30, 0.0  ;;  %v634_v38 = vadd.f32 %v1916_v6, %v502_v31  ;;  %v504_v39 = vmul.f32 %v1908_v0, %v1287_v32  ;;  %v1291_v40 = vunpack.c.l.bf16 %v1756_v28 }
  0x5d   : > { %v1564_v42 = vpack.c.bf16 %v759_v33, %v758_v25  ;;  %v761_v43 = vmax.f32 %v633_v34, 0.0  ;;  %v635_v44 = vadd.f32 %v1916_v6, %v503_v35  ;;  %v505_v45 = vmul.f32 %v1908_v0, %v1288_v36 }
  0x5e   : > { %v762_v46 = vmax.f32 %v634_v38, 0.0  ;;  %v636_v47 = vadd.f32 %v1916_v6, %v504_v39  ;;  %v1292_v48 = vunpack.c.h.bf16 %v1756_v28  ;;  %v506_v49 = vmul.f32 %v1908_v0, %v1291_v40  ;;  %v1762_v28 = vld [vmem:[%s1903_s18 + $0x150] sm:$0xff]  }
  0x5f   : > { %1815 = vst [vmem:[%s1942_s25 + $0x100] sm:$0xff] %v1564_v42   ;;  %v1569_v51 = vpack.c.bf16 %v761_v43, %v760_v37  ;;  %v763_v52 = vmax.f32 %v635_v44, 0.0  ;;  %v637_v53 = vadd.f32 %v1916_v6, %v505_v45  ;;  %v1295_v54 = vunpack.c.l.bf16 %v1757_v41  ;;  %v1763_v37 = vld [vmem:[%s1903_s18 + $0x158] sm:$0xff]  }
  0x60   : > { %v764_v55 = vmax.f32 %v636_v47, 0.0  ;;  %v507_v56 = vmul.f32 %v1908_v0, %v1292_v48  ;;  %v638_v57 = vadd.f32 %v1916_v6, %v506_v49  ;;  %v1296_v58 = vunpack.c.h.bf16 %v1757_v41 }
  0x61   : > { %1816 = vst [vmem:[%s1942_s25 + $0x108] sm:$0xff] %v1569_v51   ;;  %v1574_v60 = vpack.c.bf16 %v763_v52, %v762_v46  ;;  %v765_v61 = vmax.f32 %v637_v53, 0.0  ;;  %v508_v62 = vmul.f32 %v1908_v0, %v1295_v54  ;;  %v1299_v63 = vunpack.c.l.bf16 %v1758_v50  ;;  %v1764_v46 = vld [vmem:[%s1903_s18 + $0x160] sm:$0xff]  }
  0x62   : > { %v639_v1 = vadd.f32 %v1916_v6, %v507_v56  ;;  %v766_v2 = vmax.f32 %v638_v57, 0.0  ;;  %v509_v3 = vmul.f32 %v1908_v0, %v1296_v58  ;;  %v1300_v4 = vunpack.c.h.bf16 %v1758_v50 }
  0x63   : > { %1817 = vst [vmem:[%s1942_s25 + $0x110] sm:$0xff] %v1574_v60   ;;  %v1579_v7 = vpack.c.bf16 %v765_v61, %v764_v55  ;;  %v640_v8 = vadd.f32 %v1916_v6, %v508_v62  ;;  %v510_v9 = vmul.f32 %v1908_v0, %v1299_v63  ;;  %v1303_v10 = vunpack.c.l.bf16 %v1759_v59 }
  0x64   : > { %v767_v11 = vmax.f32 %v639_v1, 0.0  ;;  %v641_v12 = vadd.f32 %v1916_v6, %v509_v3  ;;  %v511_v13 = vmul.f32 %v1908_v0, %v1300_v4  ;;  %v1304_v14 = vunpack.c.h.bf16 %v1759_v59  ;;  %v1765_v59 = vld [vmem:[%s1903_s18 + $0x168] sm:$0xff]  }
  0x65   : > { %1818 = vst [vmem:[%s1942_s25 + $0x118] sm:$0xff] %v1579_v7   ;;  %v768_v15 = vmax.f32 %v640_v8, 0.0  ;;  %v642_v16 = vadd.f32 %v1916_v6, %v510_v9  ;;  %v512_v17 = vmul.f32 %v1908_v0, %v1303_v10  ;;  %v1307_v18 = vunpack.c.l.bf16 %v1760_v5 }
  0x66   : > { %v1584_v20 = vpack.c.bf16 %v767_v11, %v766_v2  ;;  %v769_v21 = vmax.f32 %v641_v12, 0.0  ;;  %v643_v22 = vadd.f32 %v1916_v6, %v511_v13  ;;  %v513_v23 = vmul.f32 %v1908_v0, %v1304_v14 }
  0x67   : > { %v770_v24 = vmax.f32 %v642_v16, 0.0  ;;  %v644_v25 = vadd.f32 %v1916_v6, %v512_v17  ;;  %v1308_v26 = vunpack.c.h.bf16 %v1760_v5  ;;  %v514_v27 = vmul.f32 %v1908_v0, %v1307_v18  ;;  %v1766_v5 = vld [vmem:[%s1903_s18 + $0x170] sm:$0xff]  }
  0x68   : > { %1819 = vst [vmem:[%s1942_s25 + $0x120] sm:$0xff] %v1584_v20   ;;  %v1589_v29 = vpack.c.bf16 %v769_v21, %v768_v15  ;;  %v771_v30 = vmax.f32 %v643_v22, 0.0  ;;  %v645_v31 = vadd.f32 %v1916_v6, %v513_v23  ;;  %v1311_v32 = vunpack.c.l.bf16 %v1761_v19  ;;  %v1767_v15 = vld [vmem:[%s1903_s18 + $0x178] sm:$0xff]  }
  0x69   : > { %v772_v33 = vmax.f32 %v644_v25, 0.0  ;;  %v515_v34 = vmul.f32 %v1908_v0, %v1308_v26  ;;  %v646_v35 = vadd.f32 %v1916_v6, %v514_v27  ;;  %v1312_v36 = vunpack.c.h.bf16 %v1761_v19 }
  0x6a   : > { %1820 = vst [vmem:[%s1942_s25 + $0x128] sm:$0xff] %v1589_v29   ;;  %v1594_v38 = vpack.c.bf16 %v771_v30, %v770_v24  ;;  %v773_v39 = vmax.f32 %v645_v31, 0.0  ;;  %v516_v40 = vmul.f32 %v1908_v0, %v1311_v32  ;;  %v1315_v41 = vunpack.c.l.bf16 %v1762_v28  ;;  %v1768_v24 = vld [vmem:[%s1903_s18 + $0x180] sm:$0xff]  }
  0x6b   : > { %v647_v42 = vadd.f32 %v1916_v6, %v515_v34  ;;  %v774_v43 = vmax.f32 %v646_v35, 0.0  ;;  %v517_v44 = vmul.f32 %v1908_v0, %v1312_v36  ;;  %v1316_v45 = vunpack.c.h.bf16 %v1762_v28  ;;  %v2205_v35 = vld [vmem:[%s2320_s1] ss:$0 sm:$0xff] }
  0x6c   : > { %1821 = vst [vmem:[%s1942_s25 + $0x130] sm:$0xff] %v1594_v38   ;;  %v1599_v47 = vpack.c.bf16 %v773_v39, %v772_v33  ;;  %v648_v48 = vadd.f32 %v1916_v6, %v516_v40  ;;  %v518_v49 = vmul.f32 %v1908_v0, %v1315_v41  ;;  %v1319_v50 = vunpack.c.l.bf16 %v1763_v37  ;;  %v1769_v38 = vld [vmem:[%s1903_s18 + $0x188] sm:$0xff]  }
  0x6d   : > { %v775_v51 = vmax.f32 %v647_v42, 0.0  ;;  %v649_v52 = vadd.f32 %v1916_v6, %v517_v44  ;;  %v519_v53 = vmul.f32 %v1908_v0, %v1316_v45  ;;  %v1320_v54 = vunpack.c.h.bf16 %v1763_v37 }
  0x6e   : > { %1822 = vst [vmem:[%s1942_s25 + $0x138] sm:$0xff] %v1599_v47   ;;  %v776_v55 = vmax.f32 %v648_v48, 0.0  ;;  %v650_v56 = vadd.f32 %v1916_v6, %v518_v49  ;;  %v520_v57 = vmul.f32 %v1908_v0, %v1319_v50  ;;  %v1323_v58 = vunpack.c.l.bf16 %v1764_v46 }
  0x6f   : > { %v1604_v60 = vpack.c.bf16 %v775_v51, %v774_v43  ;;  %v777_v61 = vmax.f32 %v649_v52, 0.0  ;;  %v651_v62 = vadd.f32 %v1916_v6, %v519_v53  ;;  %v521_v63 = vmul.f32 %v1908_v0, %v1320_v54 }
  0x70   : > { %v778_v1 = vmax.f32 %v650_v56, 0.0  ;;  %v652_v2 = vadd.f32 %v1916_v6, %v520_v57  ;;  %v1324_v3 = vunpack.c.h.bf16 %v1764_v46  ;;  %v522_v4 = vmul.f32 %v1908_v0, %v1323_v58  ;;  %v1770_v46 = vld [vmem:[%s1903_s18 + $0x190] sm:$0xff]  }
  0x71   : > { %1823 = vst [vmem:[%s1942_s25 + $0x140] sm:$0xff] %v1604_v60   ;;  %v1609_v7 = vpack.c.bf16 %v777_v61, %v776_v55  ;;  %v779_v8 = vmax.f32 %v651_v62, 0.0  ;;  %v653_v9 = vadd.f32 %v1916_v6, %v521_v63  ;;  %v1327_v10 = vunpack.c.l.bf16 %v1765_v59  ;;  %v1771_v55 = vld [vmem:[%s1903_s18 + $0x198] sm:$0xff]  }
  0x72   : > { %v780_v11 = vmax.f32 %v652_v2, 0.0  ;;  %v523_v12 = vmul.f32 %v1908_v0, %v1324_v3  ;;  %v654_v13 = vadd.f32 %v1916_v6, %v522_v4  ;;  %v1328_v14 = vunpack.c.h.bf16 %v1765_v59 }
  0x73   : > { %1824 = vst [vmem:[%s1942_s25 + $0x148] sm:$0xff] %v1609_v7   ;;  %v1614_v16 = vpack.c.bf16 %v779_v8, %v778_v1  ;;  %v781_v17 = vmax.f32 %v653_v9, 0.0  ;;  %v524_v18 = vmul.f32 %v1908_v0, %v1327_v10  ;;  %v1331_v19 = vunpack.c.l.bf16 %v1766_v5  ;;  %v1772_v1 = vld [vmem:[%s1903_s18 + $0x1a0] sm:$0xff]  }
  0x74   : > { %v655_v20 = vadd.f32 %v1916_v6, %v523_v12  ;;  %v782_v21 = vmax.f32 %v654_v13, 0.0  ;;  %v525_v22 = vmul.f32 %v1908_v0, %v1328_v14  ;;  %v1332_v23 = vunpack.c.h.bf16 %v1766_v5 }
  0x75   : > { %1825 = vst [vmem:[%s1942_s25 + $0x150] sm:$0xff] %v1614_v16   ;;  %v1619_v25 = vpack.c.bf16 %v781_v17, %v780_v11  ;;  %v656_v26 = vadd.f32 %v1916_v6, %v524_v18  ;;  %v526_v27 = vmul.f32 %v1908_v0, %v1331_v19  ;;  %v1335_v28 = vunpack.c.l.bf16 %v1767_v15 }
  0x76   : > { %v783_v29 = vmax.f32 %v655_v20, 0.0  ;;  %v657_v30 = vadd.f32 %v1916_v6, %v525_v22  ;;  %v527_v31 = vmul.f32 %v1908_v0, %v1332_v23  ;;  %v1336_v32 = vunpack.c.h.bf16 %v1767_v15  ;;  %v2212_v0 = vld [vmem:[%s2321_s2] ss:$0 sm:$0xff]  ;;  %v1773_v15 = vld [vmem:[%s1903_s18 + $0x1a8] sm:$0xff]  }
  0x77   : > { %1826 = vst [vmem:[%s1942_s25 + $0x158] sm:$0xff] %v1619_v25   ;;  %v784_v33 = vmax.f32 %v656_v26, 0.0  ;;  %v658_v34 = vadd.f32 %v1916_v6, %v526_v27  ;;  %v528_v36 = vmul.f32 %v2205_v35, %v1335_v28  ;;  %v1339_v37 = vunpack.c.l.bf16 %v1768_v24 }
  0x78   : > { %v1624_v39 = vpack.c.bf16 %v783_v29, %v782_v21  ;;  %v785_v40 = vmax.f32 %v657_v30, 0.0  ;;  %v659_v41 = vadd.f32 %v2212_v0, %v527_v31  ;;  %v529_v6 = vmul.f32 %v2205_v35, %v1336_v32 }
  0x79   : > { %v786_v42 = vmax.f32 %v658_v34, 0.0  ;;  %v660_v43 = vadd.f32 %v2212_v0, %v528_v36  ;;  %v1340_v44 = vunpack.c.h.bf16 %v1768_v24  ;;  %v530_v45 = vmul.f32 %v2205_v35, %v1339_v37  ;;  %v1774_v24 = vld [vmem:[%s1903_s18 + $0x1b0] sm:$0xff]  }
  0x7a   : > { %1827 = vst [vmem:[%s1942_s25 + $0x160] sm:$0xff] %v1624_v39   ;;  %v1629_v47 = vpack.c.bf16 %v785_v40, %v784_v33  ;;  %v787_v48 = vmax.f32 %v659_v41, 0.0  ;;  %v661_v49 = vadd.f32 %v2212_v0, %v529_v6  ;;  %v1343_v50 = vunpack.c.l.bf16 %v1769_v38  ;;  %v1775_v33 = vld [vmem:[%s1903_s18 + $0x1b8] sm:$0xff]  }
  0x7b   : > { %v788_v51 = vmax.f32 %v660_v43, 0.0  ;;  %v531_v52 = vmul.f32 %v2205_v35, %v1340_v44  ;;  %v662_v53 = vadd.f32 %v2212_v0, %v530_v45  ;;  %v1344_v54 = vunpack.c.h.bf16 %v1769_v38 }
  0x7c   : > { %1828 = vst [vmem:[%s1942_s25 + $0x168] sm:$0xff] %v1629_v47   ;;  %v1634_v56 = vpack.c.bf16 %v787_v48, %v786_v42  ;;  %v789_v57 = vmax.f32 %v661_v49, 0.0  ;;  %v532_v58 = vmul.f32 %v2205_v35, %v1343_v50  ;;  %v1347_v59 = vunpack.c.l.bf16 %v1770_v46  ;;  %v1776_v42 = vld [vmem:[%s1903_s18 + $0x1c0] sm:$0xff]  }
  0x7d   : > { %v663_v60 = vadd.f32 %v2212_v0, %v531_v52  ;;  %v790_v61 = vmax.f32 %v662_v53, 0.0  ;;  %v533_v62 = vmul.f32 %v2205_v35, %v1344_v54  ;;  %v1348_v63 = vunpack.c.h.bf16 %v1770_v46 }
  0x7e   : > { %1829 = vst [vmem:[%s1942_s25 + $0x170] sm:$0xff] %v1634_v56   ;;  %v1639_v2 = vpack.c.bf16 %v789_v57, %v788_v51  ;;  %v664_v3 = vadd.f32 %v2212_v0, %v532_v58  ;;  %v534_v4 = vmul.f32 %v2205_v35, %v1347_v59  ;;  %v1351_v5 = vunpack.c.l.bf16 %v1771_v55 }
  0x7f   : > { %v791_v7 = vmax.f32 %v663_v60, 0.0  ;;  %v665_v8 = vadd.f32 %v2212_v0, %v533_v62  ;;  %v535_v9 = vmul.f32 %v2205_v35, %v1348_v63  ;;  %v1352_v10 = vunpack.c.h.bf16 %v1771_v55  ;;  %v1777_v55 = vld [vmem:[%s1903_s18 + $0x1c8] sm:$0xff]  }
  0x80   : > { %1830 = vst [vmem:[%s1942_s25 + $0x178] sm:$0xff] %v1639_v2   ;;  %v792_v11 = vmax.f32 %v664_v3, 0.0  ;;  %v666_v12 = vadd.f32 %v2212_v0, %v534_v4  ;;  %v536_v13 = vmul.f32 %v2205_v35, %v1351_v5  ;;  %v1355_v14 = vunpack.c.l.bf16 %v1772_v1 }
  0x81   : > { %v1644_v16 = vpack.c.bf16 %v791_v7, %v790_v61  ;;  %v793_v17 = vmax.f32 %v665_v8, 0.0  ;;  %v667_v18 = vadd.f32 %v2212_v0, %v535_v9  ;;  %v537_v19 = vmul.f32 %v2205_v35, %v1352_v10 }
  0x82   : > { %v794_v20 = vmax.f32 %v666_v12, 0.0  ;;  %v668_v21 = vadd.f32 %v2212_v0, %v536_v13  ;;  %v1356_v22 = vunpack.c.h.bf16 %v1772_v1  ;;  %v538_v23 = vmul.f32 %v2205_v35, %v1355_v14  ;;  %v1778_v1 = vld [vmem:[%s1903_s18 + $0x1d0] sm:$0xff]  }
  0x83   : > { %1831 = vst [vmem:[%s1942_s25 + $0x180] sm:$0xff] %v1644_v16   ;;  %v1649_v25 = vpack.c.bf16 %v793_v17, %v792_v11  ;;  %v795_v26 = vmax.f32 %v667_v18, 0.0  ;;  %v669_v27 = vadd.f32 %v2212_v0, %v537_v19  ;;  %v1359_v28 = vunpack.c.l.bf16 %v1773_v15  ;;  %v1779_v11 = vld [vmem:[%s1903_s18 + $0x1d8] sm:$0xff]  }
  0x84   : > { %v796_v29 = vmax.f32 %v668_v21, 0.0  ;;  %v539_v30 = vmul.f32 %v2205_v35, %v1356_v22  ;;  %v670_v31 = vadd.f32 %v2212_v0, %v538_v23  ;;  %v1360_v32 = vunpack.c.h.bf16 %v1773_v15 }
  0x85   : > { %1832 = vst [vmem:[%s1942_s25 + $0x188] sm:$0xff] %v1649_v25   ;;  %v1654_v34 = vpack.c.bf16 %v795_v26, %v794_v20  ;;  %v797_v36 = vmax.f32 %v669_v27, 0.0  ;;  %v540_v37 = vmul.f32 %v2205_v35, %v1359_v28  ;;  %v1363_v38 = vunpack.c.l.bf16 %v1774_v24  ;;  %v1780_v20 = vld [vmem:[%s1903_s18 + $0x1e0] sm:$0xff]  }
  0x86   : > { %v671_v39 = vadd.f32 %v2212_v0, %v539_v30  ;;  %v798_v40 = vmax.f32 %v670_v31, 0.0  ;;  %v541_v41 = vmul.f32 %v2205_v35, %v1360_v32  ;;  %v1364_v6 = vunpack.c.h.bf16 %v1774_v24 }
  0x87   : > { %1833 = vst [vmem:[%s1942_s25 + $0x190] sm:$0xff] %v1654_v34   ;;  %v1659_v43 = vpack.c.bf16 %v797_v36, %v796_v29  ;;  %v672_v44 = vadd.f32 %v2212_v0, %v540_v37  ;;  %v542_v45 = vmul.f32 %v2205_v35, %v1363_v38  ;;  %v1367_v46 = vunpack.c.l.bf16 %v1775_v33 }
  0x88   : > { %v799_v47 = vmax.f32 %v671_v39, 0.0  ;;  %v673_v48 = vadd.f32 %v2212_v0, %v541_v41  ;;  %v543_v49 = vmul.f32 %v2205_v35, %v1364_v6  ;;  %v1368_v50 = vunpack.c.h.bf16 %v1775_v33  ;;  %v1781_v33 = vld [vmem:[%s1903_s18 + $0x1e8] sm:$0xff]  }
  0x89   : > { %1834 = vst [vmem:[%s1942_s25 + $0x198] sm:$0xff] %v1659_v43   ;;  %v800_v51 = vmax.f32 %v672_v44, 0.0  ;;  %v674_v52 = vadd.f32 %v2212_v0, %v542_v45  ;;  %v544_v53 = vmul.f32 %v2205_v35, %v1367_v46  ;;  %v1371_v54 = vunpack.c.l.bf16 %v1776_v42 }
  0x8a   : > { %v1664_v56 = vpack.c.bf16 %v799_v47, %v798_v40  ;;  %v801_v57 = vmax.f32 %v673_v48, 0.0  ;;  %v675_v58 = vadd.f32 %v2212_v0, %v543_v49  ;;  %v545_v59 = vmul.f32 %v2205_v35, %v1368_v50 }
  0x8b   : > { %v802_v60 = vmax.f32 %v674_v52, 0.0  ;;  %v676_v61 = vadd.f32 %v2212_v0, %v544_v53  ;;  %v1372_v62 = vunpack.c.h.bf16 %v1776_v42  ;;  %v546_v63 = vmul.f32 %v2205_v35, %v1371_v54  ;;  %v1782_v42 = vld [vmem:[%s1903_s18 + $0x1f0] sm:$0xff]  }
  0x8c   : > { %1835 = vst [vmem:[%s1942_s25 + $0x1a0] sm:$0xff] %v1664_v56   ;;  %v1669_v2 = vpack.c.bf16 %v801_v57, %v800_v51  ;;  %v803_v3 = vmax.f32 %v675_v58, 0.0  ;;  %v677_v4 = vadd.f32 %v2212_v0, %v545_v59  ;;  %v1375_v5 = vunpack.c.l.bf16 %v1777_v55  ;;  %v1783_v51 = vld [vmem:[%s1903_s18 + $0x1f8] sm:$0xff]  }
  0x8d   : > { %v804_v7 = vmax.f32 %v676_v61, 0.0  ;;  %v547_v8 = vmul.f32 %v2205_v35, %v1372_v62  ;;  %v678_v9 = vadd.f32 %v2212_v0, %v546_v63  ;;  %v1376_v10 = vunpack.c.h.bf16 %v1777_v55 }
  0x8e   : > { %1836 = vst [vmem:[%s1942_s25 + $0x1a8] sm:$0xff] %v1669_v2   ;;  %v1674_v12 = vpack.c.bf16 %v803_v3, %v802_v60  ;;  %v805_v13 = vmax.f32 %v677_v4, 0.0  ;;  %v548_v14 = vmul.f32 %v2205_v35, %v1375_v5  ;;  %v1379_v15 = vunpack.c.l.bf16 %v1778_v1 }
  0x8f   : > { %v679_v16 = vadd.f32 %v2212_v0, %v547_v8  ;;  %v806_v17 = vmax.f32 %v678_v9, 0.0  ;;  %v549_v18 = vmul.f32 %v2205_v35, %v1376_v10  ;;  %v1380_v19 = vunpack.c.h.bf16 %v1778_v1 }
  0x90   : > { %1837 = vst [vmem:[%s1942_s25 + $0x1b0] sm:$0xff] %v1674_v12   ;;  %v1679_v21 = vpack.c.bf16 %v805_v13, %v804_v7  ;;  %v680_v22 = vadd.f32 %v2212_v0, %v548_v14  ;;  %v550_v23 = vmul.f32 %v2205_v35, %v1379_v15  ;;  %v1383_v24 = vunpack.c.l.bf16 %v1779_v11 }
  0x91   : > { %v807_v25 = vmax.f32 %v679_v16, 0.0  ;;  %v681_v26 = vadd.f32 %v2212_v0, %v549_v18  ;;  %v551_v27 = vmul.f32 %v2205_v35, %v1380_v19  ;;  %v1384_v28 = vunpack.c.h.bf16 %v1779_v11 }
  0x92   : > { %1838 = vst [vmem:[%s1942_s25 + $0x1b8] sm:$0xff] %v1679_v21   ;;  %v808_v29 = vmax.f32 %v680_v22, 0.0  ;;  %v682_v30 = vadd.f32 %v2212_v0, %v550_v23  ;;  %v552_v31 = vmul.f32 %v2205_v35, %v1383_v24  ;;  %v1387_v32 = vunpack.c.l.bf16 %v1780_v20 }
  0x93   : > { %v1684_v34 = vpack.c.bf16 %v807_v25, %v806_v17  ;;  %v809_v36 = vmax.f32 %v681_v26, 0.0  ;;  %v683_v37 = vadd.f32 %v2212_v0, %v551_v27  ;;  %v553_v38 = vmul.f32 %v2205_v35, %v1384_v28 }
  0x94   : > { %v810_v39 = vmax.f32 %v682_v30, 0.0  ;;  %v684_v40 = vadd.f32 %v2212_v0, %v552_v31  ;;  %v1388_v41 = vunpack.c.h.bf16 %v1780_v20  ;;  %v554_v6 = vmul.f32 %v2205_v35, %v1387_v32 }
  0x95   : > { %1839 = vst [vmem:[%s1942_s25 + $0x1c0] sm:$0xff] %v1684_v34   ;;  %v1689_v43 = vpack.c.bf16 %v809_v36, %v808_v29  ;;  %v811_v44 = vmax.f32 %v683_v37, 0.0  ;;  %v685_v45 = vadd.f32 %v2212_v0, %v553_v38  ;;  %v1391_v46 = vunpack.c.l.bf16 %v1781_v33 }
  0x96   : > { %v812_v47 = vmax.f32 %v684_v40, 0.0  ;;  %v555_v48 = vmul.f32 %v2205_v35, %v1388_v41  ;;  %v686_v49 = vadd.f32 %v2212_v0, %v554_v6  ;;  %v1392_v50 = vunpack.c.h.bf16 %v1781_v33 }
  0x97   : > { %1840 = vst [vmem:[%s1942_s25 + $0x1c8] sm:$0xff] %v1689_v43   ;;  %v1694_v52 = vpack.c.bf16 %v811_v44, %v810_v39  ;;  %v813_v53 = vmax.f32 %v685_v45, 0.0  ;;  %v556_v54 = vmul.f32 %v2205_v35, %v1391_v46  ;;  %v1395_v55 = vunpack.c.l.bf16 %v1782_v42 }
  0x98   : > { %v687_v56 = vadd.f32 %v2212_v0, %v555_v48  ;;  %v814_v57 = vmax.f32 %v686_v49, 0.0  ;;  %v557_v58 = vmul.f32 %v2205_v35, %v1392_v50  ;;  %v1396_v59 = vunpack.c.h.bf16 %v1782_v42 }
  0x99   : > { %1841 = vst [vmem:[%s1942_s25 + $0x1d0] sm:$0xff] %v1694_v52   ;;  %v1699_v60 = vpack.c.bf16 %v813_v53, %v812_v47  ;;  %v688_v61 = vadd.f32 %v2212_v0, %v556_v54  ;;  %v558_v62 = vmul.f32 %v2205_v35, %v1395_v55  ;;  %v1399_v63 = vunpack.c.l.bf16 %v1783_v51 }
  0x9a   : > { %v815_v1 = vmax.f32 %v687_v56, 0.0  ;;  %v689_v2 = vadd.f32 %v2212_v0, %v557_v58  ;;  %v559_v3 = vmul.f32 %v2205_v35, %v1396_v59  ;;  %v1400_v4 = vunpack.c.h.bf16 %v1783_v51 }
  0x9b   : > { %1842 = vst [vmem:[%s1942_s25 + $0x1d8] sm:$0xff] %v1699_v60   ;;  %v816_v5 = vmax.f32 %v688_v61, 0.0  ;;  %v690_v7 = vadd.f32 %v2212_v0, %v558_v62  ;;  %v560_v8 = vmul.f32 %v2205_v35, %v1399_v63 }
  0x9c   : > { %v1704_v9 = vpack.c.bf16 %v815_v1, %v814_v57  ;;  %v817_v10 = vmax.f32 %v689_v2, 0.0  ;;  %v691_v11 = vadd.f32 %v2212_v0, %v559_v3  ;;  %v561_v12 = vmul.f32 %v2205_v35, %v1400_v4 }
  0x9d   : > { %v818_v13 = vmax.f32 %v690_v7, 0.0  ;;  %v692_v14 = vadd.f32 %v2212_v0, %v560_v8 }
  0x9e   : > { %1843 = vst [vmem:[%s1942_s25 + $0x1e0] sm:$0xff] %v1704_v9   ;;  %v1709_v15 = vpack.c.bf16 %v817_v10, %v816_v5  ;;  %v819_v16 = vmax.f32 %v691_v11, 0.0  ;;  %v693_v17 = vadd.f32 %v2212_v0, %v561_v12 }
  0x9f   : > { %v820_v18 = vmax.f32 %v692_v14, 0.0 }
  0xa0   : > { %1844 = vst [vmem:[%s1942_s25 + $0x1e8] sm:$0xff] %v1709_v15   ;;  %v1714_v19 = vpack.c.bf16 %v819_v16, %v818_v13  ;;  %v821_v20 = vmax.f32 %v693_v17, 0.0 }
  0xa2   : > { %1845 = vst [vmem:[%s1942_s25 + $0x1f0] sm:$0xff] %v1714_v19   ;;  %v1719_v21 = vpack.c.bf16 %v821_v20, %v820_v18 }
  0xa4   : > { %1846 = vst [vmem:[%s1942_s25 + $0x1f8] sm:$0xff] %v1719_v21  }
  0xa5 PF: > { %s13_s12 = sadd.s32 1, %s1865_s12  }
  0xa6   : > { %p10_p4 = scmp.ge.s32.totalorder %s13_s12, 4  }
  0xa8   :  { %12 = sbr.rel (!%p10_p4) target bundleno = 1 (0x1), region = 62 }

// kernel: _lambda_.17
= control target key start
LH: loop header
LB: loop body
LE: loop exit
PB: predicated region body
PF: predicated region fallthrough
CT: control target
= control target key end

     0   :  { %s1708_s9 = smov 0   ;;  %s1710_s10 = smov 0   ;;  %s1880_s0 = inlined_call_operand.vmem [shape: bf16[1,2048,8], index: 0, kind: input, shape index: {}]   ;;  %s1881_s1 = inlined_call_operand.vmem [shape: bf16[1,8,128], index: 1, kind: input, shape index: {}]   ;;  %s1882_s2 = inlined_call_operand.vmem [shape: f32[1,2048,128], index: 2, kind: output, shape index: {}]  }
   0x1   :  { %s1712_s11 = smov 0  }
   0x2 LB: > { %s21_s12 = sadd.s32 1, %s1687_s10  ;;  %p1187_p0 = scmp.ge.s32.totalorder %s1691_s11, 1  ;;  %s1691_s11 = sphi %s1712_s11, %s12_s11   ;;  %s1687_s10 = sphi %s1710_s10, %s1884_s10   ;;  %s1683_s9 = sphi %s1708_s9, %s1883_s9  }
   0x3   : > { %p22_p1 = scmp.ge.s32.totalorder %s21_s12, 4  ;;  %p142_p2 = scmp.lt.s32.totalorder %s1691_s11, 5 }
   0x5   : > { %s1886_s12 = smov (%p22_p1, %s21_s12), 0  ;;  %p143_p3 = pnand %p1187_p0, %p142_p2 }
   0x6   : > { %s1188_s15 = sshll.u32 (!%p143_p3), %s1683_s9, 6 }
   0x7   : > { %146 = sbr.rel (%p143_p3) target bundleno = 295 (0x127), region = 28  ;;  %p179_p4 = scmp.lt.s32.totalorder (!%p143_p3), %s1188_s15, 255 }
   0xc   : > { %v265_v0 = vld [vmem:[%s1881_s1] sm:$0xf]  ;;  %vm523_vm0 = vcmask 1043456   ;;  %s1888_s15 = smov (!%p179_p4, %s1188_s15), 255  ;;  %vm426_vm1 = vcmask 64512  }
   0xd   : > { %v525_v1 = vsel %vm523_vm0, %v265_v0, 0  ;;  %s1189_s16 = sshll.u32 %s1888_s15, 2  ;;  %s1191_s20 = sshll.u32 %s1888_s15, 3 }
   0xe   : > { %534 = vmatpush.bf16.msra.mxu0 %v525_v1  ;;  %1386 = vmatpush.bf16.msra.mxu1 %v525_v1  ;;  %s1735_s19 = scalar_lea.vmem %s1880_s0, %s1189_s16  ;;  %s1805_s23 = scalar_lea.vmem %s1882_s2, %s1191_s20 }
   0xf   : > { %1387 = vmatpush.bf16.msra.mxu2 %v525_v1  ;;  %1388 = vmatpush.bf16.msra.mxu3 %v525_v1  ;;  %v1354_v2 = vld [vmem:[%s1735_s19] sm:$0xff]  ;;  %v1355_v6 = vld [vmem:[%s1735_s19 + $0x8] sm:$0xff]  ;;  %v1356_v10 = vld [vmem:[%s1735_s19 + $0x10] sm:$0xff] }
  0x10   : > { %v1362_v3 = vld [vmem:[%s1735_s19 + $0x40] sm:$0xff]  ;;  %v1363_v7 = vld [vmem:[%s1735_s19 + $0x48] sm:$0xff]  ;;  %v1364_v11 = vld [vmem:[%s1735_s19 + $0x50] sm:$0xff] }
  0x11   : > { %v1370_v4 = vld [vmem:[%s1735_s19 + $0x80] sm:$0xff]  ;;  %1320 = vmatmul.msk.bf16.vlgmr.msra.gmra.mxu0 %vm426_vm1, %v1354_v2  ;;  %1328 = vmatmul.msk.bf16.vlgmr.msra.gmra.mxu1 %vm426_vm1, %v1362_v3  ;;  %v1371_v8 = vld [vmem:[%s1735_s19 + $0x88] sm:$0xff]  ;;  %v1372_v12 = vld [vmem:[%s1735_s19 + $0x90] sm:$0xff] }
  0x12   : > { %v1378_v5 = vld [vmem:[%s1735_s19 + $0xc0] sm:$0xff]  ;;  %1336 = vmatmul.msk.bf16.vlgmr.msra.gmra.mxu2 %vm426_vm1, %v1370_v4  ;;  %v1379_v9 = vld [vmem:[%s1735_s19 + $0xc8] sm:$0xff]  ;;  %v1380_v13 = vld [vmem:[%s1735_s19 + $0xd0] sm:$0xff] }
  0x13   : > { %1344 = vmatmul.msk.bf16.vlgmr.msra.gmra.mxu3 %vm426_vm1, %v1378_v5  ;;  %v1357_v14 = vld [vmem:[%s1735_s19 + $0x18] sm:$0xff]  ;;  %v1358_v18 = vld [vmem:[%s1735_s19 + $0x20] sm:$0xff]  ;;  %v1359_v22 = vld [vmem:[%s1735_s19 + $0x28] sm:$0xff] }
  0x14   : > { %v1365_v15 = vld [vmem:[%s1735_s19 + $0x58] sm:$0xff]  ;;  %v1366_v19 = vld [vmem:[%s1735_s19 + $0x60] sm:$0xff]  ;;  %v1367_v23 = vld [vmem:[%s1735_s19 + $0x68] sm:$0xff] }
  0x15   : > { %v1373_v16 = vld [vmem:[%s1735_s19 + $0x98] sm:$0xff]  ;;  %v1374_v20 = vld [vmem:[%s1735_s19 + $0xa0] sm:$0xff]  ;;  %v1375_v24 = vld [vmem:[%s1735_s19 + $0xa8] sm:$0xff] }
  0x16   : > { %v1381_v17 = vld [vmem:[%s1735_s19 + $0xd8] sm:$0xff]  ;;  %v1382_v21 = vld [vmem:[%s1735_s19 + $0xe0] sm:$0xff]  ;;  %v1383_v25 = vld [vmem:[%s1735_s19 + $0xe8] sm:$0xff] }
  0x17   : > { %v1360_v26 = vld [vmem:[%s1735_s19 + $0x30] sm:$0xff]  ;;  %v1361_v30 = vld [vmem:[%s1735_s19 + $0x38] sm:$0xff] }
  0x18   : > { %v1368_v27 = vld [vmem:[%s1735_s19 + $0x70] sm:$0xff]  ;;  %v1369_v31 = vld [vmem:[%s1735_s19 + $0x78] sm:$0xff] }
  0x19   : > { %v1376_v28 = vld [vmem:[%s1735_s19 + $0xb0] sm:$0xff]  ;;  %v1377_v32 = vld [vmem:[%s1735_s19 + $0xb8] sm:$0xff] }
  0x1a   : > { %v1384_v29 = vld [vmem:[%s1735_s19 + $0xf0] sm:$0xff]  ;;  %v1385_v33 = vld [vmem:[%s1735_s19 + $0xf8] sm:$0xff] }
  0x21   : > { %1321 = vmatmul.msk.bf16.gmra.mxu0 %vm426_vm1, %v1355_v6  ;;  %1329 = vmatmul.msk.bf16.gmra.mxu1 %vm426_vm1, %v1363_v7 }
  0x22   : > { %1337 = vmatmul.msk.bf16.gmra.mxu2 %vm426_vm1, %v1371_v8 }
  0x23   : > { %1345 = vmatmul.msk.bf16.gmra.mxu3 %vm426_vm1, %v1379_v9 }
  0x31   : > { %1322 = vmatmul.msk.bf16.gmra.mxu0 %vm426_vm1, %v1356_v10  ;;  %1330 = vmatmul.msk.bf16.gmra.mxu1 %vm426_vm1, %v1364_v11 }
  0x32   : > { %1338 = vmatmul.msk.bf16.gmra.mxu2 %vm426_vm1, %v1372_v12 }
  0x33   : > { %1346 = vmatmul.msk.bf16.gmra.mxu3 %vm426_vm1, %v1380_v13 }
  0x41   : > { %1323 = vmatmul.msk.bf16.gmra.mxu0 %vm426_vm1, %v1357_v14  ;;  %1331 = vmatmul.msk.bf16.gmra.mxu1 %vm426_vm1, %v1365_v15 }
  0x42   : > { %1339 = vmatmul.msk.bf16.gmra.mxu2 %vm426_vm1, %v1373_v16 }
  0x43   : > { %1347 = vmatmul.msk.bf16.gmra.mxu3 %vm426_vm1, %v1381_v17 }
  0x51   : > { %1324 = vmatmul.msk.bf16.gmra.mxu0 %vm426_vm1, %v1358_v18  ;;  %1332 = vmatmul.msk.bf16.gmra.mxu1 %vm426_vm1, %v1366_v19 }
  0x52   : > { %1340 = vmatmul.msk.bf16.gmra.mxu2 %vm426_vm1, %v1374_v20 }
  0x53   : > { %1348 = vmatmul.msk.bf16.gmra.mxu3 %vm426_vm1, %v1382_v21 }
  0x61   : > { %1325 = vmatmul.msk.bf16.gmra.mxu0 %vm426_vm1, %v1359_v22  ;;  %1333 = vmatmul.msk.bf16.gmra.mxu1 %vm426_vm1, %v1367_v23 }
  0x62   : > { %1341 = vmatmul.msk.bf16.gmra.mxu2 %vm426_vm1, %v1375_v24 }
  0x63   : > { %1349 = vmatmul.msk.bf16.gmra.mxu3 %vm426_vm1, %v1383_v25 }
  0x71   : > { %1326 = vmatmul.msk.bf16.gmra.mxu0 %vm426_vm1, %v1360_v26  ;;  %1334 = vmatmul.msk.bf16.gmra.mxu1 %vm426_vm1, %v1368_v27 }
  0x72   : > { %1342 = vmatmul.msk.bf16.gmra.mxu2 %vm426_vm1, %v1376_v28 }
  0x73   : > { %1350 = vmatmul.msk.bf16.gmra.mxu3 %vm426_vm1, %v1384_v29 }
  0x81   : > { %1327 = vmatmul.msk.bf16.gmra.mxu0 %vm426_vm1, %v1361_v30  ;;  %1335 = vmatmul.msk.bf16.gmra.mxu1 %vm426_vm1, %v1369_v31 }
  0x82   : > { %1343 = vmatmul.msk.bf16.gmra.mxu2 %vm426_vm1, %v1377_v32 }
  0x83   : > { %1351 = vmatmul.msk.bf16.gmra.mxu3 %vm426_vm1, %v1385_v33 }
  0x8e   : > { %v536_v34 = vpop.f32.mrf.mxu0  ;;  %v576_v35 = vpop.f32.mrf.mxu1 }
  0x8f   : > { %v696_v36 = vsub.f32 0.0, %v536_v34  ;;  %v712_v37 = vsub.f32 0.0, %v576_v35 }
  0x91   : > { %v760_v38 = vmul.f32 1.442695, %v696_v36  ;;  %v792_v39 = vmul.f32 1.442695, %v712_v37 }
  0x93   : > { %1413 = vpow2.f32 %v760_v38 }
  0x94   : > { %1415 = vpow2.f32 %v792_v39 }
  0x95   : > { %v616_v40 = vpop.f32.mrf.mxu2 }
  0x96   : > { %v656_v41 = vpop.f32.mrf.mxu3  ;;  %v728_v42 = vsub.f32 0.0, %v616_v40  ;;  %v538_v44 = vpop.f32.mrf.mxu0 }
  0x97   : > { %v744_v43 = vsub.f32 0.0, %v656_v41  ;;  %v578_v45 = vpop.f32.mrf.mxu1  ;;  %v697_v46 = vsub.f32 0.0, %v538_v44 }
  0x98   : > { %v713_v47 = vsub.f32 0.0, %v578_v45  ;;  %v824_v48 = vmul.f32 1.442695, %v728_v42 }
  0x99   : > { %v856_v49 = vmul.f32 1.442695, %v744_v43  ;;  %v1414_v50 = vpop.eup %1413  ;;  %v762_v53 = vmul.f32 1.442695, %v697_v46 }
  0x9a   : > { %v1416_v51 = vpop.eup %1415  ;;  %v888_v52 = vadd.f32 1.0, %v1414_v50  ;;  %1417 = vpow2.f32 %v824_v48  ;;  %v794_v55 = vmul.f32 1.442695, %v713_v47 }
  0x9b   : > { %v904_v54 = vadd.f32 1.0, %v1416_v51  ;;  %1419 = vpow2.f32 %v856_v49 }
  0x9c   : > { %1421 = vrcp.f32 %v888_v52 }
  0x9d   : > { %1423 = vrcp.f32 %v904_v54  ;;  %v618_v56 = vpop.f32.mrf.mxu2 }
  0x9e   : > { %v658_v57 = vpop.f32.mrf.mxu3  ;;  %1425 = vpow2.f32 %v762_v53  ;;  %v729_v58 = vsub.f32 0.0, %v618_v56  ;;  %v541_v60 = vpop.f32.mrf.mxu0 }
  0x9f   : > { %v745_v59 = vsub.f32 0.0, %v658_v57  ;;  %v581_v61 = vpop.f32.mrf.mxu1  ;;  %1427 = vpow2.f32 %v794_v55  ;;  %v698_v62 = vsub.f32 0.0, %v541_v60 }
  0xa0   : > { %v1418_v63 = vpop.eup %1417  ;;  %v826_v0 = vmul.f32 1.442695, %v729_v58  ;;  %v714_v4 = vsub.f32 0.0, %v581_v61 }
  0xa1   : > { %v1420_v1 = vpop.eup %1419  ;;  %v920_v2 = vadd.f32 1.0, %v1418_v63  ;;  %v858_v3 = vmul.f32 1.442695, %v745_v59  ;;  %v764_v7 = vmul.f32 1.442695, %v698_v62 }
  0xa2   : > { %v1422_v5 = vpop.eup %1421  ;;  %v936_v6 = vadd.f32 1.0, %v1420_v1  ;;  %1429 = vpow2.f32 %v826_v0  ;;  %v796_v12 = vmul.f32 1.442695, %v714_v4 }
  0xa3   : > { %v1424_v8 = vpop.eup %1423  ;;  %1016 = vst [vmem:[%s1805_s23] sm:$0xff] %v1422_v5  ;;  %1431 = vrcp.f32 %v920_v2 }
  0xa4   : > { %v1426_v9 = vpop.eup %1425  ;;  %1032 = vst [vmem:[%s1805_s23 + $0x80] sm:$0xff] %v1424_v8  ;;  %1433 = vrcp.f32 %v936_v6 }
  0xa5   : > { %v1428_v10 = vpop.eup %1427  ;;  %v889_v11 = vadd.f32 1.0, %v1426_v9  ;;  %1435 = vpow2.f32 %v858_v3  ;;  %v621_v13 = vpop.f32.mrf.mxu2 }
  0xa6   : > { %v661_v14 = vpop.f32.mrf.mxu3  ;;  %v905_v15 = vadd.f32 1.0, %v1428_v10  ;;  %1437 = vpow2.f32 %v764_v7  ;;  %v730_v16 = vsub.f32 0.0, %v621_v13  ;;  %v543_v18 = vpop.f32.mrf.mxu0 }
  0xa7   : > { %v746_v17 = vsub.f32 0.0, %v661_v14  ;;  %v583_v19 = vpop.f32.mrf.mxu1  ;;  %1439 = vrcp.f32 %v889_v11  ;;  %v699_v20 = vsub.f32 0.0, %v543_v18 }
  0xa8   : > { %v1430_v21 = vpop.eup %1429  ;;  %1441 = vrcp.f32 %v905_v15  ;;  %v828_v22 = vmul.f32 1.442695, %v730_v16  ;;  %v715_v24 = vsub.f32 0.0, %v583_v19 }
  0xa9   : > { %v860_v23 = vmul.f32 1.442695, %v746_v17  ;;  %v1432_v25 = vpop.eup %1431  ;;  %v921_v26 = vadd.f32 1.0, %v1430_v21  ;;  %1443 = vpow2.f32 %v796_v12  ;;  %v766_v27 = vmul.f32 1.442695, %v699_v20 }
  0xaa   : > { %v1434_v28 = vpop.eup %1433  ;;  %1048 = vst [vmem:[%s1805_s23 + $0x100] sm:$0xff] %v1432_v25  ;;  %1445 = vpow2.f32 %v828_v22  ;;  %v798_v32 = vmul.f32 1.442695, %v715_v24 }
  0xab   : > { %v1436_v29 = vpop.eup %1435  ;;  %1064 = vst [vmem:[%s1805_s23 + $0x180] sm:$0xff] %v1434_v28  ;;  %1447 = vrcp.f32 %v921_v26 }
  0xac   : > { %v1438_v30 = vpop.eup %1437  ;;  %v937_v31 = vadd.f32 1.0, %v1436_v29  ;;  %1449 = vpow2.f32 %v860_v23 }
  0xad   : > { %v1440_v33 = vpop.eup %1439  ;;  %v890_v34 = vadd.f32 1.0, %v1438_v30  ;;  %1451 = vpow2.f32 %v766_v27  ;;  %v623_v35 = vpop.f32.mrf.mxu2 }
  0xae   : > { %v663_v36 = vpop.f32.mrf.mxu3  ;;  %v1442_v37 = vpop.eup %1441  ;;  %1017 = vst [vmem:[%s1805_s23 + $0x8] sm:$0xff] %v1440_v33  ;;  %1453 = vrcp.f32 %v937_v31  ;;  %v731_v38 = vsub.f32 0.0, %v623_v35 }
  0xaf   : > { %v546_v39 = vpop.f32.mrf.mxu0  ;;  %v586_v40 = vpop.f32.mrf.mxu1  ;;  %1033 = vst [vmem:[%s1805_s23 + $0x88] sm:$0xff] %v1442_v37  ;;  %1455 = vrcp.f32 %v890_v34  ;;  %v747_v42 = vsub.f32 0.0, %v663_v36 }
  0xb0   : > { %v1444_v41 = vpop.eup %1443  ;;  %1457 = vpow2.f32 %v798_v32  ;;  %v830_v45 = vmul.f32 1.442695, %v731_v38  ;;  %v700_v46 = vsub.f32 0.0, %v546_v39  ;;  %v716_v50 = vsub.f32 0.0, %v586_v40 }
  0xb1   : > { %v1446_v43 = vpop.eup %1445  ;;  %v906_v44 = vadd.f32 1.0, %v1444_v41  ;;  %v862_v53 = vmul.f32 1.442695, %v747_v42 }
  0xb2   : > { %v1448_v47 = vpop.eup %1447  ;;  %v922_v48 = vadd.f32 1.0, %v1446_v43  ;;  %v768_v56 = vmul.f32 1.442695, %v700_v46  ;;  %v800_v61 = vmul.f32 1.442695, %v716_v50 }
  0xb3   : > { %v1450_v49 = vpop.eup %1449  ;;  %1049 = vst [vmem:[%s1805_s23 + $0x108] sm:$0xff] %v1448_v47  ;;  %1459 = vrcp.f32 %v906_v44 }
  0xb4   : > { %v1452_v51 = vpop.eup %1451  ;;  %1461 = vrcp.f32 %v922_v48  ;;  %v938_v52 = vadd.f32 1.0, %v1450_v49 }
  0xb5   : > { %v1454_v54 = vpop.eup %1453  ;;  %v891_v55 = vadd.f32 1.0, %v1452_v51  ;;  %1463 = vpow2.f32 %v830_v45  ;;  %v626_v58 = vpop.f32.mrf.mxu2 }
  0xb6   : > { %v1456_v57 = vpop.eup %1455  ;;  %1065 = vst [vmem:[%s1805_s23 + $0x188] sm:$0xff] %v1454_v54  ;;  %1465 = vrcp.f32 %v938_v52  ;;  %v666_v59 = vpop.f32.mrf.mxu3  ;;  %v732_v62 = vsub.f32 0.0, %v626_v58 }
  0xb7   : > { %v1458_v60 = vpop.eup %1457  ;;  %1018 = vst [vmem:[%s1805_s23 + $0x10] sm:$0xff] %v1456_v57  ;;  %1467 = vrcp.f32 %v891_v55  ;;  %v748_v63 = vsub.f32 0.0, %v666_v59  ;;  %v548_v0 = vpop.f32.mrf.mxu0 }
  0xb8   : > { %v588_v1 = vpop.f32.mrf.mxu1  ;;  %v907_v2 = vadd.f32 1.0, %v1458_v60  ;;  %1469 = vpow2.f32 %v862_v53  ;;  %v701_v3 = vsub.f32 0.0, %v548_v0  ;;  %v832_v6 = vmul.f32 1.442695, %v732_v62 }
  0xb9   : > { %v717_v4 = vsub.f32 0.0, %v588_v1  ;;  %v1460_v5 = vpop.eup %1459  ;;  %1471 = vpow2.f32 %v768_v56  ;;  %v864_v7 = vmul.f32 1.442695, %v748_v63 }
  0xba   : > { %v1462_v8 = vpop.eup %1461  ;;  %1034 = vst [vmem:[%s1805_s23 + $0x90] sm:$0xff] %v1460_v5  ;;  %1473 = vrcp.f32 %v907_v2  ;;  %v770_v10 = vmul.f32 1.442695, %v701_v3 }
  0xbb   : > { %v1464_v9 = vpop.eup %1463  ;;  %1050 = vst [vmem:[%s1805_s23 + $0x110] sm:$0xff] %v1462_v8  ;;  %1475 = vpow2.f32 %v800_v61  ;;  %v802_v13 = vmul.f32 1.442695, %v717_v4 }
  0xbc   : > { %v1466_v11 = vpop.eup %1465  ;;  %v923_v12 = vadd.f32 1.0, %v1464_v9  ;;  %1477 = vpow2.f32 %v832_v6 }
  0xbd   : > { %v1468_v14 = vpop.eup %1467  ;;  %1066 = vst [vmem:[%s1805_s23 + $0x190] sm:$0xff] %v1466_v11  ;;  %1479 = vpow2.f32 %v864_v7  ;;  %v628_v16 = vpop.f32.mrf.mxu2 }
  0xbe   : > { %v1470_v15 = vpop.eup %1469  ;;  %1019 = vst [vmem:[%s1805_s23 + $0x18] sm:$0xff] %v1468_v14  ;;  %1481 = vrcp.f32 %v923_v12  ;;  %v668_v17 = vpop.f32.mrf.mxu3  ;;  %v733_v20 = vsub.f32 0.0, %v628_v16 }
  0xbf   : > { %v1472_v18 = vpop.eup %1471  ;;  %v939_v19 = vadd.f32 1.0, %v1470_v15  ;;  %1483 = vpow2.f32 %v770_v10  ;;  %v749_v21 = vsub.f32 0.0, %v668_v17  ;;  %v551_v22 = vpop.f32.mrf.mxu0 }
  0xc0   : > { %v591_v23 = vpop.f32.mrf.mxu1  ;;  %v1474_v24 = vpop.eup %1473  ;;  %v892_v25 = vadd.f32 1.0, %v1472_v18  ;;  %1485 = vpow2.f32 %v802_v13  ;;  %v834_v27 = vmul.f32 1.442695, %v733_v20  ;;  %v702_v30 = vsub.f32 0.0, %v551_v22 }
  0xc1   : > { %v1476_v26 = vpop.eup %1475  ;;  %1035 = vst [vmem:[%s1805_s23 + $0x98] sm:$0xff] %v1474_v24  ;;  %1487 = vrcp.f32 %v939_v19  ;;  %v718_v31 = vsub.f32 0.0, %v591_v23  ;;  %v866_v34 = vmul.f32 1.442695, %v749_v21 }
  0xc2   : > { %v1478_v28 = vpop.eup %1477  ;;  %1489 = vrcp.f32 %v892_v25  ;;  %v908_v29 = vadd.f32 1.0, %v1476_v26  ;;  %v772_v40 = vmul.f32 1.442695, %v702_v30 }
  0xc3   : > { %v1480_v32 = vpop.eup %1479  ;;  %v924_v33 = vadd.f32 1.0, %v1478_v28  ;;  %1491 = vpow2.f32 %v834_v27  ;;  %v804_v41 = vmul.f32 1.442695, %v718_v31 }
  0xc4   : > { %v1482_v35 = vpop.eup %1481  ;;  %1493 = vrcp.f32 %v908_v29  ;;  %v940_v36 = vadd.f32 1.0, %v1480_v32 }
  0xc5   : > { %v1484_v37 = vpop.eup %1483  ;;  %1051 = vst [vmem:[%s1805_s23 + $0x118] sm:$0xff] %v1482_v35  ;;  %1495 = vrcp.f32 %v924_v33  ;;  %v631_v42 = vpop.f32.mrf.mxu2 }
  0xc6   : > { %v1486_v38 = vpop.eup %1485  ;;  %1497 = vrcp.f32 %v940_v36  ;;  %v893_v39 = vadd.f32 1.0, %v1484_v37  ;;  %v671_v43 = vpop.f32.mrf.mxu3  ;;  %v734_v46 = vsub.f32 0.0, %v631_v42 }
  0xc7   : > { %v1488_v44 = vpop.eup %1487  ;;  %v909_v45 = vadd.f32 1.0, %v1486_v38  ;;  %1499 = vpow2.f32 %v866_v34  ;;  %v750_v47 = vsub.f32 0.0, %v671_v43  ;;  %v553_v48 = vpop.f32.mrf.mxu0 }
  0xc8   : > { %v593_v49 = vpop.f32.mrf.mxu1  ;;  %v1490_v50 = vpop.eup %1489  ;;  %1067 = vst [vmem:[%s1805_s23 + $0x198] sm:$0xff] %v1488_v44  ;;  %1501 = vrcp.f32 %v893_v39  ;;  %v703_v51 = vsub.f32 0.0, %v553_v48  ;;  %v836_v53 = vmul.f32 1.442695, %v734_v46 }
  0xc9   : > { %v1492_v52 = vpop.eup %1491  ;;  %1020 = vst [vmem:[%s1805_s23 + $0x20] sm:$0xff] %v1490_v50  ;;  %1503 = vrcp.f32 %v909_v45  ;;  %v719_v54 = vsub.f32 0.0, %v593_v49  ;;  %v868_v57 = vmul.f32 1.442695, %v750_v47 }
  0xca   : > { %v1494_v55 = vpop.eup %1493  ;;  %v925_v56 = vadd.f32 1.0, %v1492_v52  ;;  %1505 = vpow2.f32 %v772_v40  ;;  %v774_v59 = vmul.f32 1.442695, %v703_v51 }
  0xcb   : > { %v1496_v58 = vpop.eup %1495  ;;  %1036 = vst [vmem:[%s1805_s23 + $0xa0] sm:$0xff] %v1494_v55  ;;  %1507 = vpow2.f32 %v804_v41  ;;  %v806_v62 = vmul.f32 1.442695, %v719_v54 }
  0xcc   : > { %v1498_v60 = vpop.eup %1497  ;;  %1052 = vst [vmem:[%s1805_s23 + $0x120] sm:$0xff] %v1496_v58  ;;  %1509 = vrcp.f32 %v925_v56 }
  0xcd   : > { %v1500_v61 = vpop.eup %1499  ;;  %1068 = vst [vmem:[%s1805_s23 + $0x1a0] sm:$0xff] %v1498_v60  ;;  %1511 = vpow2.f32 %v836_v53  ;;  %v633_v1 = vpop.f32.mrf.mxu2 }
  0xce   : > { %v1502_v63 = vpop.eup %1501  ;;  %v941_v0 = vadd.f32 1.0, %v1500_v61  ;;  %1513 = vpow2.f32 %v868_v57  ;;  %v673_v2 = vpop.f32.mrf.mxu3  ;;  %v735_v4 = vsub.f32 0.0, %v633_v1 }
  0xcf   : > { %v1504_v3 = vpop.eup %1503  ;;  %1021 = vst [vmem:[%s1805_s23 + $0x28] sm:$0xff] %v1502_v63  ;;  %1515 = vpow2.f32 %v774_v59  ;;  %v556_v5 = vpop.f32.mrf.mxu0  ;;  %v751_v11 = vsub.f32 0.0, %v673_v2 }
  0xd0   : > { %v596_v6 = vpop.f32.mrf.mxu1  ;;  %v1506_v7 = vpop.eup %1505  ;;  %1037 = vst [vmem:[%s1805_s23 + $0xa8] sm:$0xff] %v1504_v3  ;;  %1517 = vrcp.f32 %v941_v0  ;;  %v838_v10 = vmul.f32 1.442695, %v735_v4  ;;  %v704_v15 = vsub.f32 0.0, %v556_v5 }
  0xd1   : > { %v1508_v8 = vpop.eup %1507  ;;  %v894_v9 = vadd.f32 1.0, %v1506_v7  ;;  %1519 = vpow2.f32 %v806_v62  ;;  %v720_v18 = vsub.f32 0.0, %v596_v6  ;;  %v870_v21 = vmul.f32 1.442695, %v751_v11 }
  0xd2   : > { %v1510_v12 = vpop.eup %1509  ;;  %v910_v13 = vadd.f32 1.0, %v1508_v8  ;;  %v776_v27 = vmul.f32 1.442695, %v704_v15 }
  0xd3   : > { %v1512_v14 = vpop.eup %1511  ;;  %1053 = vst [vmem:[%s1805_s23 + $0x128] sm:$0xff] %v1510_v12  ;;  %1521 = vrcp.f32 %v894_v9  ;;  %v808_v33 = vmul.f32 1.442695, %v720_v18 }
  0xd4   : > { %v1514_v16 = vpop.eup %1513  ;;  %1523 = vrcp.f32 %v910_v13  ;;  %v926_v17 = vadd.f32 1.0, %v1512_v14 }
  0xd5   : > { %v1516_v19 = vpop.eup %1515  ;;  %v942_v20 = vadd.f32 1.0, %v1514_v16  ;;  %1525 = vpow2.f32 %v838_v10  ;;  %v636_v24 = vpop.f32.mrf.mxu2 }
  0xd6   : > { %v1518_v22 = vpop.eup %1517  ;;  %1527 = vrcp.f32 %v926_v17  ;;  %v895_v23 = vadd.f32 1.0, %v1516_v19  ;;  %v676_v25 = vpop.f32.mrf.mxu3  ;;  %v736_v28 = vsub.f32 0.0, %v636_v24 }
  0xd7   : > { %v1520_v26 = vpop.eup %1519  ;;  %1069 = vst [vmem:[%s1805_s23 + $0x1a8] sm:$0xff] %v1518_v22  ;;  %1529 = vrcp.f32 %v942_v20  ;;  %v752_v29 = vsub.f32 0.0, %v676_v25  ;;  %v558_v30 = vpop.f32.mrf.mxu0 }
  0xd8   : > { %v598_v31 = vpop.f32.mrf.mxu1  ;;  %1531 = vrcp.f32 %v895_v23  ;;  %v911_v32 = vadd.f32 1.0, %v1520_v26  ;;  %v705_v34 = vsub.f32 0.0, %v558_v30  ;;  %v840_v36 = vmul.f32 1.442695, %v736_v28 }
  0xd9   : > { %v1522_v35 = vpop.eup %1521  ;;  %1533 = vpow2.f32 %v870_v21  ;;  %v721_v37 = vsub.f32 0.0, %v598_v31  ;;  %v872_v40 = vmul.f32 1.442695, %v752_v29 }
  0xda   : > { %v1524_v38 = vpop.eup %1523  ;;  %1022 = vst [vmem:[%s1805_s23 + $0x30] sm:$0xff] %v1522_v35  ;;  %1535 = vrcp.f32 %v911_v32  ;;  %v778_v43 = vmul.f32 1.442695, %v705_v34 }
  0xdb   : > { %v1526_v39 = vpop.eup %1525  ;;  %1038 = vst [vmem:[%s1805_s23 + $0xb0] sm:$0xff] %v1524_v38  ;;  %1537 = vpow2.f32 %v776_v27  ;;  %v810_v45 = vmul.f32 1.442695, %v721_v37 }
  0xdc   : > { %v1528_v41 = vpop.eup %1527  ;;  %v927_v42 = vadd.f32 1.0, %v1526_v39  ;;  %1539 = vpow2.f32 %v808_v33 }
  0xdd   : > { %v1530_v44 = vpop.eup %1529  ;;  %1054 = vst [vmem:[%s1805_s23 + $0x130] sm:$0xff] %v1528_v41  ;;  %1541 = vpow2.f32 %v840_v36  ;;  %v638_v47 = vpop.f32.mrf.mxu2 }
  0xde   : > { %v1532_v46 = vpop.eup %1531  ;;  %1070 = vst [vmem:[%s1805_s23 + $0x1b0] sm:$0xff] %v1530_v44  ;;  %1543 = vrcp.f32 %v927_v42  ;;  %v678_v48 = vpop.f32.mrf.mxu3  ;;  %v737_v50 = vsub.f32 0.0, %v638_v47 }
  0xdf   : > { %v1534_v49 = vpop.eup %1533  ;;  %1023 = vst [vmem:[%s1805_s23 + $0x38] sm:$0xff] %v1532_v46  ;;  %1545 = vpow2.f32 %v872_v40  ;;  %v753_v51 = vsub.f32 0.0, %v678_v48  ;;  %v561_v52 = vpop.f32.mrf.mxu0 }
  0xe0   : > { %v601_v53 = vpop.f32.mrf.mxu1  ;;  %v1536_v54 = vpop.eup %1535  ;;  %v943_v55 = vadd.f32 1.0, %v1534_v49  ;;  %1547 = vpow2.f32 %v778_v43  ;;  %v842_v57 = vmul.f32 1.442695, %v737_v50  ;;  %v706_v60 = vsub.f32 0.0, %v561_v52 }
  0xe1   : > { %v1538_v56 = vpop.eup %1537  ;;  %1039 = vst [vmem:[%s1805_s23 + $0xb8] sm:$0xff] %v1536_v54  ;;  %1549 = vpow2.f32 %v810_v45  ;;  %v874_v63 = vmul.f32 1.442695, %v753_v51  ;;  %v722_v3 = vsub.f32 0.0, %v601_v53 }
  0xe2   : > { %v1540_v58 = vpop.eup %1539  ;;  %1551 = vrcp.f32 %v943_v55  ;;  %v896_v59 = vadd.f32 1.0, %v1538_v56  ;;  %v780_v6 = vmul.f32 1.442695, %v706_v60 }
  0xe3   : > { %v1542_v61 = vpop.eup %1541  ;;  %v912_v62 = vadd.f32 1.0, %v1540_v58  ;;  %1553 = vpow2.f32 %v842_v57  ;;  %v812_v18 = vmul.f32 1.442695, %v722_v3 }
  0xe4   : > { %v1544_v0 = vpop.eup %1543  ;;  %1555 = vrcp.f32 %v896_v59  ;;  %v928_v1 = vadd.f32 1.0, %v1542_v61 }
  0xe5   : > { %v1546_v2 = vpop.eup %1545  ;;  %1055 = vst [vmem:[%s1805_s23 + $0x138] sm:$0xff] %v1544_v0  ;;  %1557 = vrcp.f32 %v912_v62  ;;  %v641_v7 = vpop.f32.mrf.mxu2 }
  0xe6   : > { %v1548_v4 = vpop.eup %1547  ;;  %1559 = vrcp.f32 %v928_v1  ;;  %v944_v5 = vadd.f32 1.0, %v1546_v2  ;;  %v681_v8 = vpop.f32.mrf.mxu3  ;;  %v738_v11 = vsub.f32 0.0, %v641_v7 }
  0xe7   : > { %v1550_v9 = vpop.eup %1549  ;;  %v897_v10 = vadd.f32 1.0, %v1548_v4  ;;  %1561 = vpow2.f32 %v874_v63  ;;  %v754_v12 = vsub.f32 0.0, %v681_v8  ;;  %v563_v13 = vpop.f32.mrf.mxu0 }
  0xe8   : > { %v603_v14 = vpop.f32.mrf.mxu1  ;;  %v1552_v15 = vpop.eup %1551  ;;  %1563 = vrcp.f32 %v944_v5  ;;  %v913_v16 = vadd.f32 1.0, %v1550_v9  ;;  %v707_v19 = vsub.f32 0.0, %v563_v13  ;;  %v844_v22 = vmul.f32 1.442695, %v738_v11 }
  0xe9   : > { %v1554_v17 = vpop.eup %1553  ;;  %1071 = vst [vmem:[%s1805_s23 + $0x1b8] sm:$0xff] %v1552_v15  ;;  %1565 = vrcp.f32 %v897_v10  ;;  %v723_v23 = vsub.f32 0.0, %v603_v14  ;;  %v876_v25 = vmul.f32 1.442695, %v754_v12 }
  0xea   : > { %v1556_v20 = vpop.eup %1555  ;;  %1567 = vrcp.f32 %v913_v16  ;;  %v929_v21 = vadd.f32 1.0, %v1554_v17  ;;  %v782_v28 = vmul.f32 1.442695, %v707_v19 }
  0xeb   : > { %v1558_v24 = vpop.eup %1557  ;;  %1024 = vst [vmem:[%s1805_s23 + $0x40] sm:$0xff] %v1556_v20  ;;  %1569 = vpow2.f32 %v780_v6  ;;  %v814_v31 = vmul.f32 1.442695, %v723_v23 }
  0xec   : > { %v1560_v26 = vpop.eup %1559  ;;  %1040 = vst [vmem:[%s1805_s23 + $0xc0] sm:$0xff] %v1558_v24  ;;  %1571 = vrcp.f32 %v929_v21 }
  0xed   : > { %v1562_v27 = vpop.eup %1561  ;;  %1056 = vst [vmem:[%s1805_s23 + $0x140] sm:$0xff] %v1560_v26  ;;  %1573 = vpow2.f32 %v812_v18  ;;  %v643_v32 = vpop.f32.mrf.mxu2 }
  0xee   : > { %v1564_v29 = vpop.eup %1563  ;;  %v945_v30 = vadd.f32 1.0, %v1562_v27  ;;  %1575 = vpow2.f32 %v844_v22  ;;  %v683_v33 = vpop.f32.mrf.mxu3  ;;  %v739_v35 = vsub.f32 0.0, %v643_v32 }
  0xef   : > { %v1566_v34 = vpop.eup %1565  ;;  %1072 = vst [vmem:[%s1805_s23 + $0x1c0] sm:$0xff] %v1564_v29  ;;  %1577 = vpow2.f32 %v876_v25  ;;  %v755_v36 = vsub.f32 0.0, %v683_v33  ;;  %v566_v37 = vpop.f32.mrf.mxu0 }
  0xf0   : > { %v606_v38 = vpop.f32.mrf.mxu1  ;;  %v1568_v39 = vpop.eup %1567  ;;  %1025 = vst [vmem:[%s1805_s23 + $0x48] sm:$0xff] %v1566_v34  ;;  %1579 = vrcp.f32 %v945_v30  ;;  %v846_v41 = vmul.f32 1.442695, %v739_v35  ;;  %v708_v43 = vsub.f32 0.0, %v566_v37 }
  0xf1   : > { %v1570_v40 = vpop.eup %1569  ;;  %1041 = vst [vmem:[%s1805_s23 + $0xc8] sm:$0xff] %v1568_v39  ;;  %1581 = vpow2.f32 %v782_v28  ;;  %v878_v42 = vmul.f32 1.442695, %v755_v36  ;;  %v724_v52 = vsub.f32 0.0, %v606_v38 }
  0xf2   : > { %v1572_v44 = vpop.eup %1571  ;;  %v898_v45 = vadd.f32 1.0, %v1570_v40  ;;  %1583 = vpow2.f32 %v814_v31  ;;  %v784_v51 = vmul.f32 1.442695, %v708_v43 }
  0xf3   : > { %v1574_v46 = vpop.eup %1573  ;;  %1057 = vst [vmem:[%s1805_s23 + $0x148] sm:$0xff] %v1572_v44  ;;  %1585 = vpow2.f32 %v846_v41  ;;  %v816_v2 = vmul.f32 1.442695, %v724_v52 }
  0xf4   : > { %v1576_v47 = vpop.eup %1575  ;;  %1587 = vrcp.f32 %v898_v45  ;;  %v914_v48 = vadd.f32 1.0, %v1574_v46 }
  0xf5   : > { %v1578_v49 = vpop.eup %1577  ;;  %v930_v50 = vadd.f32 1.0, %v1576_v47  ;;  %1589 = vpow2.f32 %v878_v42  ;;  %v646_v55 = vpop.f32.mrf.mxu2 }
  0xf6   : > { %v1580_v53 = vpop.eup %1579  ;;  %1591 = vrcp.f32 %v914_v48  ;;  %v946_v54 = vadd.f32 1.0, %v1578_v49  ;;  %v686_v56 = vpop.f32.mrf.mxu3  ;;  %v740_v58 = vsub.f32 0.0, %v646_v55 }
  0xf7   : > { %v1582_v57 = vpop.eup %1581  ;;  %1073 = vst [vmem:[%s1805_s23 + $0x1c8] sm:$0xff] %v1580_v53  ;;  %1593 = vrcp.f32 %v930_v50  ;;  %v568_v59 = vpop.f32.mrf.mxu0  ;;  %v756_v63 = vsub.f32 0.0, %v686_v56 }
  0xf8   : > { %v608_v60 = vpop.f32.mrf.mxu1  ;;  %v1584_v61 = vpop.eup %1583  ;;  %1595 = vrcp.f32 %v946_v54  ;;  %v899_v62 = vadd.f32 1.0, %v1582_v57  ;;  %v709_v3 = vsub.f32 0.0, %v568_v59  ;;  %v848_v7 = vmul.f32 1.442695, %v740_v58 }
  0xf9   : > { %v1586_v0 = vpop.eup %1585  ;;  %v915_v1 = vadd.f32 1.0, %v1584_v61  ;;  %1597 = vpow2.f32 %v784_v51  ;;  %v725_v8 = vsub.f32 0.0, %v608_v60  ;;  %v880_v11 = vmul.f32 1.442695, %v756_v63 }
  0xfa   : > { %v1588_v4 = vpop.eup %1587  ;;  %1599 = vrcp.f32 %v899_v62  ;;  %v931_v5 = vadd.f32 1.0, %v1586_v0  ;;  %v786_v13 = vmul.f32 1.442695, %v709_v3 }
  0xfb   : > { %v1590_v6 = vpop.eup %1589  ;;  %1026 = vst [vmem:[%s1805_s23 + $0x50] sm:$0xff] %v1588_v4  ;;  %1601 = vrcp.f32 %v915_v1  ;;  %v818_v18 = vmul.f32 1.442695, %v725_v8 }
  0xfc   : > { %v1592_v9 = vpop.eup %1591  ;;  %1603 = vrcp.f32 %v931_v5  ;;  %v947_v10 = vadd.f32 1.0, %v1590_v6 }
  0xfd   : > { %v1594_v12 = vpop.eup %1593  ;;  %1042 = vst [vmem:[%s1805_s23 + $0xd0] sm:$0xff] %v1592_v9  ;;  %1605 = vpow2.f32 %v816_v2  ;;  %v648_v15 = vpop.f32.mrf.mxu2 }
  0xfe   : > { %v1596_v14 = vpop.eup %1595  ;;  %1058 = vst [vmem:[%s1805_s23 + $0x150] sm:$0xff] %v1594_v12  ;;  %1607 = vrcp.f32 %v947_v10  ;;  %v688_v16 = vpop.f32.mrf.mxu3  ;;  %v741_v19 = vsub.f32 0.0, %v648_v15 }
  0xff   : > { %v1598_v17 = vpop.eup %1597  ;;  %1074 = vst [vmem:[%s1805_s23 + $0x1d0] sm:$0xff] %v1596_v14  ;;  %1609 = vpow2.f32 %v848_v7  ;;  %v757_v20 = vsub.f32 0.0, %v688_v16  ;;  %v571_v21 = vpop.f32.mrf.mxu0 }
 0x100   : > { %v611_v22 = vpop.f32.mrf.mxu1  ;;  %v1600_v23 = vpop.eup %1599  ;;  %v900_v24 = vadd.f32 1.0, %v1598_v17  ;;  %1611 = vpow2.f32 %v880_v11  ;;  %v710_v25 = vsub.f32 0.0, %v571_v21  ;;  %v850_v27 = vmul.f32 1.442695, %v741_v19 }
 0x101   : > { %v1602_v26 = vpop.eup %1601  ;;  %1027 = vst [vmem:[%s1805_s23 + $0x58] sm:$0xff] %v1600_v23  ;;  %1613 = vpow2.f32 %v786_v13  ;;  %v882_v28 = vmul.f32 1.442695, %v757_v20  ;;  %v726_v32 = vsub.f32 0.0, %v611_v22 }
 0x102   : > { %v1604_v29 = vpop.eup %1603  ;;  %1043 = vst [vmem:[%s1805_s23 + $0xd8] sm:$0xff] %v1602_v26  ;;  %1615 = vrcp.f32 %v900_v24  ;;  %v788_v31 = vmul.f32 1.442695, %v710_v25 }
 0x103   : > { %v1606_v30 = vpop.eup %1605  ;;  %1059 = vst [vmem:[%s1805_s23 + $0x158] sm:$0xff] %v1604_v29  ;;  %1617 = vpow2.f32 %v818_v18  ;;  %v820_v42 = vmul.f32 1.442695, %v726_v32 }
 0x104   : > { %v1608_v33 = vpop.eup %1607  ;;  %v916_v34 = vadd.f32 1.0, %v1606_v30  ;;  %1619 = vpow2.f32 %v850_v27 }
 0x105   : > { %v1610_v35 = vpop.eup %1609  ;;  %1075 = vst [vmem:[%s1805_s23 + $0x1d8] sm:$0xff] %v1608_v33  ;;  %1621 = vpow2.f32 %v882_v28  ;;  %v651_v38 = vpop.f32.mrf.mxu2 }
 0x106   : > { %v1612_v36 = vpop.eup %1611  ;;  %1623 = vrcp.f32 %v916_v34  ;;  %v932_v37 = vadd.f32 1.0, %v1610_v35  ;;  %v691_v39 = vpop.f32.mrf.mxu3  ;;  %v742_v43 = vsub.f32 0.0, %v651_v38 }
 0x107   : > { %v1614_v40 = vpop.eup %1613  ;;  %v948_v41 = vadd.f32 1.0, %v1612_v36  ;;  %1625 = vpow2.f32 %v788_v31  ;;  %v573_v44 = vpop.f32.mrf.mxu0  ;;  %v758_v49 = vsub.f32 0.0, %v691_v39 }
 0x108   : > { %v1616_v45 = vpop.eup %1615  ;;  %1627 = vrcp.f32 %v932_v37  ;;  %v901_v46 = vadd.f32 1.0, %v1614_v40  ;;  %v613_v47 = vpop.f32.mrf.mxu1  ;;  %v711_v52 = vsub.f32 0.0, %v573_v44  ;;  %v852_v55 = vmul.f32 1.442695, %v742_v43 }
 0x109   : > { %v1618_v48 = vpop.eup %1617  ;;  %1028 = vst [vmem:[%s1805_s23 + $0x60] sm:$0xff] %v1616_v45  ;;  %1629 = vrcp.f32 %v948_v41  ;;  %v727_v56 = vsub.f32 0.0, %v613_v47  ;;  %v884_v60 = vmul.f32 1.442695, %v758_v49 }
 0x10a   : > { %v1620_v50 = vpop.eup %1619  ;;  %1631 = vrcp.f32 %v901_v46  ;;  %v917_v51 = vadd.f32 1.0, %v1618_v48  ;;  %v790_v63 = vmul.f32 1.442695, %v711_v52 }
 0x10b   : > { %v1622_v53 = vpop.eup %1621  ;;  %v933_v54 = vadd.f32 1.0, %v1620_v50  ;;  %1633 = vpow2.f32 %v820_v42  ;;  %v822_v3 = vmul.f32 1.442695, %v727_v56 }
 0x10c   : > { %v1624_v57 = vpop.eup %1623  ;;  %1635 = vrcp.f32 %v917_v51  ;;  %v949_v58 = vadd.f32 1.0, %v1622_v53 }
 0x10d   : > { %v1626_v59 = vpop.eup %1625  ;;  %1044 = vst [vmem:[%s1805_s23 + $0xe0] sm:$0xff] %v1624_v57  ;;  %1637 = vrcp.f32 %v933_v54  ;;  %v653_v0 = vpop.f32.mrf.mxu2 }
 0x10e   : > { %v1628_v61 = vpop.eup %1627  ;;  %1639 = vrcp.f32 %v949_v58  ;;  %v902_v62 = vadd.f32 1.0, %v1626_v59  ;;  %v693_v1 = vpop.f32.mrf.mxu3  ;;  %v743_v4 = vsub.f32 0.0, %v653_v0 }
 0x10f   : > { %v1630_v2 = vpop.eup %1629  ;;  %1060 = vst [vmem:[%s1805_s23 + $0x160] sm:$0xff] %v1628_v61  ;;  %1641 = vpow2.f32 %v852_v55  ;;  %v759_v5 = vsub.f32 0.0, %v693_v1 }
 0x110   : > { %v1632_v6 = vpop.eup %1631  ;;  %1076 = vst [vmem:[%s1805_s23 + $0x1e0] sm:$0xff] %v1630_v2  ;;  %1643 = vrcp.f32 %v902_v62  ;;  %v854_v8 = vmul.f32 1.442695, %v743_v4 }
 0x111   : > { %v1634_v7 = vpop.eup %1633  ;;  %1029 = vst [vmem:[%s1805_s23 + $0x68] sm:$0xff] %v1632_v6  ;;  %1645 = vpow2.f32 %v884_v60  ;;  %v886_v11 = vmul.f32 1.442695, %v759_v5 }
 0x112   : > { %v1636_v9 = vpop.eup %1635  ;;  %v918_v10 = vadd.f32 1.0, %v1634_v7  ;;  %1647 = vpow2.f32 %v790_v63 }
 0x113   : > { %v1638_v12 = vpop.eup %1637  ;;  %1045 = vst [vmem:[%s1805_s23 + $0xe8] sm:$0xff] %v1636_v9  ;;  %1649 = vpow2.f32 %v822_v3 }
 0x114   : > { %v1640_v13 = vpop.eup %1639  ;;  %1061 = vst [vmem:[%s1805_s23 + $0x168] sm:$0xff] %v1638_v12  ;;  %1651 = vrcp.f32 %v918_v10 }
 0x115   : > { %v1642_v14 = vpop.eup %1641  ;;  %1077 = vst [vmem:[%s1805_s23 + $0x1e8] sm:$0xff] %v1640_v13  ;;  %1653 = vpow2.f32 %v854_v8 }
 0x116   : > { %v1644_v15 = vpop.eup %1643  ;;  %v934_v16 = vadd.f32 1.0, %v1642_v14  ;;  %1655 = vpow2.f32 %v886_v11 }
 0x117   : > { %v1646_v17 = vpop.eup %1645  ;;  %1030 = vst [vmem:[%s1805_s23 + $0x70] sm:$0xff] %v1644_v15 }
 0x118   : > { %v1648_v18 = vpop.eup %1647  ;;  %1657 = vrcp.f32 %v934_v16  ;;  %v950_v19 = vadd.f32 1.0, %v1646_v17 }
 0x119   : > { %v1650_v20 = vpop.eup %1649  ;;  %v903_v21 = vadd.f32 1.0, %v1648_v18 }
 0x11a   : > { %v1652_v22 = vpop.eup %1651  ;;  %1659 = vrcp.f32 %v950_v19  ;;  %v919_v23 = vadd.f32 1.0, %v1650_v20 }
 0x11b   : > { %v1654_v24 = vpop.eup %1653  ;;  %1046 = vst [vmem:[%s1805_s23 + $0xf0] sm:$0xff] %v1652_v22  ;;  %1661 = vrcp.f32 %v903_v21 }
 0x11c   : > { %v1656_v25 = vpop.eup %1655  ;;  %1663 = vrcp.f32 %v919_v23  ;;  %v935_v26 = vadd.f32 1.0, %v1654_v24 }
 0x11d   : > { %v951_v27 = vadd.f32 1.0, %v1656_v25 }
 0x11e   : > { %v1658_v28 = vpop.eup %1657  ;;  %1665 = vrcp.f32 %v935_v26 }
 0x11f   : > { %1062 = vst [vmem:[%s1805_s23 + $0x170] sm:$0xff] %v1658_v28  ;;  %1667 = vrcp.f32 %v951_v27 }
 0x120   : > { %v1660_v29 = vpop.eup %1659 }
 0x121   : > { %v1662_v30 = vpop.eup %1661  ;;  %1078 = vst [vmem:[%s1805_s23 + $0x1f0] sm:$0xff] %v1660_v29 }
 0x122   : > { %v1664_v31 = vpop.eup %1663  ;;  %1031 = vst [vmem:[%s1805_s23 + $0x78] sm:$0xff] %v1662_v30 }
 0x123   : > { %1047 = vst [vmem:[%s1805_s23 + $0xf8] sm:$0xff] %v1664_v31 }
 0x124   : > { %v1666_v32 = vpop.eup %1665 }
 0x125   : > { %v1668_v33 = vpop.eup %1667  ;;  %1063 = vst [vmem:[%s1805_s23 + $0x178] sm:$0xff] %v1666_v32 }
 0x126   : > { %1079 = vst [vmem:[%s1805_s23 + $0x1f8] sm:$0xff] %v1668_v33 }
 0x127 PF: > { %s12_s11 = sadd.s32 1, %s1691_s11   ;;  %s1883_s9 = smov %s1687_s10 }
 0x128   : > { %p9_p5 = scmp.ge.s32.totalorder %s12_s11, 6   ;;  %s1884_s10 = smov %s1886_s12 }
 0x12a   :  { %11 = sbr.rel (!%p9_p5) target bundleno = 2 (0x2), region = 61 }

</bundles_post_ra>
